<compile_context>
chip_gen: v7x
topology: tpu7x:2x2x1
jax: 0.10.0
libtpu: 0.0.40
codegen_flags: <defaults>
</compile_context>

<pallas_src>
import numpy as np
import jax
import jax.numpy as jnp
from jax.experimental import pallas as pl
from jax.experimental.pallas import tpu as pltpu

# ---------------------------------------------------------------------------
# Architecture constants
# ---------------------------------------------------------------------------
IN_CH = 4
IMG = 16
LATENT = 8
LATENT_PAD = 128                 # lane-dense latent (perf review item 2)
ENC1_CH = 16
ENC2_CH = 32
H1 = IMG // 2                    # 8
H2 = IMG // 4                    # 4
FLAT1 = ENC1_CH * H1 * H1        # 1024: conv1 output == convT1 output, (h,w,c) flat
FLAT2 = ENC2_CH * H2 * H2        # 512 : conv2 output == dec-fc output, (h,w,c) flat
BATCH_PAD = 8                    # pad batch to a full sublane group (item 4)


# ---------------------------------------------------------------------------
# Fused Pallas kernel: conv2 -> enc-fc -> dec-fc -> convT1
# (4 chained MXU matmuls, bf16 operands / f32 accumulation, all outputs
#  lane-dense and sublane-full.)
# ---------------------------------------------------------------------------
def _wae_core_kernel(h1_ref, t2_ref, b2_ref, wfc_ref, bfc_ref,
                     wdfc_ref, bdfc_ref, t3_hbm_ref, b3_ref,
                     d1_ref, codes_ref,
                     t3_vmem, t3_sem):
    f32 = jnp.float32
    bf16 = jnp.bfloat16

    # Item 3: start fetching the 1 MiB decoder Toeplitz now; it is only needed
    # after the encoder + dec-fc matmuls, so its DMA hides under that compute.
    t3_copy = pltpu.make_async_copy(t3_hbm_ref, t3_vmem, t3_sem.at[0])
    t3_copy.start()

    def gemm(lhs_bf16, w, b, relu):
        acc = jnp.dot(lhs_bf16, w, preferred_element_type=f32) + b
        return jnp.maximum(acc, 0.0) if relu else acc

    # ---- encoder ----
    h2 = gemm(h1_ref[...], t2_ref[...], b2_ref[...], True)            # (BP, 512)
    codes = gemm(h2.astype(bf16), wfc_ref[...], bfc_ref[...], False)  # (BP, 128)
    codes_ref[...] = codes

    # ---- decoder ----
    d0 = gemm(codes.astype(bf16), wdfc_ref[...], bdfc_ref[...], True)  # (BP, 512)
    t3_copy.wait()
    d1 = gemm(d0.astype(bf16), t3_vmem[...], b3_ref[...], True)        # (BP, 1024)
    d1_ref[...] = d1


def _vmem_spec():
    return pl.BlockSpec(memory_space=pltpu.MemorySpace.VMEM)


def _call_core(h1_flat, packed):
    bp = h1_flat.shape[0]
    return pl.pallas_call(
        _wae_core_kernel,
        out_shape=(jax.ShapeDtypeStruct((bp, FLAT1), jnp.float32),      # d1
                   jax.ShapeDtypeStruct((bp, LATENT_PAD), jnp.float32)),  # codes
        in_specs=[_vmem_spec(),                      # h1_flat
                  _vmem_spec(), _vmem_spec(),        # t2, b2
                  _vmem_spec(), _vmem_spec(),        # wfc, bfc
                  _vmem_spec(), _vmem_spec(),        # wdfc, bdfc
                  pl.BlockSpec(memory_space=pl.ANY),  # t3 stays in HBM (manual DMA)
                  _vmem_spec()],                     # b3
        out_specs=(_vmem_spec(), _vmem_spec()),
        scratch_shapes=[pltpu.VMEM((FLAT2, FLAT1), jnp.bfloat16),   # t3 landing buffer
                        pltpu.SemaphoreType.DMA((1,))],
    )(h1_flat, packed["t2"], packed["b2"], packed["wfc"], packed["bfc"],
      packed["wdfc"], packed["bdfc"], packed["t3"], packed["b3"])


# ---------------------------------------------------------------------------
# Wrapper-side boundary layers (bf16 GEMMs mirroring the kernel numerics).
# These touch data that crosses the pallas_call boundary anyway, so doing the
# patch gather / scatter here costs ~0 extra HBM traffic while avoiding 4 MiB
# of Toeplitz weights per call.
# ---------------------------------------------------------------------------
def _im2col(x_nhwc, kh, kw, stride, pad):
    b, h, w, c = x_nhwc.shape
    xp = jnp.pad(x_nhwc, ((0, 0), (pad, pad), (pad, pad), (0, 0)))
    oh = (h + 2 * pad - kh) // stride + 1
    ow = (w + 2 * pad - kw) // stride + 1
    patches = []
    for i in range(kh):
        for j in range(kw):
            patches.append(xp[:, i:i + stride * oh:stride, j:j + stride * ow:stride, :])
    p = jnp.stack(patches, axis=3)
    return p.reshape(b * oh * ow, kh * kw * c), oh, ow


def _gemm_bias_act(x, w, b, activation=None):
    acc = jnp.dot(x.astype(jnp.bfloat16), w.astype(jnp.bfloat16),
                  preferred_element_type=jnp.float32) + b.astype(jnp.float32)
    if activation == "relu":
        acc = jnp.maximum(acc, 0.0)
    elif activation == "sigmoid":
        acc = jax.nn.sigmoid(acc)       # item 5: safe sigmoid
    return acc


def _conv2d_gemm(x_nhwc, w_oihw, bias, stride, pad, activation=None):
    c_out, c_in, kh, kw = w_oihw.shape
    cols, oh, ow = _im2col(x_nhwc, kh, kw, stride, pad)
    w_mat = jnp.transpose(w_oihw, (2, 3, 1, 0)).reshape(kh * kw * c_in, c_out)
    y = _gemm_bias_act(cols, w_mat, bias, activation)
    return y.reshape(x_nhwc.shape[0], oh, ow, c_out)


def _conv_transpose2d_gemm(x_nhwc, w_iohw, bias, stride, pad, activation=None):
    b, h, w, c_in = x_nhwc.shape
    _, c_out, kh, kw = w_iohw.shape
    xd = jnp.zeros((b, (h - 1) * stride + 1, (w - 1) * stride + 1, c_in), x_nhwc.dtype)
    xd = xd.at[:, ::stride, ::stride, :].set(x_nhwc)
    w_eq = jnp.transpose(jnp.flip(w_iohw, axis=(2, 3)), (1, 0, 2, 3))
    return _conv2d_gemm(xd, w_eq, bias, stride=1, pad=kh - 1 - pad, activation=activation)


# ---------------------------------------------------------------------------
# WAE.forward equivalent: returns [output(NCHW), codes]
# ---------------------------------------------------------------------------
def wae_forward_packed(packed, x_nchw, activate=False):
    b = x_nchw.shape[0]
    bp = max(BATCH_PAD, -(-b // BATCH_PAD) * BATCH_PAD)     # item 4: pad batch
    x = jnp.transpose(x_nchw, (0, 2, 3, 1))                 # NCHW -> NHWC
    x = jnp.pad(x, ((0, bp - b), (0, 0), (0, 0), (0, 0)))

    # Boundary layer (wrapper): conv1 with its real ~4 KiB weight.
    h1 = _conv2d_gemm(x, packed["ec1_w"], packed["ec1_b"], 2, 1, "relu")  # (bp,8,8,16)
    h1_flat = h1.reshape(bp, FLAT1).astype(jnp.bfloat16)                  # (h,w,c) flat

    # Fused interior: conv2 -> enc-fc -> dec-fc -> convT1 (single pallas_call).
    d1_flat, codes_pad = _call_core(h1_flat, packed)

    codes = codes_pad[:b, :LATENT]

    # Boundary layer (wrapper): convT2 with its real ~4 KiB weight (+ sigmoid).
    d1 = d1_flat.reshape(bp, H1, H1, ENC1_CH)                              # NHWC
    out = _conv_transpose2d_gemm(d1, packed["dc2_w"], packed["dc2_b"], 2, 1,
                                 "sigmoid" if activate else None)          # (bp,16,16,4)
    output = jnp.transpose(out[:b], (0, 3, 1, 2))                          # NCHW
    return [output, codes]


# ---------------------------------------------------------------------------
# One-time weight packing: interior conv/convT -> implicit-GEMM (Toeplitz),
# fc weights padded to a lane-dense latent of 128.
# ---------------------------------------------------------------------------
def _conv_toeplitz(w_oihw, h_in, w_in, stride, pad):
    """T s.t. flat_out = flat_in @ T, both flattened in (h, w, c) order."""
    c_out, c_in, kh, kw = w_oihw.shape
    oh = (h_in + 2 * pad - kh) // stride + 1
    ow = (w_in + 2 * pad - kw) // stride + 1
    conn = np.zeros((kh, kw, h_in * w_in, oh * ow), np.float32)
    for oy in range(oh):
        for ox in range(ow):
            for i in range(kh):
                for j in range(kw):
                    y = stride * oy - pad + i
                    x = stride * ox - pad + j
                    if 0 <= y < h_in and 0 <= x < w_in:
                        conn[i, j, y * w_in + x, oy * ow + ox] = 1.0
    t = jnp.einsum("ijpq,ocij->pcqo", jnp.asarray(conn), w_oihw)
    return t.reshape(h_in * w_in * c_in, oh * ow * c_out)


def _convT_toeplitz(w_iohw, h_in, w_in, stride, pad):
    """PyTorch ConvTranspose2d as flat_out = flat_in @ T (output_padding=0)."""
    c_in, c_out, kh, kw = w_iohw.shape
    h_out = (h_in - 1) * stride - 2 * pad + kh
    w_out = (w_in - 1) * stride - 2 * pad + kw
    conn = np.zeros((kh, kw, h_in * w_in, h_out * w_out), np.float32)
    for hy in range(h_in):
        for hx in range(w_in):
            for i in range(kh):
                for j in range(kw):
                    y = stride * hy - pad + i
                    x = stride * hx - pad + j
                    if 0 <= y < h_out and 0 <= x < w_out:
                        conn[i, j, hy * w_in + hx, y * w_out + x] = 1.0
    t = jnp.einsum("ijpq,coij->pcqo", jnp.asarray(conn), w_iohw)
    return t.reshape(h_in * w_in * c_in, h_out * w_out * c_out)


def pack_wae_params(params):
    bf16, f32 = jnp.bfloat16, jnp.float32
    t2 = _conv_toeplitz(params["ec2_w"], H1, H1, 2, 1)     # (1024, 512)  ~1 MiB bf16
    t3 = _convT_toeplitz(params["dc1_w"], H2, H2, 2, 1)    # (512, 1024)  ~1 MiB bf16

    # Lane-dense latent: pad enc-fc columns / dec-fc rows with zeros to 128.
    wfc = jnp.zeros((FLAT2, LATENT_PAD), f32).at[:, :LATENT].set(params["efc_w"])
    bfc = jnp.zeros((1, LATENT_PAD), f32).at[0, :LATENT].set(params["efc_b"])
    wdfc = jnp.zeros((LATENT_PAD, FLAT2), f32).at[:LATENT, :].set(params["dfc_w"])

    return {
        # interior (kernel) weights
        "t2": t2.astype(bf16),
        "b2": jnp.tile(params["ec2_b"], H2 * H2).reshape(1, -1).astype(f32),
        "wfc": wfc.astype(bf16),
        "bfc": bfc,
        "wdfc": wdfc.astype(bf16),
        "bdfc": params["dfc_b"].reshape(1, -1).astype(f32),
        "t3": t3.astype(bf16),
        "b3": jnp.tile(params["dc1_b"], H1 * H1).reshape(1, -1).astype(f32),
        # boundary-layer (wrapper) weights, kept in their compact form
        "ec1_w": params["ec1_w"], "ec1_b": params["ec1_b"],
        "dc2_w": params["dc2_w"], "dc2_b": params["dc2_b"],
    }


# ---------------------------------------------------------------------------
# Deterministic synthetic parameters (base ConvAE not provided)
# ---------------------------------------------------------------------------
def init_wae_params(key, in_ch=IN_CH, latent_size=LATENT):
    ks = jax.random.split(key, 12)
    s = 0.05

    def rn(k, shape):
        return s * jax.random.normal(k, shape, dtype=jnp.float32)

    return {
        "ec1_w": rn(ks[0], (ENC1_CH, in_ch, 4, 4)),   "ec1_b": rn(ks[1], (ENC1_CH,)),
        "ec2_w": rn(ks[2], (ENC2_CH, ENC1_CH, 4, 4)), "ec2_b": rn(ks[3], (ENC2_CH,)),
        "efc_w": rn(ks[4], (FLAT2, latent_size)),     "efc_b": rn(ks[5], (latent_size,)),
        "dfc_w": rn(ks[6], (latent_size, FLAT2)),     "dfc_b": rn(ks[7], (FLAT2,)),
        "dc1_w": rn(ks[8], (ENC2_CH, ENC1_CH, 4, 4)), "dc1_b": rn(ks[9], (ENC1_CH,)),
        "dc2_w": rn(ks[10], (ENC1_CH, in_ch, 4, 4)),  "dc2_b": rn(ks[11], (in_ch,)),
    }


# ---------------------------------------------------------------------------
# Plain-JAX reference (im2col convs, bf16 matmuls mirroring the kernel) used
# only for an in-script numerical cross-check of the fused kernel.
# ---------------------------------------------------------------------------
def reference_forward(params, x_nchw, activate=False):
    x = jnp.transpose(x_nchw, (0, 2, 3, 1))
    h = _conv2d_gemm(x, params["ec1_w"], params["ec1_b"], 2, 1, "relu")
    h = _conv2d_gemm(h, params["ec2_w"], params["ec2_b"], 2, 1, "relu")
    b = h.shape[0]
    codes = _gemm_bias_act(h.reshape(b, -1), params["efc_w"], params["efc_b"], None)
    d = _gemm_bias_act(codes, params["dfc_w"], params["dfc_b"], "relu")
    d = d.reshape(b, H2, H2, ENC2_CH)
    d = _conv_transpose2d_gemm(d, params["dc1_w"], params["dc1_b"], 2, 1, "relu")
    d = _conv_transpose2d_gemm(d, params["dc2_w"], params["dc2_b"], 2, 1,
                               "sigmoid" if activate else None)
    return jnp.transpose(d, (0, 3, 1, 2)), codes


# ---------------------------------------------------------------------------
if __name__ == "__main__":
    key = jax.random.PRNGKey(0)
    k_param, k_input = jax.random.split(key)

    B, C, H, W = 2, IN_CH, IMG, IMG
    params = init_wae_params(k_param, in_ch=C, latent_size=LATENT)
    x = jax.random.normal(k_input, (B, C, H, W), dtype=jnp.float32)

    packed = pack_wae_params(params)                 # one-time weight packing
    fwd = jax.jit(wae_forward_packed, static_argnames=("activate",))

    output, codes = fwd(packed, x, activate=False)
    jax.block_until_ready((output, codes))

    assert output.shape == (B, C, H, W), output.shape
    assert codes.shape == (B, LATENT), codes.shape
    assert bool(jnp.all(jnp.isfinite(output))) and bool(jnp.all(jnp.isfinite(codes)))

    # Cross-check the fused kernel against the plain-JAX reference.
    ref_out, ref_codes = reference_forward(params, x, activate=False)
    assert float(jnp.max(jnp.abs(output - ref_out))) < 2e-3
    assert float(jnp.max(jnp.abs(codes - ref_codes))) < 2e-3

    # Also exercise the sigmoid (activate=True) path.
    output_s, codes_s = fwd(packed, x, activate=True)
    jax.block_until_ready((output_s, codes_s))
    ref_out_s, _ = reference_forward(params, x, activate=True)
    assert float(jnp.max(jnp.abs(output_s - ref_out_s))) < 2e-3

    print("KERNEL_OK")
</pallas_src>

<mosaic_0001>
module attributes {stable_mosaic.version = 11 : i64} {
  func.func @_wae_core_kernel(%arg0: memref<8x1024xbf16, #tpu.memory_space<vmem>>, %arg1: memref<1024x512xbf16, #tpu.memory_space<vmem>>, %arg2: memref<1x512xf32, #tpu.memory_space<vmem>>, %arg3: memref<512x128xbf16, #tpu.memory_space<vmem>>, %arg4: memref<1x128xf32, #tpu.memory_space<vmem>>, %arg5: memref<128x512xbf16, #tpu.memory_space<vmem>>, %arg6: memref<1x512xf32, #tpu.memory_space<vmem>>, %arg7: memref<512x1024xbf16, #tpu.memory_space<any>>, %arg8: memref<1x1024xf32, #tpu.memory_space<vmem>>, %arg9: memref<8x1024xf32, #tpu.memory_space<vmem>>, %arg10: memref<8x128xf32, #tpu.memory_space<vmem>>, %arg11: memref<512x1024xbf16, #tpu.memory_space<vmem>>, %arg12: memref<1x!tpu.dma_semaphore, #tpu.memory_space<semaphore_mem>>) attributes {dimension_semantics = [], scalar_prefetch = 0 : i64, scratch_operands = 2 : i64, tpu.core_type = #tpu.core_type<tc>} {
    %c0_i32 = arith.constant 0 : i32
    %0 = tpu.memref_slice %arg12[%c0_i32] : memref<1x!tpu.dma_semaphore, #tpu.memory_space<semaphore_mem>> -> memref<1x!tpu.dma_semaphore, #tpu.memory_space<semaphore_mem>>
    %1 = tpu.memref_squeeze %0 : memref<1x!tpu.dma_semaphore, #tpu.memory_space<semaphore_mem>> -> memref<!tpu.dma_semaphore, #tpu.memory_space<semaphore_mem>>
    tpu.enqueue_dma source(%arg7 : memref<512x1024xbf16, #tpu.memory_space<any>>) target(%arg11 : memref<512x1024xbf16, #tpu.memory_space<vmem>>) target_semaphore(%1 : memref<!tpu.dma_semaphore, #tpu.memory_space<semaphore_mem>>)
    %c0 = arith.constant 0 : index
    %c0_0 = arith.constant 0 : index
    %2 = vector.load %arg0[%c0, %c0_0] : memref<8x1024xbf16, #tpu.memory_space<vmem>>, vector<8x1024xbf16>
    %c0_1 = arith.constant 0 : index
    %c0_2 = arith.constant 0 : index
    %3 = vector.load %arg1[%c0_1, %c0_2] : memref<1024x512xbf16, #tpu.memory_space<vmem>>, vector<1024x512xbf16>
    %c0_3 = arith.constant 0 : index
    %c0_4 = arith.constant 0 : index
    %4 = vector.load %arg2[%c0_3, %c0_4] : memref<1x512xf32, #tpu.memory_space<vmem>>, vector<1x512xf32>
    %cst = arith.constant dense<0.000000e+00> : vector<8x512xf32>
    %5 = tpu.matmul %2, %3, %cst {dimension_numbers = #tpu.dot_dimension_numbers<[1], [0], [0], [1], [0, 0, 1, 1], [], []>} : vector<8x1024xbf16>, vector<1024x512xbf16>, vector<8x512xf32> -> vector<8x512xf32>
    %6 = vector.broadcast %4 : vector<1x512xf32> to vector<8x512xf32>
    %7 = arith.addf %5, %6 : vector<8x512xf32>
    %cst_5 = arith.constant 0.000000e+00 : f32
    %8 = vector.broadcast %cst_5 : f32 to vector<8x512xf32>
    %9 = arith.maximumf %7, %8 : vector<8x512xf32>
    %10 = arith.truncf %9 : vector<8x512xf32> to vector<8x512xbf16>
    %c0_6 = arith.constant 0 : index
    %c0_7 = arith.constant 0 : index
    %11 = vector.load %arg3[%c0_6, %c0_7] : memref<512x128xbf16, #tpu.memory_space<vmem>>, vector<512x128xbf16>
    %c0_8 = arith.constant 0 : index
    %c0_9 = arith.constant 0 : index
    %12 = vector.load %arg4[%c0_8, %c0_9] : memref<1x128xf32, #tpu.memory_space<vmem>>, vector<1x128xf32>
    %cst_10 = arith.constant dense<0.000000e+00> : vector<8x128xf32>
    %13 = tpu.matmul %10, %11, %cst_10 {dimension_numbers = #tpu.dot_dimension_numbers<[1], [0], [0], [1], [0, 0, 1, 1], [], []>} : vector<8x512xbf16>, vector<512x128xbf16>, vector<8x128xf32> -> vector<8x128xf32>
    %14 = vector.broadcast %12 : vector<1x128xf32> to vector<8x128xf32>
    %15 = arith.addf %13, %14 : vector<8x128xf32>
    %c0_11 = arith.constant 0 : index
    %c0_12 = arith.constant 0 : index
    %16 = vector.load %arg10[%c0_11, %c0_12] : memref<8x128xf32, #tpu.memory_space<vmem>>, vector<8x128xf32>
    tpu.vector_store %arg10[%c0_11, %c0_12], %15 {strides = array<i32>} : memref<8x128xf32, #tpu.memory_space<vmem>>, vector<8x128xf32>,
    %17 = arith.truncf %15 : vector<8x128xf32> to vector<8x128xbf16>
    %c0_13 = arith.constant 0 : index
    %c0_14 = arith.constant 0 : index
    %18 = vector.load %arg5[%c0_13, %c0_14] : memref<128x512xbf16, #tpu.memory_space<vmem>>, vector<128x512xbf16>
    %c0_15 = arith.constant 0 : index
    %c0_16 = arith.constant 0 : index
    %19 = vector.load %arg6[%c0_15, %c0_16] : memref<1x512xf32, #tpu.memory_space<vmem>>, vector<1x512xf32>
    %cst_17 = arith.constant dense<0.000000e+00> : vector<8x512xf32>
    %20 = tpu.matmul %17, %18, %cst_17 {dimension_numbers = #tpu.dot_dimension_numbers<[1], [0], [0], [1], [0, 0, 1, 1], [], []>} : vector<8x128xbf16>, vector<128x512xbf16>, vector<8x512xf32> -> vector<8x512xf32>
    %21 = vector.broadcast %19 : vector<1x512xf32> to vector<8x512xf32>
    %22 = arith.addf %20, %21 : vector<8x512xf32>
    %cst_18 = arith.constant 0.000000e+00 : f32
    %23 = vector.broadcast %cst_18 : f32 to vector<8x512xf32>
    %24 = arith.maximumf %22, %23 : vector<8x512xf32>
    %c0_i32_19 = arith.constant 0 : i32
    %25 = tpu.memref_slice %arg12[%c0_i32_19] : memref<1x!tpu.dma_semaphore, #tpu.memory_space<semaphore_mem>> -> memref<1x!tpu.dma_semaphore, #tpu.memory_space<semaphore_mem>>
    %26 = tpu.memref_squeeze %25 : memref<1x!tpu.dma_semaphore, #tpu.memory_space<semaphore_mem>> -> memref<!tpu.dma_semaphore, #tpu.memory_space<semaphore_mem>>
    tpu.wait_dma2 semaphore(%26 : memref<!tpu.dma_semaphore, #tpu.memory_space<semaphore_mem>>) src(%arg7 : memref<512x1024xbf16, #tpu.memory_space<any>>) dst(%arg11 : memref<512x1024xbf16, #tpu.memory_space<vmem>>)
    %27 = arith.truncf %24 : vector<8x512xf32> to vector<8x512xbf16>
    %c0_20 = arith.constant 0 : index
    %c0_21 = arith.constant 0 : index
    %28 = vector.load %arg11[%c0_20, %c0_21] : memref<512x1024xbf16, #tpu.memory_space<vmem>>, vector<512x1024xbf16>
    %c0_22 = arith.constant 0 : index
    %c0_23 = arith.constant 0 : index
    %29 = vector.load %arg8[%c0_22, %c0_23] : memref<1x1024xf32, #tpu.memory_space<vmem>>, vector<1x1024xf32>
    %cst_24 = arith.constant dense<0.000000e+00> : vector<8x1024xf32>
    %30 = tpu.matmul %27, %28, %cst_24 {dimension_numbers = #tpu.dot_dimension_numbers<[1], [0], [0], [1], [0, 0, 1, 1], [], []>} : vector<8x512xbf16>, vector<512x1024xbf16>, vector<8x1024xf32> -> vector<8x1024xf32>
    %31 = vector.broadcast %29 : vector<1x1024xf32> to vector<8x1024xf32>
    %32 = arith.addf %30, %31 : vector<8x1024xf32>
    %cst_25 = arith.constant 0.000000e+00 : f32
    %33 = vector.broadcast %cst_25 : f32 to vector<8x1024xf32>
    %34 = arith.maximumf %32, %33 : vector<8x1024xf32>
    %c0_26 = arith.constant 0 : index
    %c0_27 = arith.constant 0 : index
    %35 = vector.load %arg9[%c0_26, %c0_27] : memref<8x1024xf32, #tpu.memory_space<vmem>>, vector<8x1024xf32>
    tpu.vector_store %arg9[%c0_26, %c0_27], %34 {strides = array<i32>} : memref<8x1024xf32, #tpu.memory_space<vmem>>, vector<8x1024xf32>,
    return
  }
}

</mosaic_0001>

<bundles_post_ra>
// kernel: wae_forward_packed.1
= control target key start
LH: loop header
LB: loop body
LE: loop exit
PB: predicated region body
PF: predicated region fallthrough
CT: control target
= control target key end

     0   :  { %16 = vsyncpa [#allocation5], 0  ;;  %s11102_s0 = inlined_call_operand.vmem [shape: bf16[8,1024], index: 0, kind: input, shape index: {}]   ;;  %s11103_s1 = inlined_call_operand.vmem [shape: bf16[1024,512], index: 1, kind: input, shape index: {}]   ;;  %s11104_s2 = inlined_call_operand.hbm [shape: f32[1,512], index: 2, kind: input, shape index: {}]   ;;  %s11105_s3 = inlined_call_operand.hbm [shape: bf16[512,128], index: 3, kind: input, shape index: {}]   ;;  %s11106_s4 = inlined_call_operand.hbm [shape: f32[1,128], index: 4, kind: input, shape index: {}]   ;;  %s11107_s5 = inlined_call_operand.hbm [shape: bf16[128,512], index: 5, kind: input, shape index: {}]   ;;  %s11108_s6 = inlined_call_operand.hbm [shape: f32[1,512], index: 6, kind: input, shape index: {}]   ;;  %s11109_s7 = inlined_call_operand.vmem [shape: bf16[512,1024], index: 7, kind: input, shape index: {}]   ;;  %s11110_s8 = inlined_call_operand.hbm [shape: f32[1,1024], index: 8, kind: input, shape index: {}]   ;;  %s11111_s9 = inlined_call_operand.vmem [shape: f32[8,1024], index: 9, kind: output, shape index: {0}]   ;;  %s11112_s10 = inlined_call_operand.vmem [shape: f32[8,128], index: 10, kind: output, shape index: {1}]  }
   0x1   :  { %17 = vsyncpa [#allocation7], 0 }
   0x2   :  { %18 = vsyncpa [#allocation10], 0 }
   0x3   :  { %19 = vsyncpa [#allocation13], 0  ;;  %s8624_s13 = smov [#allocation6]   ;;  %s8482_s17 = scalar_lea.hbm %s11105_s3, 4096 }
   0x4   :  { %s39_s14 = sshll.u32 %s8624_s13, 4  ;;  %p8483_p0 = scmp.ne.s32.totalorder %s11105_s3, %s8482_s17  ;;  %s40_s14 = int_to_ptr.vmem [resolvable:$true] %s39_s14 }
   0x5   :  { %p8486_p1 = scmp.lt.u32.totalorder %s8482_s17, %s11105_s3 }
   0x7   :  { %p8488_p2 = pnand %p8486_p1, %p8483_p0 }
   0x9   :  { %8491 = shalt.err (!%p8488_p2)
}
   0xa   :  { %s8492_s22 = scalar_lea.vmem %s40_s14, 4096  ;;  %p8497_p4 = scmp.lt.s32.totalorder %s40_s14, %s40_s14 }
   0xb   :  { %p8493_p3 = scmp.ne.s32.totalorder %s40_s14, %s8492_s22  ;;  %p8498_p5 = scmp.lt.s32.totalorder %s8492_s22, %s8492_s22 }
   0xd   :  { %p8499_p6 = por %p8498_p5, %p8497_p4 }
   0xf   :  { %p8500_p7 = pnand %p8499_p6, %p8493_p3 }
  0x11   :  { %8503 = shalt.err (!%p8500_p7)
}
  0x12   :  { %s8625_s23 = smov 64   ;;  %s8626_s24 = smov 4  }
  0x13   :  { %45 = dma.hbm_to_vmem [thread:$0]  %s11105_s3, 4096, %s40_s14, [#allocation7], %s8625_s23, %s8625_s23, %s8626_s24  }
  0x14   :  { %s8627_s27 = smov [#allocation9]   ;;  %s8504_s11 = scalar_lea.hbm %s11107_s5, 4096 }
  0x15   :  { %s61_s28 = sshll.u32 %s8627_s27, 4  ;;  %p8505_p8 = scmp.ne.s32.totalorder %s11107_s5, %s8504_s11  ;;  %s62_s28 = int_to_ptr.vmem [resolvable:$true] %s61_s28 }
  0x16   :  { %p8508_p9 = scmp.lt.u32.totalorder %s8504_s11, %s11107_s5 }
  0x18   :  { %p8510_p10 = pnand %p8508_p9, %p8505_p8 }
  0x1a   :  { %8513 = shalt.err (!%p8510_p10)
}
  0x1b   :  { %s8514_s17 = scalar_lea.vmem %s62_s28, 4096  ;;  %p8519_p12 = scmp.lt.s32.totalorder %s62_s28, %s62_s28 }
  0x1c   :  { %p8515_p11 = scmp.ne.s32.totalorder %s62_s28, %s8514_s17  ;;  %p8520_p13 = scmp.lt.s32.totalorder %s8514_s17, %s8514_s17 }
  0x1e   :  { %p8521_p0 = por %p8520_p13, %p8519_p12 }
  0x20   :  { %p8522_p1 = pnand %p8521_p0, %p8515_p11 }
  0x22   :  { %8525 = shalt.err (!%p8522_p1)
}
  0x23   :  { %s8628_s3 = smov 256   ;;  %s8629_s14 = smov 16  }
  0x24   :  { %67 = dma.hbm_to_vmem [thread:$0]  %s11107_s5, 4096, %s62_s28, [#allocation10], %s8628_s3, %s8628_s3, %s8629_s14  }
  0x25   :  { %s8630_s20 = smov [#allocation4]   ;;  %s8631_s22 = smov [#allocation8]  }
  0x26   :  { %s30_s21 = sshll.u32 %s8630_s20, 4  ;;  %s52_s23 = sshll.u32 %s8631_s22, 4  ;;  %s31_s21 = int_to_ptr.vmem [resolvable:$true] %s30_s21  ;;  %s53_s23 = int_to_ptr.vmem [resolvable:$true] %s52_s23 }
  0x27   :  { %s8526_s26 = scalar_lea.hbm %s11104_s2, 64 }
  0x28   :  { %p8527_p2 = scmp.ne.s32.totalorder %s11104_s2, %s8526_s26  ;;  %p8530_p3 = scmp.lt.u32.totalorder %s8526_s26, %s11104_s2 }
  0x2a   :  { %p8532_p4 = pnand %p8530_p3, %p8527_p2 }
  0x2c   :  { %8535 = shalt.err (!%p8532_p4)
}
  0x2d   :  { %s8536_s5 = scalar_lea.vmem %s31_s21, 64  ;;  %p8541_p6 = scmp.lt.s32.totalorder %s31_s21, %s31_s21 }
  0x2e   :  { %p8537_p5 = scmp.ne.s32.totalorder %s31_s21, %s8536_s5  ;;  %p8542_p7 = scmp.lt.s32.totalorder %s8536_s5, %s8536_s5 }
  0x30   :  { %p8543_p8 = por %p8542_p7, %p8541_p6 }
  0x32   :  { %p8544_p9 = pnand %p8543_p8, %p8537_p5 }
  0x34   :  { %8547 = shalt.err (!%p8544_p9)
}
  0x35   :  { %33 = dma.hbm_to_vmem [thread:$0]  %s11104_s2, 64, %s31_s21, [#allocation5]  }
  0x36   :  { %s8548_s16 = scalar_lea.hbm %s11106_s4, 16 }
  0x37   :  { %p8549_p10 = scmp.ne.s32.totalorder %s11106_s4, %s8548_s16  ;;  %p8552_p11 = scmp.lt.u32.totalorder %s8548_s16, %s11106_s4 }
  0x39   :  { %p8554_p12 = pnand %p8552_p11, %p8549_p10 }
  0x3b   :  { %8557 = shalt.err (!%p8554_p12)
}
  0x3c   :  { %s8558_s19 = scalar_lea.vmem %s53_s23, 16  ;;  %s8562_s20 = scalar_lea.vmem %s53_s23, 32 }
  0x3d   :  { %p8559_p13 = scmp.ne.s32.totalorder %s53_s23, %s8558_s19  ;;  %p8563_p0 = scmp.lt.s32.totalorder %s53_s23, %s53_s23 }
  0x3e   :  { %p8564_p1 = scmp.lt.s32.totalorder %s8562_s20, %s8558_s19 }
  0x40   :  { %p8565_p2 = por %p8564_p1, %p8563_p0 }
  0x42   :  { %p8566_p3 = pnand %p8565_p2, %p8559_p13 }
  0x44   :  { %8569 = shalt.err (!%p8566_p3)
}
  0x45   :  { %55 = dma.hbm_to_vmem [thread:$0]  %s11106_s4, 16, %s53_s23, [#allocation7]  }
  0x46   :  { %s8632_s22 = smov [#allocation11]   ;;  %s8633_s25 = smov [#allocation12]  }
  0x47   :  { %s74_s24 = sshll.u32 %s8632_s22, 4  ;;  %s84_s26 = sshll.u32 %s8633_s25, 4  ;;  %s75_s24 = int_to_ptr.vmem [resolvable:$true] %s74_s24  ;;  %s85_s26 = int_to_ptr.vmem [resolvable:$true] %s84_s26 }
  0x48   :  { %s8570_s30 = scalar_lea.hbm %s11108_s6, 64 }
  0x49   :  { %p8571_p4 = scmp.ne.s32.totalorder %s11108_s6, %s8570_s30  ;;  %p8574_p5 = scmp.lt.u32.totalorder %s8570_s30, %s11108_s6 }
  0x4b   :  { %p8576_p6 = pnand %p8574_p5, %p8571_p4 }
  0x4d   :  { %8579 = shalt.err (!%p8576_p6)
}
  0x4e   :  { %s8580_s4 = scalar_lea.vmem %s75_s24, 64  ;;  %p8585_p8 = scmp.lt.s32.totalorder %s75_s24, %s75_s24 }
  0x4f   :  { %p8581_p7 = scmp.ne.s32.totalorder %s75_s24, %s8580_s4  ;;  %p8586_p9 = scmp.lt.s32.totalorder %s8580_s4, %s8580_s4 }
  0x51   :  { %p8587_p10 = por %p8586_p9, %p8585_p8 }
  0x53   :  { %p8588_p11 = pnand %p8587_p10, %p8581_p7 }
  0x55   :  { %8591 = shalt.err (!%p8588_p11)
}
  0x56   :  { %77 = dma.hbm_to_vmem [thread:$0]  %s11108_s6, 64, %s75_s24, [#allocation10]  }
  0x57   :  { %s8592_s17 = scalar_lea.hbm %s11110_s8, 128 }
  0x58   :  { %p8593_p12 = scmp.ne.s32.totalorder %s11110_s8, %s8592_s17  ;;  %p8596_p13 = scmp.lt.u32.totalorder %s8592_s17, %s11110_s8 }
  0x5a   :  { %p8598_p0 = pnand %p8596_p13, %p8593_p12 }
  0x5c   :  { %8601 = shalt.err (!%p8598_p0)
}
  0x5d   :  { %s8602_s20 = scalar_lea.vmem %s85_s26, 128  ;;  %p8607_p2 = scmp.lt.s32.totalorder %s85_s26, %s85_s26 }
  0x5e   :  { %p8603_p1 = scmp.ne.s32.totalorder %s85_s26, %s8602_s20  ;;  %p8608_p3 = scmp.lt.s32.totalorder %s8602_s20, %s8602_s20 }
  0x60   :  { %p8609_p4 = por %p8608_p3, %p8607_p2 }
  0x62   :  { %p8610_p5 = pnand %p8609_p4, %p8603_p1 }
  0x64   :  { %8613 = shalt.err (!%p8610_p5)
}
  0x65   :  { %87 = dma.hbm_to_vmem [thread:$0]  %s11110_s8, 128, %s85_s26, [#allocation13]  }
  0x66   :  { %8614 = dma.done.wait [#allocation5], 64  }
  0x67   :  { %8615 = vsyncadd [#allocation5], 4294967232 }
  0x68   :  { %8616 = dma.done.wait [#allocation7], 4112  }
  0x69   :  { %8617 = vsyncadd [#allocation7], 4294963184 }
  0x6a   :  { %8618 = dma.done.wait [#allocation10], 4160  }
  0x6b   :  { %8619 = vsyncadd [#allocation10], 4294963136 }
  0x6c   :  { %8620 = dma.done.wait [#allocation13], 128  }
  0x6d   :  { %8621 = vsyncadd [#allocation13], 4294967168  ;;  %v124_v0 = vld [vmem:[%s11109_s7] sm:$0xf]  ;;  %v128_v2 = vld [vmem:[%s11109_s7 + $0x4] sm:$0xf] }
  0x6e   :  { %v126_v1 = vld [vmem:[%s11109_s7 + $0x20] sm:$0xf]  ;;  %125 = vst [vmem:[#allocation2] sm:$0xf] %v124_v0  ;;  %129 = vst [vmem:[#allocation2 + $0x8] sm:$0xf] %v128_v2 }
  0x6f   :  { %127 = vst [vmem:[#allocation2 + $0x4] sm:$0xf] %v126_v1  ;;  %v130_v3 = vld [vmem:[%s11109_s7 + $0x24] sm:$0xf]  ;;  %v132_v4 = vld [vmem:[%s11109_s7 + $0x8] sm:$0xf] }
  0x70   :  { %v134_v5 = vld [vmem:[%s11109_s7 + $0x28] sm:$0xf]  ;;  %131 = vst [vmem:[#allocation2 + $0xc] sm:$0xf] %v130_v3  ;;  %133 = vst [vmem:[#allocation2 + $0x10] sm:$0xf] %v132_v4 }
  0x71   :  { %135 = vst [vmem:[#allocation2 + $0x14] sm:$0xf] %v134_v5  ;;  %v136_v6 = vld [vmem:[%s11109_s7 + $0xc] sm:$0xf]  ;;  %v140_v8 = vld [vmem:[%s11109_s7 + $0x10] sm:$0xf] }
  0x72   :  { %v138_v7 = vld [vmem:[%s11109_s7 + $0x2c] sm:$0xf]  ;;  %137 = vst [vmem:[#allocation2 + $0x18] sm:$0xf] %v136_v6  ;;  %141 = vst [vmem:[#allocation2 + $0x20] sm:$0xf] %v140_v8 }
  0x73   :  { %139 = vst [vmem:[#allocation2 + $0x1c] sm:$0xf] %v138_v7  ;;  %v142_v9 = vld [vmem:[%s11109_s7 + $0x30] sm:$0xf]  ;;  %v144_v10 = vld [vmem:[%s11109_s7 + $0x14] sm:$0xf] }
  0x74   :  { %v146_v11 = vld [vmem:[%s11109_s7 + $0x34] sm:$0xf]  ;;  %143 = vst [vmem:[#allocation2 + $0x24] sm:$0xf] %v142_v9  ;;  %145 = vst [vmem:[#allocation2 + $0x28] sm:$0xf] %v144_v10 }
  0x75   :  { %147 = vst [vmem:[#allocation2 + $0x2c] sm:$0xf] %v146_v11  ;;  %v148_v12 = vld [vmem:[%s11109_s7 + $0x18] sm:$0xf]  ;;  %v152_v14 = vld [vmem:[%s11109_s7 + $0x1c] sm:$0xf] }
  0x76   :  { %v150_v13 = vld [vmem:[%s11109_s7 + $0x38] sm:$0xf]  ;;  %149 = vst [vmem:[#allocation2 + $0x30] sm:$0xf] %v148_v12  ;;  %153 = vst [vmem:[#allocation2 + $0x38] sm:$0xf] %v152_v14 }
  0x77   :  { %151 = vst [vmem:[#allocation2 + $0x34] sm:$0xf] %v150_v13  ;;  %v154_v15 = vld [vmem:[%s11109_s7 + $0x3c] sm:$0xff]   ;;  %v160_v17 = vld [vmem:[%s11109_s7 + $0x44] sm:$0xf] }
  0x78   :  { %v158_v16 = vld [vmem:[%s11109_s7 + $0x60] sm:$0xf]  ;;  %155 = vst [vmem:[#allocation2 + $0x3c] sm:$0xff] %v154_v15   ;;  %161 = vst [vmem:[#allocation2 + $0x48] sm:$0xf] %v160_v17 }
  0x79   :  { %159 = vst [vmem:[#allocation2 + $0x44] sm:$0xf] %v158_v16  ;;  %v162_v18 = vld [vmem:[%s11109_s7 + $0x64] sm:$0xf]  ;;  %v164_v19 = vld [vmem:[%s11109_s7 + $0x48] sm:$0xf] }
  0x7a   :  { %v166_v20 = vld [vmem:[%s11109_s7 + $0x68] sm:$0xf]  ;;  %163 = vst [vmem:[#allocation2 + $0x4c] sm:$0xf] %v162_v18  ;;  %165 = vst [vmem:[#allocation2 + $0x50] sm:$0xf] %v164_v19 }
  0x7b   :  { %167 = vst [vmem:[#allocation2 + $0x54] sm:$0xf] %v166_v20  ;;  %v168_v21 = vld [vmem:[%s11109_s7 + $0x4c] sm:$0xf]  ;;  %v172_v23 = vld [vmem:[%s11109_s7 + $0x50] sm:$0xf] }
  0x7c   :  { %v170_v22 = vld [vmem:[%s11109_s7 + $0x6c] sm:$0xf]  ;;  %169 = vst [vmem:[#allocation2 + $0x58] sm:$0xf] %v168_v21  ;;  %173 = vst [vmem:[#allocation2 + $0x60] sm:$0xf] %v172_v23 }
  0x7d   :  { %171 = vst [vmem:[#allocation2 + $0x5c] sm:$0xf] %v170_v22  ;;  %v174_v24 = vld [vmem:[%s11109_s7 + $0x70] sm:$0xf]  ;;  %v176_v25 = vld [vmem:[%s11109_s7 + $0x54] sm:$0xf] }
  0x7e   :  { %v178_v26 = vld [vmem:[%s11109_s7 + $0x74] sm:$0xf]  ;;  %175 = vst [vmem:[#allocation2 + $0x64] sm:$0xf] %v174_v24  ;;  %177 = vst [vmem:[#allocation2 + $0x68] sm:$0xf] %v176_v25 }
  0x7f   :  { %179 = vst [vmem:[#allocation2 + $0x6c] sm:$0xf] %v178_v26  ;;  %v180_v27 = vld [vmem:[%s11109_s7 + $0x58] sm:$0xf]  ;;  %v184_v29 = vld [vmem:[%s11109_s7 + $0x5c] sm:$0xf] }
  0x80   :  { %v182_v28 = vld [vmem:[%s11109_s7 + $0x78] sm:$0xf]  ;;  %181 = vst [vmem:[#allocation2 + $0x70] sm:$0xf] %v180_v27  ;;  %185 = vst [vmem:[#allocation2 + $0x78] sm:$0xf] %v184_v29 }
  0x81   :  { %183 = vst [vmem:[#allocation2 + $0x74] sm:$0xf] %v182_v28  ;;  %v186_v30 = vld [vmem:[%s11109_s7 + $0x7c] sm:$0xff]   ;;  %v192_v32 = vld [vmem:[%s11109_s7 + $0x84] sm:$0xf] }
  0x82   :  { %v190_v31 = vld [vmem:[%s11109_s7 + $0xa0] sm:$0xf]  ;;  %187 = vst [vmem:[#allocation2 + $0x7c] sm:$0xff] %v186_v30   ;;  %193 = vst [vmem:[#allocation2 + $0x88] sm:$0xf] %v192_v32 }
  0x83   :  { %191 = vst [vmem:[#allocation2 + $0x84] sm:$0xf] %v190_v31  ;;  %v194_v33 = vld [vmem:[%s11109_s7 + $0xa4] sm:$0xf]  ;;  %v196_v34 = vld [vmem:[%s11109_s7 + $0x88] sm:$0xf] }
  0x84   :  { %v198_v35 = vld [vmem:[%s11109_s7 + $0xa8] sm:$0xf]  ;;  %195 = vst [vmem:[#allocation2 + $0x8c] sm:$0xf] %v194_v33  ;;  %197 = vst [vmem:[#allocation2 + $0x90] sm:$0xf] %v196_v34 }
  0x85   :  { %199 = vst [vmem:[#allocation2 + $0x94] sm:$0xf] %v198_v35  ;;  %v200_v36 = vld [vmem:[%s11109_s7 + $0x8c] sm:$0xf]  ;;  %v204_v38 = vld [vmem:[%s11109_s7 + $0x90] sm:$0xf] }
  0x86   :  { %v202_v37 = vld [vmem:[%s11109_s7 + $0xac] sm:$0xf]  ;;  %201 = vst [vmem:[#allocation2 + $0x98] sm:$0xf] %v200_v36  ;;  %205 = vst [vmem:[#allocation2 + $0xa0] sm:$0xf] %v204_v38 }
  0x87   :  { %203 = vst [vmem:[#allocation2 + $0x9c] sm:$0xf] %v202_v37  ;;  %v206_v39 = vld [vmem:[%s11109_s7 + $0xb0] sm:$0xf]  ;;  %v208_v40 = vld [vmem:[%s11109_s7 + $0x94] sm:$0xf] }
  0x88   :  { %v210_v41 = vld [vmem:[%s11109_s7 + $0xb4] sm:$0xf]  ;;  %207 = vst [vmem:[#allocation2 + $0xa4] sm:$0xf] %v206_v39  ;;  %209 = vst [vmem:[#allocation2 + $0xa8] sm:$0xf] %v208_v40 }
  0x89   :  { %211 = vst [vmem:[#allocation2 + $0xac] sm:$0xf] %v210_v41  ;;  %v212_v42 = vld [vmem:[%s11109_s7 + $0x98] sm:$0xf]  ;;  %v216_v44 = vld [vmem:[%s11109_s7 + $0x9c] sm:$0xf] }
  0x8a   :  { %v214_v43 = vld [vmem:[%s11109_s7 + $0xb8] sm:$0xf]  ;;  %213 = vst [vmem:[#allocation2 + $0xb0] sm:$0xf] %v212_v42  ;;  %217 = vst [vmem:[#allocation2 + $0xb8] sm:$0xf] %v216_v44 }
  0x8b   :  { %215 = vst [vmem:[#allocation2 + $0xb4] sm:$0xf] %v214_v43  ;;  %v218_v45 = vld [vmem:[%s11109_s7 + $0xbc] sm:$0xff]   ;;  %v224_v47 = vld [vmem:[%s11109_s7 + $0xc4] sm:$0xf] }
  0x8c   :  { %v222_v46 = vld [vmem:[%s11109_s7 + $0xe0] sm:$0xf]  ;;  %219 = vst [vmem:[#allocation2 + $0xbc] sm:$0xff] %v218_v45   ;;  %225 = vst [vmem:[#allocation2 + $0xc8] sm:$0xf] %v224_v47 }
  0x8d   :  { %223 = vst [vmem:[#allocation2 + $0xc4] sm:$0xf] %v222_v46  ;;  %v226_v48 = vld [vmem:[%s11109_s7 + $0xe4] sm:$0xf]  ;;  %v228_v49 = vld [vmem:[%s11109_s7 + $0xc8] sm:$0xf] }
  0x8e   :  { %v230_v50 = vld [vmem:[%s11109_s7 + $0xe8] sm:$0xf]  ;;  %227 = vst [vmem:[#allocation2 + $0xcc] sm:$0xf] %v226_v48  ;;  %229 = vst [vmem:[#allocation2 + $0xd0] sm:$0xf] %v228_v49 }
  0x8f   :  { %231 = vst [vmem:[#allocation2 + $0xd4] sm:$0xf] %v230_v50  ;;  %v232_v51 = vld [vmem:[%s11109_s7 + $0xcc] sm:$0xf]  ;;  %v236_v53 = vld [vmem:[%s11109_s7 + $0xd0] sm:$0xf] }
  0x90   :  { %v234_v52 = vld [vmem:[%s11109_s7 + $0xec] sm:$0xf]  ;;  %233 = vst [vmem:[#allocation2 + $0xd8] sm:$0xf] %v232_v51  ;;  %237 = vst [vmem:[#allocation2 + $0xe0] sm:$0xf] %v236_v53 }
  0x91   :  { %235 = vst [vmem:[#allocation2 + $0xdc] sm:$0xf] %v234_v52  ;;  %v238_v54 = vld [vmem:[%s11109_s7 + $0xf0] sm:$0xf]  ;;  %v240_v55 = vld [vmem:[%s11109_s7 + $0xd4] sm:$0xf] }
  0x92   :  { %v242_v56 = vld [vmem:[%s11109_s7 + $0xf4] sm:$0xf]  ;;  %239 = vst [vmem:[#allocation2 + $0xe4] sm:$0xf] %v238_v54  ;;  %241 = vst [vmem:[#allocation2 + $0xe8] sm:$0xf] %v240_v55 }
  0x93   :  { %243 = vst [vmem:[#allocation2 + $0xec] sm:$0xf] %v242_v56  ;;  %v244_v57 = vld [vmem:[%s11109_s7 + $0xd8] sm:$0xf]  ;;  %v248_v59 = vld [vmem:[%s11109_s7 + $0xdc] sm:$0xf] }
  0x94   :  { %v246_v58 = vld [vmem:[%s11109_s7 + $0xf8] sm:$0xf]  ;;  %245 = vst [vmem:[#allocation2 + $0xf0] sm:$0xf] %v244_v57  ;;  %249 = vst [vmem:[#allocation2 + $0xf8] sm:$0xf] %v248_v59 }
  0x95   :  { %247 = vst [vmem:[#allocation2 + $0xf4] sm:$0xf] %v246_v58  ;;  %v250_v60 = vld [vmem:[%s11109_s7 + $0xfc] sm:$0xff]   ;;  %v256_v62 = vld [vmem:[%s11109_s7 + $0x104] sm:$0xf] }
  0x96   :  { %v254_v61 = vld [vmem:[%s11109_s7 + $0x120] sm:$0xf]  ;;  %251 = vst [vmem:[#allocation2 + $0xfc] sm:$0xff] %v250_v60   ;;  %257 = vst [vmem:[#allocation2 + $0x108] sm:$0xf] %v256_v62 }
  0x97   :  { %255 = vst [vmem:[#allocation2 + $0x104] sm:$0xf] %v254_v61  ;;  %v258_v63 = vld [vmem:[%s11109_s7 + $0x124] sm:$0xf]  ;;  %v260_v0 = vld [vmem:[%s11109_s7 + $0x108] sm:$0xf] }
  0x98   :  { %v262_v1 = vld [vmem:[%s11109_s7 + $0x128] sm:$0xf]  ;;  %259 = vst [vmem:[#allocation2 + $0x10c] sm:$0xf] %v258_v63  ;;  %261 = vst [vmem:[#allocation2 + $0x110] sm:$0xf] %v260_v0 }
  0x99   :  { %263 = vst [vmem:[#allocation2 + $0x114] sm:$0xf] %v262_v1  ;;  %v264_v2 = vld [vmem:[%s11109_s7 + $0x10c] sm:$0xf]  ;;  %v268_v4 = vld [vmem:[%s11109_s7 + $0x110] sm:$0xf] }
  0x9a   :  { %v266_v3 = vld [vmem:[%s11109_s7 + $0x12c] sm:$0xf]  ;;  %265 = vst [vmem:[#allocation2 + $0x118] sm:$0xf] %v264_v2  ;;  %269 = vst [vmem:[#allocation2 + $0x120] sm:$0xf] %v268_v4 }
  0x9b   :  { %267 = vst [vmem:[#allocation2 + $0x11c] sm:$0xf] %v266_v3  ;;  %v270_v5 = vld [vmem:[%s11109_s7 + $0x130] sm:$0xf]  ;;  %v272_v6 = vld [vmem:[%s11109_s7 + $0x114] sm:$0xf] }
  0x9c   :  { %v274_v7 = vld [vmem:[%s11109_s7 + $0x134] sm:$0xf]  ;;  %271 = vst [vmem:[#allocation2 + $0x124] sm:$0xf] %v270_v5  ;;  %273 = vst [vmem:[#allocation2 + $0x128] sm:$0xf] %v272_v6 }
  0x9d   :  { %275 = vst [vmem:[#allocation2 + $0x12c] sm:$0xf] %v274_v7  ;;  %v276_v8 = vld [vmem:[%s11109_s7 + $0x118] sm:$0xf]  ;;  %v280_v10 = vld [vmem:[%s11109_s7 + $0x11c] sm:$0xf] }
  0x9e   :  { %v278_v9 = vld [vmem:[%s11109_s7 + $0x138] sm:$0xf]  ;;  %277 = vst [vmem:[#allocation2 + $0x130] sm:$0xf] %v276_v8  ;;  %281 = vst [vmem:[#allocation2 + $0x138] sm:$0xf] %v280_v10 }
  0x9f   :  { %279 = vst [vmem:[#allocation2 + $0x134] sm:$0xf] %v278_v9  ;;  %v282_v11 = vld [vmem:[%s11109_s7 + $0x13c] sm:$0xff]   ;;  %v288_v13 = vld [vmem:[%s11109_s7 + $0x144] sm:$0xf] }
  0xa0   :  { %v286_v12 = vld [vmem:[%s11109_s7 + $0x160] sm:$0xf]  ;;  %283 = vst [vmem:[#allocation2 + $0x13c] sm:$0xff] %v282_v11   ;;  %289 = vst [vmem:[#allocation2 + $0x148] sm:$0xf] %v288_v13 }
  0xa1   :  { %287 = vst [vmem:[#allocation2 + $0x144] sm:$0xf] %v286_v12  ;;  %v290_v14 = vld [vmem:[%s11109_s7 + $0x164] sm:$0xf]  ;;  %v292_v15 = vld [vmem:[%s11109_s7 + $0x148] sm:$0xf] }
  0xa2   :  { %v294_v16 = vld [vmem:[%s11109_s7 + $0x168] sm:$0xf]  ;;  %291 = vst [vmem:[#allocation2 + $0x14c] sm:$0xf] %v290_v14  ;;  %293 = vst [vmem:[#allocation2 + $0x150] sm:$0xf] %v292_v15 }
  0xa3   :  { %295 = vst [vmem:[#allocation2 + $0x154] sm:$0xf] %v294_v16  ;;  %v296_v17 = vld [vmem:[%s11109_s7 + $0x14c] sm:$0xf]  ;;  %v300_v19 = vld [vmem:[%s11109_s7 + $0x150] sm:$0xf] }
  0xa4   :  { %v298_v18 = vld [vmem:[%s11109_s7 + $0x16c] sm:$0xf]  ;;  %297 = vst [vmem:[#allocation2 + $0x158] sm:$0xf] %v296_v17  ;;  %301 = vst [vmem:[#allocation2 + $0x160] sm:$0xf] %v300_v19 }
  0xa5   :  { %299 = vst [vmem:[#allocation2 + $0x15c] sm:$0xf] %v298_v18  ;;  %v302_v20 = vld [vmem:[%s11109_s7 + $0x170] sm:$0xf]  ;;  %v304_v21 = vld [vmem:[%s11109_s7 + $0x154] sm:$0xf] }
  0xa6   :  { %v306_v22 = vld [vmem:[%s11109_s7 + $0x174] sm:$0xf]  ;;  %303 = vst [vmem:[#allocation2 + $0x164] sm:$0xf] %v302_v20  ;;  %305 = vst [vmem:[#allocation2 + $0x168] sm:$0xf] %v304_v21 }
  0xa7   :  { %307 = vst [vmem:[#allocation2 + $0x16c] sm:$0xf] %v306_v22  ;;  %v308_v23 = vld [vmem:[%s11109_s7 + $0x158] sm:$0xf]  ;;  %v312_v25 = vld [vmem:[%s11109_s7 + $0x15c] sm:$0xf] }
  0xa8   :  { %v310_v24 = vld [vmem:[%s11109_s7 + $0x178] sm:$0xf]  ;;  %309 = vst [vmem:[#allocation2 + $0x170] sm:$0xf] %v308_v23  ;;  %313 = vst [vmem:[#allocation2 + $0x178] sm:$0xf] %v312_v25 }
  0xa9   :  { %311 = vst [vmem:[#allocation2 + $0x174] sm:$0xf] %v310_v24  ;;  %v314_v26 = vld [vmem:[%s11109_s7 + $0x17c] sm:$0xff]   ;;  %v320_v28 = vld [vmem:[%s11109_s7 + $0x184] sm:$0xf] }
  0xaa   :  { %v318_v27 = vld [vmem:[%s11109_s7 + $0x1a0] sm:$0xf]  ;;  %315 = vst [vmem:[#allocation2 + $0x17c] sm:$0xff] %v314_v26   ;;  %321 = vst [vmem:[#allocation2 + $0x188] sm:$0xf] %v320_v28 }
  0xab   :  { %319 = vst [vmem:[#allocation2 + $0x184] sm:$0xf] %v318_v27  ;;  %v322_v29 = vld [vmem:[%s11109_s7 + $0x1a4] sm:$0xf]  ;;  %v324_v30 = vld [vmem:[%s11109_s7 + $0x188] sm:$0xf] }
  0xac   :  { %v326_v31 = vld [vmem:[%s11109_s7 + $0x1a8] sm:$0xf]  ;;  %323 = vst [vmem:[#allocation2 + $0x18c] sm:$0xf] %v322_v29  ;;  %325 = vst [vmem:[#allocation2 + $0x190] sm:$0xf] %v324_v30 }
  0xad   :  { %327 = vst [vmem:[#allocation2 + $0x194] sm:$0xf] %v326_v31  ;;  %v328_v32 = vld [vmem:[%s11109_s7 + $0x18c] sm:$0xf]  ;;  %v332_v34 = vld [vmem:[%s11109_s7 + $0x190] sm:$0xf] }
  0xae   :  { %v330_v33 = vld [vmem:[%s11109_s7 + $0x1ac] sm:$0xf]  ;;  %329 = vst [vmem:[#allocation2 + $0x198] sm:$0xf] %v328_v32  ;;  %333 = vst [vmem:[#allocation2 + $0x1a0] sm:$0xf] %v332_v34 }
  0xaf   :  { %331 = vst [vmem:[#allocation2 + $0x19c] sm:$0xf] %v330_v33  ;;  %v334_v35 = vld [vmem:[%s11109_s7 + $0x1b0] sm:$0xf]  ;;  %v336_v36 = vld [vmem:[%s11109_s7 + $0x194] sm:$0xf] }
  0xb0   :  { %v338_v37 = vld [vmem:[%s11109_s7 + $0x1b4] sm:$0xf]  ;;  %335 = vst [vmem:[#allocation2 + $0x1a4] sm:$0xf] %v334_v35  ;;  %337 = vst [vmem:[#allocation2 + $0x1a8] sm:$0xf] %v336_v36 }
  0xb1   :  { %339 = vst [vmem:[#allocation2 + $0x1ac] sm:$0xf] %v338_v37  ;;  %v340_v38 = vld [vmem:[%s11109_s7 + $0x198] sm:$0xf]  ;;  %v344_v40 = vld [vmem:[%s11109_s7 + $0x19c] sm:$0xf] }
  0xb2   :  { %v342_v39 = vld [vmem:[%s11109_s7 + $0x1b8] sm:$0xf]  ;;  %341 = vst [vmem:[#allocation2 + $0x1b0] sm:$0xf] %v340_v38  ;;  %345 = vst [vmem:[#allocation2 + $0x1b8] sm:$0xf] %v344_v40 }
  0xb3   :  { %343 = vst [vmem:[#allocation2 + $0x1b4] sm:$0xf] %v342_v39  ;;  %v346_v41 = vld [vmem:[%s11109_s7 + $0x1bc] sm:$0xff]   ;;  %v352_v43 = vld [vmem:[%s11109_s7 + $0x1c4] sm:$0xf] }
  0xb4   :  { %v350_v42 = vld [vmem:[%s11109_s7 + $0x1e0] sm:$0xf]  ;;  %347 = vst [vmem:[#allocation2 + $0x1bc] sm:$0xff] %v346_v41   ;;  %353 = vst [vmem:[#allocation2 + $0x1c8] sm:$0xf] %v352_v43 }
  0xb5   :  { %351 = vst [vmem:[#allocation2 + $0x1c4] sm:$0xf] %v350_v42  ;;  %v354_v44 = vld [vmem:[%s11109_s7 + $0x1e4] sm:$0xf]  ;;  %v356_v45 = vld [vmem:[%s11109_s7 + $0x1c8] sm:$0xf] }
  0xb6   :  { %v358_v46 = vld [vmem:[%s11109_s7 + $0x1e8] sm:$0xf]  ;;  %355 = vst [vmem:[#allocation2 + $0x1cc] sm:$0xf] %v354_v44  ;;  %357 = vst [vmem:[#allocation2 + $0x1d0] sm:$0xf] %v356_v45 }
  0xb7   :  { %359 = vst [vmem:[#allocation2 + $0x1d4] sm:$0xf] %v358_v46  ;;  %v360_v47 = vld [vmem:[%s11109_s7 + $0x1cc] sm:$0xf]  ;;  %v364_v49 = vld [vmem:[%s11109_s7 + $0x1d0] sm:$0xf] }
  0xb8   :  { %v362_v48 = vld [vmem:[%s11109_s7 + $0x1ec] sm:$0xf]  ;;  %361 = vst [vmem:[#allocation2 + $0x1d8] sm:$0xf] %v360_v47  ;;  %365 = vst [vmem:[#allocation2 + $0x1e0] sm:$0xf] %v364_v49 }
  0xb9   :  { %363 = vst [vmem:[#allocation2 + $0x1dc] sm:$0xf] %v362_v48  ;;  %v366_v50 = vld [vmem:[%s11109_s7 + $0x1f0] sm:$0xf]  ;;  %v368_v51 = vld [vmem:[%s11109_s7 + $0x1d4] sm:$0xf] }
  0xba   :  { %v370_v52 = vld [vmem:[%s11109_s7 + $0x1f4] sm:$0xf]  ;;  %367 = vst [vmem:[#allocation2 + $0x1e4] sm:$0xf] %v366_v50  ;;  %369 = vst [vmem:[#allocation2 + $0x1e8] sm:$0xf] %v368_v51 }
  0xbb   :  { %371 = vst [vmem:[#allocation2 + $0x1ec] sm:$0xf] %v370_v52  ;;  %v372_v53 = vld [vmem:[%s11109_s7 + $0x1d8] sm:$0xf]  ;;  %v376_v55 = vld [vmem:[%s11109_s7 + $0x1dc] sm:$0xf] }
  0xbc   :  { %v374_v54 = vld [vmem:[%s11109_s7 + $0x1f8] sm:$0xf]  ;;  %373 = vst [vmem:[#allocation2 + $0x1f0] sm:$0xf] %v372_v53  ;;  %377 = vst [vmem:[#allocation2 + $0x1f8] sm:$0xf] %v376_v55 }
  0xbd   :  { %375 = vst [vmem:[#allocation2 + $0x1f4] sm:$0xf] %v374_v54  ;;  %v378_v56 = vld [vmem:[%s11109_s7 + $0x1fc] sm:$0xff]   ;;  %v384_v58 = vld [vmem:[%s11109_s7 + $0x204] sm:$0xf] }
  0xbe   :  { %v382_v57 = vld [vmem:[%s11109_s7 + $0x220] sm:$0xf]  ;;  %379 = vst [vmem:[#allocation2 + $0x1fc] sm:$0xff] %v378_v56   ;;  %385 = vst [vmem:[#allocation2 + $0x208] sm:$0xf] %v384_v58 }
  0xbf   :  { %383 = vst [vmem:[#allocation2 + $0x204] sm:$0xf] %v382_v57  ;;  %v386_v59 = vld [vmem:[%s11109_s7 + $0x224] sm:$0xf]  ;;  %v388_v60 = vld [vmem:[%s11109_s7 + $0x208] sm:$0xf] }
  0xc0   :  { %v390_v61 = vld [vmem:[%s11109_s7 + $0x228] sm:$0xf]  ;;  %387 = vst [vmem:[#allocation2 + $0x20c] sm:$0xf] %v386_v59  ;;  %389 = vst [vmem:[#allocation2 + $0x210] sm:$0xf] %v388_v60 }
  0xc1   :  { %391 = vst [vmem:[#allocation2 + $0x214] sm:$0xf] %v390_v61  ;;  %v392_v62 = vld [vmem:[%s11109_s7 + $0x20c] sm:$0xf]  ;;  %v396_v0 = vld [vmem:[%s11109_s7 + $0x210] sm:$0xf] }
  0xc2   :  { %v394_v63 = vld [vmem:[%s11109_s7 + $0x22c] sm:$0xf]  ;;  %393 = vst [vmem:[#allocation2 + $0x218] sm:$0xf] %v392_v62  ;;  %397 = vst [vmem:[#allocation2 + $0x220] sm:$0xf] %v396_v0 }
  0xc3   :  { %395 = vst [vmem:[#allocation2 + $0x21c] sm:$0xf] %v394_v63  ;;  %v398_v1 = vld [vmem:[%s11109_s7 + $0x230] sm:$0xf]  ;;  %v400_v2 = vld [vmem:[%s11109_s7 + $0x214] sm:$0xf] }
  0xc4   :  { %v402_v3 = vld [vmem:[%s11109_s7 + $0x234] sm:$0xf]  ;;  %399 = vst [vmem:[#allocation2 + $0x224] sm:$0xf] %v398_v1  ;;  %401 = vst [vmem:[#allocation2 + $0x228] sm:$0xf] %v400_v2 }
  0xc5   :  { %403 = vst [vmem:[#allocation2 + $0x22c] sm:$0xf] %v402_v3  ;;  %v404_v4 = vld [vmem:[%s11109_s7 + $0x218] sm:$0xf]  ;;  %v408_v6 = vld [vmem:[%s11109_s7 + $0x21c] sm:$0xf] }
  0xc6   :  { %v406_v5 = vld [vmem:[%s11109_s7 + $0x238] sm:$0xf]  ;;  %405 = vst [vmem:[#allocation2 + $0x230] sm:$0xf] %v404_v4  ;;  %409 = vst [vmem:[#allocation2 + $0x238] sm:$0xf] %v408_v6 }
  0xc7   :  { %407 = vst [vmem:[#allocation2 + $0x234] sm:$0xf] %v406_v5  ;;  %v410_v7 = vld [vmem:[%s11109_s7 + $0x23c] sm:$0xff]   ;;  %v416_v9 = vld [vmem:[%s11109_s7 + $0x244] sm:$0xf] }
  0xc8   :  { %v414_v8 = vld [vmem:[%s11109_s7 + $0x260] sm:$0xf]  ;;  %411 = vst [vmem:[#allocation2 + $0x23c] sm:$0xff] %v410_v7   ;;  %417 = vst [vmem:[#allocation2 + $0x248] sm:$0xf] %v416_v9 }
  0xc9   :  { %415 = vst [vmem:[#allocation2 + $0x244] sm:$0xf] %v414_v8  ;;  %v418_v10 = vld [vmem:[%s11109_s7 + $0x264] sm:$0xf]  ;;  %v420_v11 = vld [vmem:[%s11109_s7 + $0x248] sm:$0xf] }
  0xca   :  { %v422_v12 = vld [vmem:[%s11109_s7 + $0x268] sm:$0xf]  ;;  %419 = vst [vmem:[#allocation2 + $0x24c] sm:$0xf] %v418_v10  ;;  %421 = vst [vmem:[#allocation2 + $0x250] sm:$0xf] %v420_v11 }
  0xcb   :  { %423 = vst [vmem:[#allocation2 + $0x254] sm:$0xf] %v422_v12  ;;  %v424_v13 = vld [vmem:[%s11109_s7 + $0x24c] sm:$0xf]  ;;  %v428_v15 = vld [vmem:[%s11109_s7 + $0x250] sm:$0xf] }
  0xcc   :  { %v426_v14 = vld [vmem:[%s11109_s7 + $0x26c] sm:$0xf]  ;;  %425 = vst [vmem:[#allocation2 + $0x258] sm:$0xf] %v424_v13  ;;  %429 = vst [vmem:[#allocation2 + $0x260] sm:$0xf] %v428_v15 }
  0xcd   :  { %427 = vst [vmem:[#allocation2 + $0x25c] sm:$0xf] %v426_v14  ;;  %v430_v16 = vld [vmem:[%s11109_s7 + $0x270] sm:$0xf]  ;;  %v432_v17 = vld [vmem:[%s11109_s7 + $0x254] sm:$0xf] }
  0xce   :  { %v434_v18 = vld [vmem:[%s11109_s7 + $0x274] sm:$0xf]  ;;  %431 = vst [vmem:[#allocation2 + $0x264] sm:$0xf] %v430_v16  ;;  %433 = vst [vmem:[#allocation2 + $0x268] sm:$0xf] %v432_v17 }
  0xcf   :  { %435 = vst [vmem:[#allocation2 + $0x26c] sm:$0xf] %v434_v18  ;;  %v436_v19 = vld [vmem:[%s11109_s7 + $0x258] sm:$0xf]  ;;  %v440_v21 = vld [vmem:[%s11109_s7 + $0x25c] sm:$0xf] }
  0xd0   :  { %v438_v20 = vld [vmem:[%s11109_s7 + $0x278] sm:$0xf]  ;;  %437 = vst [vmem:[#allocation2 + $0x270] sm:$0xf] %v436_v19  ;;  %441 = vst [vmem:[#allocation2 + $0x278] sm:$0xf] %v440_v21 }
  0xd1   :  { %439 = vst [vmem:[#allocation2 + $0x274] sm:$0xf] %v438_v20  ;;  %v442_v22 = vld [vmem:[%s11109_s7 + $0x27c] sm:$0xff]   ;;  %v448_v24 = vld [vmem:[%s11109_s7 + $0x284] sm:$0xf] }
  0xd2   :  { %v446_v23 = vld [vmem:[%s11109_s7 + $0x2a0] sm:$0xf]  ;;  %443 = vst [vmem:[#allocation2 + $0x27c] sm:$0xff] %v442_v22   ;;  %449 = vst [vmem:[#allocation2 + $0x288] sm:$0xf] %v448_v24 }
  0xd3   :  { %447 = vst [vmem:[#allocation2 + $0x284] sm:$0xf] %v446_v23  ;;  %v450_v25 = vld [vmem:[%s11109_s7 + $0x2a4] sm:$0xf]  ;;  %v452_v26 = vld [vmem:[%s11109_s7 + $0x288] sm:$0xf] }
  0xd4   :  { %v454_v27 = vld [vmem:[%s11109_s7 + $0x2a8] sm:$0xf]  ;;  %451 = vst [vmem:[#allocation2 + $0x28c] sm:$0xf] %v450_v25  ;;  %453 = vst [vmem:[#allocation2 + $0x290] sm:$0xf] %v452_v26 }
  0xd5   :  { %455 = vst [vmem:[#allocation2 + $0x294] sm:$0xf] %v454_v27  ;;  %v456_v28 = vld [vmem:[%s11109_s7 + $0x28c] sm:$0xf]  ;;  %v460_v30 = vld [vmem:[%s11109_s7 + $0x290] sm:$0xf] }
  0xd6   :  { %v458_v29 = vld [vmem:[%s11109_s7 + $0x2ac] sm:$0xf]  ;;  %457 = vst [vmem:[#allocation2 + $0x298] sm:$0xf] %v456_v28  ;;  %461 = vst [vmem:[#allocation2 + $0x2a0] sm:$0xf] %v460_v30 }
  0xd7   :  { %459 = vst [vmem:[#allocation2 + $0x29c] sm:$0xf] %v458_v29  ;;  %v462_v31 = vld [vmem:[%s11109_s7 + $0x2b0] sm:$0xf]  ;;  %v464_v32 = vld [vmem:[%s11109_s7 + $0x294] sm:$0xf] }
  0xd8   :  { %v466_v33 = vld [vmem:[%s11109_s7 + $0x2b4] sm:$0xf]  ;;  %463 = vst [vmem:[#allocation2 + $0x2a4] sm:$0xf] %v462_v31  ;;  %465 = vst [vmem:[#allocation2 + $0x2a8] sm:$0xf] %v464_v32 }
  0xd9   :  { %467 = vst [vmem:[#allocation2 + $0x2ac] sm:$0xf] %v466_v33  ;;  %v468_v34 = vld [vmem:[%s11109_s7 + $0x298] sm:$0xf]  ;;  %v472_v36 = vld [vmem:[%s11109_s7 + $0x29c] sm:$0xf] }
  0xda   :  { %v470_v35 = vld [vmem:[%s11109_s7 + $0x2b8] sm:$0xf]  ;;  %469 = vst [vmem:[#allocation2 + $0x2b0] sm:$0xf] %v468_v34  ;;  %473 = vst [vmem:[#allocation2 + $0x2b8] sm:$0xf] %v472_v36 }
  0xdb   :  { %471 = vst [vmem:[#allocation2 + $0x2b4] sm:$0xf] %v470_v35  ;;  %v474_v37 = vld [vmem:[%s11109_s7 + $0x2bc] sm:$0xff]   ;;  %v480_v39 = vld [vmem:[%s11109_s7 + $0x2c4] sm:$0xf] }
  0xdc   :  { %v478_v38 = vld [vmem:[%s11109_s7 + $0x2e0] sm:$0xf]  ;;  %475 = vst [vmem:[#allocation2 + $0x2bc] sm:$0xff] %v474_v37   ;;  %481 = vst [vmem:[#allocation2 + $0x2c8] sm:$0xf] %v480_v39 }
  0xdd   :  { %479 = vst [vmem:[#allocation2 + $0x2c4] sm:$0xf] %v478_v38  ;;  %v482_v40 = vld [vmem:[%s11109_s7 + $0x2e4] sm:$0xf]  ;;  %v484_v41 = vld [vmem:[%s11109_s7 + $0x2c8] sm:$0xf] }
  0xde   :  { %v486_v42 = vld [vmem:[%s11109_s7 + $0x2e8] sm:$0xf]  ;;  %483 = vst [vmem:[#allocation2 + $0x2cc] sm:$0xf] %v482_v40  ;;  %485 = vst [vmem:[#allocation2 + $0x2d0] sm:$0xf] %v484_v41 }
  0xdf   :  { %487 = vst [vmem:[#allocation2 + $0x2d4] sm:$0xf] %v486_v42  ;;  %v488_v43 = vld [vmem:[%s11109_s7 + $0x2cc] sm:$0xf]  ;;  %v492_v45 = vld [vmem:[%s11109_s7 + $0x2d0] sm:$0xf] }
  0xe0   :  { %v490_v44 = vld [vmem:[%s11109_s7 + $0x2ec] sm:$0xf]  ;;  %489 = vst [vmem:[#allocation2 + $0x2d8] sm:$0xf] %v488_v43  ;;  %493 = vst [vmem:[#allocation2 + $0x2e0] sm:$0xf] %v492_v45 }
  0xe1   :  { %491 = vst [vmem:[#allocation2 + $0x2dc] sm:$0xf] %v490_v44  ;;  %v494_v46 = vld [vmem:[%s11109_s7 + $0x2f0] sm:$0xf]  ;;  %v496_v47 = vld [vmem:[%s11109_s7 + $0x2d4] sm:$0xf] }
  0xe2   :  { %v498_v48 = vld [vmem:[%s11109_s7 + $0x2f4] sm:$0xf]  ;;  %495 = vst [vmem:[#allocation2 + $0x2e4] sm:$0xf] %v494_v46  ;;  %497 = vst [vmem:[#allocation2 + $0x2e8] sm:$0xf] %v496_v47 }
  0xe3   :  { %499 = vst [vmem:[#allocation2 + $0x2ec] sm:$0xf] %v498_v48  ;;  %v500_v49 = vld [vmem:[%s11109_s7 + $0x2d8] sm:$0xf]  ;;  %v504_v51 = vld [vmem:[%s11109_s7 + $0x2dc] sm:$0xf] }
  0xe4   :  { %v502_v50 = vld [vmem:[%s11109_s7 + $0x2f8] sm:$0xf]  ;;  %501 = vst [vmem:[#allocation2 + $0x2f0] sm:$0xf] %v500_v49  ;;  %505 = vst [vmem:[#allocation2 + $0x2f8] sm:$0xf] %v504_v51 }
  0xe5   :  { %503 = vst [vmem:[#allocation2 + $0x2f4] sm:$0xf] %v502_v50  ;;  %v506_v52 = vld [vmem:[%s11109_s7 + $0x2fc] sm:$0xff]   ;;  %v512_v54 = vld [vmem:[%s11109_s7 + $0x304] sm:$0xf] }
  0xe6   :  { %v510_v53 = vld [vmem:[%s11109_s7 + $0x320] sm:$0xf]  ;;  %507 = vst [vmem:[#allocation2 + $0x2fc] sm:$0xff] %v506_v52   ;;  %513 = vst [vmem:[#allocation2 + $0x308] sm:$0xf] %v512_v54 }
  0xe7   :  { %511 = vst [vmem:[#allocation2 + $0x304] sm:$0xf] %v510_v53  ;;  %v514_v55 = vld [vmem:[%s11109_s7 + $0x324] sm:$0xf]  ;;  %v516_v56 = vld [vmem:[%s11109_s7 + $0x308] sm:$0xf] }
  0xe8   :  { %v518_v57 = vld [vmem:[%s11109_s7 + $0x328] sm:$0xf]  ;;  %515 = vst [vmem:[#allocation2 + $0x30c] sm:$0xf] %v514_v55  ;;  %517 = vst [vmem:[#allocation2 + $0x310] sm:$0xf] %v516_v56 }
  0xe9   :  { %519 = vst [vmem:[#allocation2 + $0x314] sm:$0xf] %v518_v57  ;;  %v520_v58 = vld [vmem:[%s11109_s7 + $0x30c] sm:$0xf]  ;;  %v524_v60 = vld [vmem:[%s11109_s7 + $0x310] sm:$0xf] }
  0xea   :  { %v522_v59 = vld [vmem:[%s11109_s7 + $0x32c] sm:$0xf]  ;;  %521 = vst [vmem:[#allocation2 + $0x318] sm:$0xf] %v520_v58  ;;  %525 = vst [vmem:[#allocation2 + $0x320] sm:$0xf] %v524_v60 }
  0xeb   :  { %523 = vst [vmem:[#allocation2 + $0x31c] sm:$0xf] %v522_v59  ;;  %v526_v61 = vld [vmem:[%s11109_s7 + $0x330] sm:$0xf]  ;;  %v528_v62 = vld [vmem:[%s11109_s7 + $0x314] sm:$0xf] }
  0xec   :  { %v530_v63 = vld [vmem:[%s11109_s7 + $0x334] sm:$0xf]  ;;  %527 = vst [vmem:[#allocation2 + $0x324] sm:$0xf] %v526_v61  ;;  %529 = vst [vmem:[#allocation2 + $0x328] sm:$0xf] %v528_v62 }
  0xed   :  { %531 = vst [vmem:[#allocation2 + $0x32c] sm:$0xf] %v530_v63  ;;  %v532_v0 = vld [vmem:[%s11109_s7 + $0x318] sm:$0xf]  ;;  %v536_v2 = vld [vmem:[%s11109_s7 + $0x31c] sm:$0xf] }
  0xee   :  { %v534_v1 = vld [vmem:[%s11109_s7 + $0x338] sm:$0xf]  ;;  %533 = vst [vmem:[#allocation2 + $0x330] sm:$0xf] %v532_v0  ;;  %537 = vst [vmem:[#allocation2 + $0x338] sm:$0xf] %v536_v2 }
  0xef   :  { %535 = vst [vmem:[#allocation2 + $0x334] sm:$0xf] %v534_v1  ;;  %v538_v3 = vld [vmem:[%s11109_s7 + $0x33c] sm:$0xff]   ;;  %v544_v5 = vld [vmem:[%s11109_s7 + $0x344] sm:$0xf] }
  0xf0   :  { %v542_v4 = vld [vmem:[%s11109_s7 + $0x360] sm:$0xf]  ;;  %539 = vst [vmem:[#allocation2 + $0x33c] sm:$0xff] %v538_v3   ;;  %545 = vst [vmem:[#allocation2 + $0x348] sm:$0xf] %v544_v5 }
  0xf1   :  { %543 = vst [vmem:[#allocation2 + $0x344] sm:$0xf] %v542_v4  ;;  %v546_v6 = vld [vmem:[%s11109_s7 + $0x364] sm:$0xf]  ;;  %v548_v7 = vld [vmem:[%s11109_s7 + $0x348] sm:$0xf] }
  0xf2   :  { %v550_v8 = vld [vmem:[%s11109_s7 + $0x368] sm:$0xf]  ;;  %547 = vst [vmem:[#allocation2 + $0x34c] sm:$0xf] %v546_v6  ;;  %549 = vst [vmem:[#allocation2 + $0x350] sm:$0xf] %v548_v7 }
  0xf3   :  { %551 = vst [vmem:[#allocation2 + $0x354] sm:$0xf] %v550_v8  ;;  %v552_v9 = vld [vmem:[%s11109_s7 + $0x34c] sm:$0xf]  ;;  %v556_v11 = vld [vmem:[%s11109_s7 + $0x350] sm:$0xf] }
  0xf4   :  { %v554_v10 = vld [vmem:[%s11109_s7 + $0x36c] sm:$0xf]  ;;  %553 = vst [vmem:[#allocation2 + $0x358] sm:$0xf] %v552_v9  ;;  %557 = vst [vmem:[#allocation2 + $0x360] sm:$0xf] %v556_v11 }
  0xf5   :  { %555 = vst [vmem:[#allocation2 + $0x35c] sm:$0xf] %v554_v10  ;;  %v558_v12 = vld [vmem:[%s11109_s7 + $0x370] sm:$0xf]  ;;  %v560_v13 = vld [vmem:[%s11109_s7 + $0x354] sm:$0xf] }
  0xf6   :  { %v562_v14 = vld [vmem:[%s11109_s7 + $0x374] sm:$0xf]  ;;  %559 = vst [vmem:[#allocation2 + $0x364] sm:$0xf] %v558_v12  ;;  %561 = vst [vmem:[#allocation2 + $0x368] sm:$0xf] %v560_v13 }
  0xf7   :  { %563 = vst [vmem:[#allocation2 + $0x36c] sm:$0xf] %v562_v14  ;;  %v564_v15 = vld [vmem:[%s11109_s7 + $0x358] sm:$0xf]  ;;  %v568_v17 = vld [vmem:[%s11109_s7 + $0x35c] sm:$0xf] }
  0xf8   :  { %v566_v16 = vld [vmem:[%s11109_s7 + $0x378] sm:$0xf]  ;;  %565 = vst [vmem:[#allocation2 + $0x370] sm:$0xf] %v564_v15  ;;  %569 = vst [vmem:[#allocation2 + $0x378] sm:$0xf] %v568_v17 }
  0xf9   :  { %567 = vst [vmem:[#allocation2 + $0x374] sm:$0xf] %v566_v16  ;;  %v570_v18 = vld [vmem:[%s11109_s7 + $0x37c] sm:$0xff]   ;;  %v576_v20 = vld [vmem:[%s11109_s7 + $0x384] sm:$0xf] }
  0xfa   :  { %v574_v19 = vld [vmem:[%s11109_s7 + $0x3a0] sm:$0xf]  ;;  %571 = vst [vmem:[#allocation2 + $0x37c] sm:$0xff] %v570_v18   ;;  %577 = vst [vmem:[#allocation2 + $0x388] sm:$0xf] %v576_v20 }
  0xfb   :  { %575 = vst [vmem:[#allocation2 + $0x384] sm:$0xf] %v574_v19  ;;  %v578_v21 = vld [vmem:[%s11109_s7 + $0x3a4] sm:$0xf]  ;;  %v580_v22 = vld [vmem:[%s11109_s7 + $0x388] sm:$0xf] }
  0xfc   :  { %v582_v23 = vld [vmem:[%s11109_s7 + $0x3a8] sm:$0xf]  ;;  %579 = vst [vmem:[#allocation2 + $0x38c] sm:$0xf] %v578_v21  ;;  %581 = vst [vmem:[#allocation2 + $0x390] sm:$0xf] %v580_v22 }
  0xfd   :  { %583 = vst [vmem:[#allocation2 + $0x394] sm:$0xf] %v582_v23  ;;  %v584_v24 = vld [vmem:[%s11109_s7 + $0x38c] sm:$0xf]  ;;  %v588_v26 = vld [vmem:[%s11109_s7 + $0x390] sm:$0xf] }
  0xfe   :  { %v586_v25 = vld [vmem:[%s11109_s7 + $0x3ac] sm:$0xf]  ;;  %585 = vst [vmem:[#allocation2 + $0x398] sm:$0xf] %v584_v24  ;;  %589 = vst [vmem:[#allocation2 + $0x3a0] sm:$0xf] %v588_v26 }
  0xff   :  { %587 = vst [vmem:[#allocation2 + $0x39c] sm:$0xf] %v586_v25  ;;  %v590_v27 = vld [vmem:[%s11109_s7 + $0x3b0] sm:$0xf]  ;;  %v592_v28 = vld [vmem:[%s11109_s7 + $0x394] sm:$0xf] }
 0x100   :  { %v594_v29 = vld [vmem:[%s11109_s7 + $0x3b4] sm:$0xf]  ;;  %591 = vst [vmem:[#allocation2 + $0x3a4] sm:$0xf] %v590_v27  ;;  %593 = vst [vmem:[#allocation2 + $0x3a8] sm:$0xf] %v592_v28 }
 0x101   :  { %595 = vst [vmem:[#allocation2 + $0x3ac] sm:$0xf] %v594_v29  ;;  %v596_v30 = vld [vmem:[%s11109_s7 + $0x398] sm:$0xf]  ;;  %v600_v32 = vld [vmem:[%s11109_s7 + $0x39c] sm:$0xf] }
 0x102   :  { %v598_v31 = vld [vmem:[%s11109_s7 + $0x3b8] sm:$0xf]  ;;  %597 = vst [vmem:[#allocation2 + $0x3b0] sm:$0xf] %v596_v30  ;;  %601 = vst [vmem:[#allocation2 + $0x3b8] sm:$0xf] %v600_v32 }
 0x103   :  { %599 = vst [vmem:[#allocation2 + $0x3b4] sm:$0xf] %v598_v31  ;;  %v602_v33 = vld [vmem:[%s11109_s7 + $0x3bc] sm:$0xff]   ;;  %v608_v35 = vld [vmem:[%s11109_s7 + $0x3c4] sm:$0xf] }
 0x104   :  { %v606_v34 = vld [vmem:[%s11109_s7 + $0x3e0] sm:$0xf]  ;;  %603 = vst [vmem:[#allocation2 + $0x3bc] sm:$0xff] %v602_v33   ;;  %609 = vst [vmem:[#allocation2 + $0x3c8] sm:$0xf] %v608_v35 }
 0x105   :  { %607 = vst [vmem:[#allocation2 + $0x3c4] sm:$0xf] %v606_v34  ;;  %v610_v36 = vld [vmem:[%s11109_s7 + $0x3e4] sm:$0xf]  ;;  %v612_v37 = vld [vmem:[%s11109_s7 + $0x3c8] sm:$0xf] }
 0x106   :  { %v614_v38 = vld [vmem:[%s11109_s7 + $0x3e8] sm:$0xf]  ;;  %611 = vst [vmem:[#allocation2 + $0x3cc] sm:$0xf] %v610_v36  ;;  %613 = vst [vmem:[#allocation2 + $0x3d0] sm:$0xf] %v612_v37 }
 0x107   :  { %615 = vst [vmem:[#allocation2 + $0x3d4] sm:$0xf] %v614_v38  ;;  %v616_v39 = vld [vmem:[%s11109_s7 + $0x3cc] sm:$0xf]  ;;  %v620_v41 = vld [vmem:[%s11109_s7 + $0x3d0] sm:$0xf] }
 0x108   :  { %v618_v40 = vld [vmem:[%s11109_s7 + $0x3ec] sm:$0xf]  ;;  %617 = vst [vmem:[#allocation2 + $0x3d8] sm:$0xf] %v616_v39  ;;  %621 = vst [vmem:[#allocation2 + $0x3e0] sm:$0xf] %v620_v41 }
 0x109   :  { %619 = vst [vmem:[#allocation2 + $0x3dc] sm:$0xf] %v618_v40  ;;  %v622_v42 = vld [vmem:[%s11109_s7 + $0x3f0] sm:$0xf]  ;;  %v624_v43 = vld [vmem:[%s11109_s7 + $0x3d4] sm:$0xf] }
 0x10a   :  { %v626_v44 = vld [vmem:[%s11109_s7 + $0x3f4] sm:$0xf]  ;;  %623 = vst [vmem:[#allocation2 + $0x3e4] sm:$0xf] %v622_v42  ;;  %625 = vst [vmem:[#allocation2 + $0x3e8] sm:$0xf] %v624_v43 }
 0x10b   :  { %627 = vst [vmem:[#allocation2 + $0x3ec] sm:$0xf] %v626_v44  ;;  %v628_v45 = vld [vmem:[%s11109_s7 + $0x3d8] sm:$0xf]  ;;  %v632_v47 = vld [vmem:[%s11109_s7 + $0x3dc] sm:$0xf] }
 0x10c   :  { %v630_v46 = vld [vmem:[%s11109_s7 + $0x3f8] sm:$0xf]  ;;  %629 = vst [vmem:[#allocation2 + $0x3f0] sm:$0xf] %v628_v45  ;;  %633 = vst [vmem:[#allocation2 + $0x3f8] sm:$0xf] %v632_v47 }
 0x10d   :  { %631 = vst [vmem:[#allocation2 + $0x3f4] sm:$0xf] %v630_v46  ;;  %v634_v48 = vld [vmem:[%s11109_s7 + $0x3fc] sm:$0xff]   ;;  %v640_v50 = vld [vmem:[%s11109_s7 + $0x404] sm:$0xf] }
 0x10e   :  { %v638_v49 = vld [vmem:[%s11109_s7 + $0x420] sm:$0xf]  ;;  %635 = vst [vmem:[#allocation2 + $0x3fc] sm:$0xff] %v634_v48   ;;  %641 = vst [vmem:[#allocation2 + $0x408] sm:$0xf] %v640_v50 }
 0x10f   :  { %639 = vst [vmem:[#allocation2 + $0x404] sm:$0xf] %v638_v49  ;;  %v642_v51 = vld [vmem:[%s11109_s7 + $0x424] sm:$0xf]  ;;  %v644_v52 = vld [vmem:[%s11109_s7 + $0x408] sm:$0xf] }
 0x110   :  { %v646_v53 = vld [vmem:[%s11109_s7 + $0x428] sm:$0xf]  ;;  %643 = vst [vmem:[#allocation2 + $0x40c] sm:$0xf] %v642_v51  ;;  %645 = vst [vmem:[#allocation2 + $0x410] sm:$0xf] %v644_v52 }
 0x111   :  { %647 = vst [vmem:[#allocation2 + $0x414] sm:$0xf] %v646_v53  ;;  %v648_v54 = vld [vmem:[%s11109_s7 + $0x40c] sm:$0xf]  ;;  %v652_v56 = vld [vmem:[%s11109_s7 + $0x410] sm:$0xf] }
 0x112   :  { %v650_v55 = vld [vmem:[%s11109_s7 + $0x42c] sm:$0xf]  ;;  %649 = vst [vmem:[#allocation2 + $0x418] sm:$0xf] %v648_v54  ;;  %653 = vst [vmem:[#allocation2 + $0x420] sm:$0xf] %v652_v56 }
 0x113   :  { %651 = vst [vmem:[#allocation2 + $0x41c] sm:$0xf] %v650_v55  ;;  %v654_v57 = vld [vmem:[%s11109_s7 + $0x430] sm:$0xf]  ;;  %v656_v58 = vld [vmem:[%s11109_s7 + $0x414] sm:$0xf] }
 0x114   :  { %v658_v59 = vld [vmem:[%s11109_s7 + $0x434] sm:$0xf]  ;;  %655 = vst [vmem:[#allocation2 + $0x424] sm:$0xf] %v654_v57  ;;  %657 = vst [vmem:[#allocation2 + $0x428] sm:$0xf] %v656_v58 }
 0x115   :  { %659 = vst [vmem:[#allocation2 + $0x42c] sm:$0xf] %v658_v59  ;;  %v660_v60 = vld [vmem:[%s11109_s7 + $0x418] sm:$0xf]  ;;  %v664_v62 = vld [vmem:[%s11109_s7 + $0x41c] sm:$0xf] }
 0x116   :  { %v662_v61 = vld [vmem:[%s11109_s7 + $0x438] sm:$0xf]  ;;  %661 = vst [vmem:[#allocation2 + $0x430] sm:$0xf] %v660_v60  ;;  %665 = vst [vmem:[#allocation2 + $0x438] sm:$0xf] %v664_v62 }
 0x117   :  { %663 = vst [vmem:[#allocation2 + $0x434] sm:$0xf] %v662_v61  ;;  %v666_v63 = vld [vmem:[%s11109_s7 + $0x43c] sm:$0xff]   ;;  %v672_v1 = vld [vmem:[%s11109_s7 + $0x444] sm:$0xf] }
 0x118   :  { %v670_v0 = vld [vmem:[%s11109_s7 + $0x460] sm:$0xf]  ;;  %667 = vst [vmem:[#allocation2 + $0x43c] sm:$0xff] %v666_v63   ;;  %673 = vst [vmem:[#allocation2 + $0x448] sm:$0xf] %v672_v1 }
 0x119   :  { %671 = vst [vmem:[#allocation2 + $0x444] sm:$0xf] %v670_v0  ;;  %v674_v2 = vld [vmem:[%s11109_s7 + $0x464] sm:$0xf]  ;;  %v676_v3 = vld [vmem:[%s11109_s7 + $0x448] sm:$0xf] }
 0x11a   :  { %v678_v4 = vld [vmem:[%s11109_s7 + $0x468] sm:$0xf]  ;;  %675 = vst [vmem:[#allocation2 + $0x44c] sm:$0xf] %v674_v2  ;;  %677 = vst [vmem:[#allocation2 + $0x450] sm:$0xf] %v676_v3 }
 0x11b   :  { %679 = vst [vmem:[#allocation2 + $0x454] sm:$0xf] %v678_v4  ;;  %v680_v5 = vld [vmem:[%s11109_s7 + $0x44c] sm:$0xf]  ;;  %v684_v7 = vld [vmem:[%s11109_s7 + $0x450] sm:$0xf] }
 0x11c   :  { %v682_v6 = vld [vmem:[%s11109_s7 + $0x46c] sm:$0xf]  ;;  %681 = vst [vmem:[#allocation2 + $0x458] sm:$0xf] %v680_v5  ;;  %685 = vst [vmem:[#allocation2 + $0x460] sm:$0xf] %v684_v7 }
 0x11d   :  { %683 = vst [vmem:[#allocation2 + $0x45c] sm:$0xf] %v682_v6  ;;  %v686_v8 = vld [vmem:[%s11109_s7 + $0x470] sm:$0xf]  ;;  %v688_v9 = vld [vmem:[%s11109_s7 + $0x454] sm:$0xf] }
 0x11e   :  { %v690_v10 = vld [vmem:[%s11109_s7 + $0x474] sm:$0xf]  ;;  %687 = vst [vmem:[#allocation2 + $0x464] sm:$0xf] %v686_v8  ;;  %689 = vst [vmem:[#allocation2 + $0x468] sm:$0xf] %v688_v9 }
 0x11f   :  { %691 = vst [vmem:[#allocation2 + $0x46c] sm:$0xf] %v690_v10  ;;  %v692_v11 = vld [vmem:[%s11109_s7 + $0x458] sm:$0xf]  ;;  %v696_v13 = vld [vmem:[%s11109_s7 + $0x45c] sm:$0xf] }
 0x120   :  { %v694_v12 = vld [vmem:[%s11109_s7 + $0x478] sm:$0xf]  ;;  %693 = vst [vmem:[#allocation2 + $0x470] sm:$0xf] %v692_v11  ;;  %697 = vst [vmem:[#allocation2 + $0x478] sm:$0xf] %v696_v13 }
 0x121   :  { %695 = vst [vmem:[#allocation2 + $0x474] sm:$0xf] %v694_v12  ;;  %v698_v14 = vld [vmem:[%s11109_s7 + $0x47c] sm:$0xff]   ;;  %v704_v16 = vld [vmem:[%s11109_s7 + $0x484] sm:$0xf] }
 0x122   :  { %v702_v15 = vld [vmem:[%s11109_s7 + $0x4a0] sm:$0xf]  ;;  %699 = vst [vmem:[#allocation2 + $0x47c] sm:$0xff] %v698_v14   ;;  %705 = vst [vmem:[#allocation2 + $0x488] sm:$0xf] %v704_v16 }
 0x123   :  { %703 = vst [vmem:[#allocation2 + $0x484] sm:$0xf] %v702_v15  ;;  %v706_v17 = vld [vmem:[%s11109_s7 + $0x4a4] sm:$0xf]  ;;  %v708_v18 = vld [vmem:[%s11109_s7 + $0x488] sm:$0xf] }
 0x124   :  { %v710_v19 = vld [vmem:[%s11109_s7 + $0x4a8] sm:$0xf]  ;;  %707 = vst [vmem:[#allocation2 + $0x48c] sm:$0xf] %v706_v17  ;;  %709 = vst [vmem:[#allocation2 + $0x490] sm:$0xf] %v708_v18 }
 0x125   :  { %711 = vst [vmem:[#allocation2 + $0x494] sm:$0xf] %v710_v19  ;;  %v712_v20 = vld [vmem:[%s11109_s7 + $0x48c] sm:$0xf]  ;;  %v716_v22 = vld [vmem:[%s11109_s7 + $0x490] sm:$0xf] }
 0x126   :  { %v714_v21 = vld [vmem:[%s11109_s7 + $0x4ac] sm:$0xf]  ;;  %713 = vst [vmem:[#allocation2 + $0x498] sm:$0xf] %v712_v20  ;;  %717 = vst [vmem:[#allocation2 + $0x4a0] sm:$0xf] %v716_v22 }
 0x127   :  { %715 = vst [vmem:[#allocation2 + $0x49c] sm:$0xf] %v714_v21  ;;  %v718_v23 = vld [vmem:[%s11109_s7 + $0x4b0] sm:$0xf]  ;;  %v720_v24 = vld [vmem:[%s11109_s7 + $0x494] sm:$0xf] }
 0x128   :  { %v722_v25 = vld [vmem:[%s11109_s7 + $0x4b4] sm:$0xf]  ;;  %719 = vst [vmem:[#allocation2 + $0x4a4] sm:$0xf] %v718_v23  ;;  %721 = vst [vmem:[#allocation2 + $0x4a8] sm:$0xf] %v720_v24 }
 0x129   :  { %723 = vst [vmem:[#allocation2 + $0x4ac] sm:$0xf] %v722_v25  ;;  %v724_v26 = vld [vmem:[%s11109_s7 + $0x498] sm:$0xf]  ;;  %v728_v28 = vld [vmem:[%s11109_s7 + $0x49c] sm:$0xf] }
 0x12a   :  { %v726_v27 = vld [vmem:[%s11109_s7 + $0x4b8] sm:$0xf]  ;;  %725 = vst [vmem:[#allocation2 + $0x4b0] sm:$0xf] %v724_v26  ;;  %729 = vst [vmem:[#allocation2 + $0x4b8] sm:$0xf] %v728_v28 }
 0x12b   :  { %727 = vst [vmem:[#allocation2 + $0x4b4] sm:$0xf] %v726_v27  ;;  %v730_v29 = vld [vmem:[%s11109_s7 + $0x4bc] sm:$0xff]   ;;  %v736_v31 = vld [vmem:[%s11109_s7 + $0x4c4] sm:$0xf] }
 0x12c   :  { %v734_v30 = vld [vmem:[%s11109_s7 + $0x4e0] sm:$0xf]  ;;  %731 = vst [vmem:[#allocation2 + $0x4bc] sm:$0xff] %v730_v29   ;;  %737 = vst [vmem:[#allocation2 + $0x4c8] sm:$0xf] %v736_v31 }
 0x12d   :  { %735 = vst [vmem:[#allocation2 + $0x4c4] sm:$0xf] %v734_v30  ;;  %v738_v32 = vld [vmem:[%s11109_s7 + $0x4e4] sm:$0xf]  ;;  %v740_v33 = vld [vmem:[%s11109_s7 + $0x4c8] sm:$0xf] }
 0x12e   :  { %v742_v34 = vld [vmem:[%s11109_s7 + $0x4e8] sm:$0xf]  ;;  %739 = vst [vmem:[#allocation2 + $0x4cc] sm:$0xf] %v738_v32  ;;  %741 = vst [vmem:[#allocation2 + $0x4d0] sm:$0xf] %v740_v33 }
 0x12f   :  { %743 = vst [vmem:[#allocation2 + $0x4d4] sm:$0xf] %v742_v34  ;;  %v744_v35 = vld [vmem:[%s11109_s7 + $0x4cc] sm:$0xf]  ;;  %v748_v37 = vld [vmem:[%s11109_s7 + $0x4d0] sm:$0xf] }
 0x130   :  { %v746_v36 = vld [vmem:[%s11109_s7 + $0x4ec] sm:$0xf]  ;;  %745 = vst [vmem:[#allocation2 + $0x4d8] sm:$0xf] %v744_v35  ;;  %749 = vst [vmem:[#allocation2 + $0x4e0] sm:$0xf] %v748_v37 }
 0x131   :  { %747 = vst [vmem:[#allocation2 + $0x4dc] sm:$0xf] %v746_v36  ;;  %v750_v38 = vld [vmem:[%s11109_s7 + $0x4f0] sm:$0xf]  ;;  %v752_v39 = vld [vmem:[%s11109_s7 + $0x4d4] sm:$0xf] }
 0x132   :  { %v754_v40 = vld [vmem:[%s11109_s7 + $0x4f4] sm:$0xf]  ;;  %751 = vst [vmem:[#allocation2 + $0x4e4] sm:$0xf] %v750_v38  ;;  %753 = vst [vmem:[#allocation2 + $0x4e8] sm:$0xf] %v752_v39 }
 0x133   :  { %755 = vst [vmem:[#allocation2 + $0x4ec] sm:$0xf] %v754_v40  ;;  %v756_v41 = vld [vmem:[%s11109_s7 + $0x4d8] sm:$0xf]  ;;  %v760_v43 = vld [vmem:[%s11109_s7 + $0x4dc] sm:$0xf] }
 0x134   :  { %v758_v42 = vld [vmem:[%s11109_s7 + $0x4f8] sm:$0xf]  ;;  %757 = vst [vmem:[#allocation2 + $0x4f0] sm:$0xf] %v756_v41  ;;  %761 = vst [vmem:[#allocation2 + $0x4f8] sm:$0xf] %v760_v43 }
 0x135   :  { %759 = vst [vmem:[#allocation2 + $0x4f4] sm:$0xf] %v758_v42  ;;  %v762_v44 = vld [vmem:[%s11109_s7 + $0x4fc] sm:$0xff]   ;;  %v768_v46 = vld [vmem:[%s11109_s7 + $0x504] sm:$0xf] }
 0x136   :  { %v766_v45 = vld [vmem:[%s11109_s7 + $0x520] sm:$0xf]  ;;  %763 = vst [vmem:[#allocation2 + $0x4fc] sm:$0xff] %v762_v44   ;;  %769 = vst [vmem:[#allocation2 + $0x508] sm:$0xf] %v768_v46 }
 0x137   :  { %767 = vst [vmem:[#allocation2 + $0x504] sm:$0xf] %v766_v45  ;;  %v770_v47 = vld [vmem:[%s11109_s7 + $0x524] sm:$0xf]  ;;  %v772_v48 = vld [vmem:[%s11109_s7 + $0x508] sm:$0xf] }
 0x138   :  { %v774_v49 = vld [vmem:[%s11109_s7 + $0x528] sm:$0xf]  ;;  %771 = vst [vmem:[#allocation2 + $0x50c] sm:$0xf] %v770_v47  ;;  %773 = vst [vmem:[#allocation2 + $0x510] sm:$0xf] %v772_v48 }
 0x139   :  { %775 = vst [vmem:[#allocation2 + $0x514] sm:$0xf] %v774_v49  ;;  %v776_v50 = vld [vmem:[%s11109_s7 + $0x50c] sm:$0xf]  ;;  %v780_v52 = vld [vmem:[%s11109_s7 + $0x510] sm:$0xf] }
 0x13a   :  { %v778_v51 = vld [vmem:[%s11109_s7 + $0x52c] sm:$0xf]  ;;  %777 = vst [vmem:[#allocation2 + $0x518] sm:$0xf] %v776_v50  ;;  %781 = vst [vmem:[#allocation2 + $0x520] sm:$0xf] %v780_v52 }
 0x13b   :  { %779 = vst [vmem:[#allocation2 + $0x51c] sm:$0xf] %v778_v51  ;;  %v782_v53 = vld [vmem:[%s11109_s7 + $0x530] sm:$0xf]  ;;  %v784_v54 = vld [vmem:[%s11109_s7 + $0x514] sm:$0xf] }
 0x13c   :  { %v786_v55 = vld [vmem:[%s11109_s7 + $0x534] sm:$0xf]  ;;  %783 = vst [vmem:[#allocation2 + $0x524] sm:$0xf] %v782_v53  ;;  %785 = vst [vmem:[#allocation2 + $0x528] sm:$0xf] %v784_v54 }
 0x13d   :  { %787 = vst [vmem:[#allocation2 + $0x52c] sm:$0xf] %v786_v55  ;;  %v788_v56 = vld [vmem:[%s11109_s7 + $0x518] sm:$0xf]  ;;  %v792_v58 = vld [vmem:[%s11109_s7 + $0x51c] sm:$0xf] }
 0x13e   :  { %v790_v57 = vld [vmem:[%s11109_s7 + $0x538] sm:$0xf]  ;;  %789 = vst [vmem:[#allocation2 + $0x530] sm:$0xf] %v788_v56  ;;  %793 = vst [vmem:[#allocation2 + $0x538] sm:$0xf] %v792_v58 }
 0x13f   :  { %791 = vst [vmem:[#allocation2 + $0x534] sm:$0xf] %v790_v57  ;;  %v794_v59 = vld [vmem:[%s11109_s7 + $0x53c] sm:$0xff]   ;;  %v800_v61 = vld [vmem:[%s11109_s7 + $0x544] sm:$0xf] }
 0x140   :  { %v798_v60 = vld [vmem:[%s11109_s7 + $0x560] sm:$0xf]  ;;  %795 = vst [vmem:[#allocation2 + $0x53c] sm:$0xff] %v794_v59   ;;  %801 = vst [vmem:[#allocation2 + $0x548] sm:$0xf] %v800_v61 }
 0x141   :  { %799 = vst [vmem:[#allocation2 + $0x544] sm:$0xf] %v798_v60  ;;  %v802_v62 = vld [vmem:[%s11109_s7 + $0x564] sm:$0xf]  ;;  %v804_v63 = vld [vmem:[%s11109_s7 + $0x548] sm:$0xf] }
 0x142   :  { %v806_v0 = vld [vmem:[%s11109_s7 + $0x568] sm:$0xf]  ;;  %803 = vst [vmem:[#allocation2 + $0x54c] sm:$0xf] %v802_v62  ;;  %805 = vst [vmem:[#allocation2 + $0x550] sm:$0xf] %v804_v63 }
 0x143   :  { %807 = vst [vmem:[#allocation2 + $0x554] sm:$0xf] %v806_v0  ;;  %v808_v1 = vld [vmem:[%s11109_s7 + $0x54c] sm:$0xf]  ;;  %v812_v3 = vld [vmem:[%s11109_s7 + $0x550] sm:$0xf] }
 0x144   :  { %v810_v2 = vld [vmem:[%s11109_s7 + $0x56c] sm:$0xf]  ;;  %809 = vst [vmem:[#allocation2 + $0x558] sm:$0xf] %v808_v1  ;;  %813 = vst [vmem:[#allocation2 + $0x560] sm:$0xf] %v812_v3 }
 0x145   :  { %811 = vst [vmem:[#allocation2 + $0x55c] sm:$0xf] %v810_v2  ;;  %v814_v4 = vld [vmem:[%s11109_s7 + $0x570] sm:$0xf]  ;;  %v816_v5 = vld [vmem:[%s11109_s7 + $0x554] sm:$0xf] }
 0x146   :  { %v818_v6 = vld [vmem:[%s11109_s7 + $0x574] sm:$0xf]  ;;  %815 = vst [vmem:[#allocation2 + $0x564] sm:$0xf] %v814_v4  ;;  %817 = vst [vmem:[#allocation2 + $0x568] sm:$0xf] %v816_v5 }
 0x147   :  { %819 = vst [vmem:[#allocation2 + $0x56c] sm:$0xf] %v818_v6  ;;  %v820_v7 = vld [vmem:[%s11109_s7 + $0x558] sm:$0xf]  ;;  %v824_v9 = vld [vmem:[%s11109_s7 + $0x55c] sm:$0xf] }
 0x148   :  { %v822_v8 = vld [vmem:[%s11109_s7 + $0x578] sm:$0xf]  ;;  %821 = vst [vmem:[#allocation2 + $0x570] sm:$0xf] %v820_v7  ;;  %825 = vst [vmem:[#allocation2 + $0x578] sm:$0xf] %v824_v9 }
 0x149   :  { %823 = vst [vmem:[#allocation2 + $0x574] sm:$0xf] %v822_v8  ;;  %v826_v10 = vld [vmem:[%s11109_s7 + $0x57c] sm:$0xff]   ;;  %v832_v12 = vld [vmem:[%s11109_s7 + $0x584] sm:$0xf] }
 0x14a   :  { %v830_v11 = vld [vmem:[%s11109_s7 + $0x5a0] sm:$0xf]  ;;  %827 = vst [vmem:[#allocation2 + $0x57c] sm:$0xff] %v826_v10   ;;  %833 = vst [vmem:[#allocation2 + $0x588] sm:$0xf] %v832_v12 }
 0x14b   :  { %831 = vst [vmem:[#allocation2 + $0x584] sm:$0xf] %v830_v11  ;;  %v834_v13 = vld [vmem:[%s11109_s7 + $0x5a4] sm:$0xf]  ;;  %v836_v14 = vld [vmem:[%s11109_s7 + $0x588] sm:$0xf] }
 0x14c   :  { %v838_v15 = vld [vmem:[%s11109_s7 + $0x5a8] sm:$0xf]  ;;  %835 = vst [vmem:[#allocation2 + $0x58c] sm:$0xf] %v834_v13  ;;  %837 = vst [vmem:[#allocation2 + $0x590] sm:$0xf] %v836_v14 }
 0x14d   :  { %839 = vst [vmem:[#allocation2 + $0x594] sm:$0xf] %v838_v15  ;;  %v840_v16 = vld [vmem:[%s11109_s7 + $0x58c] sm:$0xf]  ;;  %v844_v18 = vld [vmem:[%s11109_s7 + $0x590] sm:$0xf] }
 0x14e   :  { %v842_v17 = vld [vmem:[%s11109_s7 + $0x5ac] sm:$0xf]  ;;  %841 = vst [vmem:[#allocation2 + $0x598] sm:$0xf] %v840_v16  ;;  %845 = vst [vmem:[#allocation2 + $0x5a0] sm:$0xf] %v844_v18 }
 0x14f   :  { %843 = vst [vmem:[#allocation2 + $0x59c] sm:$0xf] %v842_v17  ;;  %v846_v19 = vld [vmem:[%s11109_s7 + $0x5b0] sm:$0xf]  ;;  %v848_v20 = vld [vmem:[%s11109_s7 + $0x594] sm:$0xf] }
 0x150   :  { %v850_v21 = vld [vmem:[%s11109_s7 + $0x5b4] sm:$0xf]  ;;  %847 = vst [vmem:[#allocation2 + $0x5a4] sm:$0xf] %v846_v19  ;;  %849 = vst [vmem:[#allocation2 + $0x5a8] sm:$0xf] %v848_v20 }
 0x151   :  { %851 = vst [vmem:[#allocation2 + $0x5ac] sm:$0xf] %v850_v21  ;;  %v852_v22 = vld [vmem:[%s11109_s7 + $0x598] sm:$0xf]  ;;  %v856_v24 = vld [vmem:[%s11109_s7 + $0x59c] sm:$0xf] }
 0x152   :  { %v854_v23 = vld [vmem:[%s11109_s7 + $0x5b8] sm:$0xf]  ;;  %853 = vst [vmem:[#allocation2 + $0x5b0] sm:$0xf] %v852_v22  ;;  %857 = vst [vmem:[#allocation2 + $0x5b8] sm:$0xf] %v856_v24 }
 0x153   :  { %855 = vst [vmem:[#allocation2 + $0x5b4] sm:$0xf] %v854_v23  ;;  %v858_v25 = vld [vmem:[%s11109_s7 + $0x5bc] sm:$0xff]   ;;  %v864_v27 = vld [vmem:[%s11109_s7 + $0x5c4] sm:$0xf] }
 0x154   :  { %v862_v26 = vld [vmem:[%s11109_s7 + $0x5e0] sm:$0xf]  ;;  %859 = vst [vmem:[#allocation2 + $0x5bc] sm:$0xff] %v858_v25   ;;  %865 = vst [vmem:[#allocation2 + $0x5c8] sm:$0xf] %v864_v27 }
 0x155   :  { %863 = vst [vmem:[#allocation2 + $0x5c4] sm:$0xf] %v862_v26  ;;  %v866_v28 = vld [vmem:[%s11109_s7 + $0x5e4] sm:$0xf]  ;;  %v868_v29 = vld [vmem:[%s11109_s7 + $0x5c8] sm:$0xf] }
 0x156   :  { %v870_v30 = vld [vmem:[%s11109_s7 + $0x5e8] sm:$0xf]  ;;  %867 = vst [vmem:[#allocation2 + $0x5cc] sm:$0xf] %v866_v28  ;;  %869 = vst [vmem:[#allocation2 + $0x5d0] sm:$0xf] %v868_v29 }
 0x157   :  { %871 = vst [vmem:[#allocation2 + $0x5d4] sm:$0xf] %v870_v30  ;;  %v872_v31 = vld [vmem:[%s11109_s7 + $0x5cc] sm:$0xf]  ;;  %v876_v33 = vld [vmem:[%s11109_s7 + $0x5d0] sm:$0xf] }
 0x158   :  { %v874_v32 = vld [vmem:[%s11109_s7 + $0x5ec] sm:$0xf]  ;;  %873 = vst [vmem:[#allocation2 + $0x5d8] sm:$0xf] %v872_v31  ;;  %877 = vst [vmem:[#allocation2 + $0x5e0] sm:$0xf] %v876_v33 }
 0x159   :  { %875 = vst [vmem:[#allocation2 + $0x5dc] sm:$0xf] %v874_v32  ;;  %v878_v34 = vld [vmem:[%s11109_s7 + $0x5f0] sm:$0xf]  ;;  %v880_v35 = vld [vmem:[%s11109_s7 + $0x5d4] sm:$0xf] }
 0x15a   :  { %v882_v36 = vld [vmem:[%s11109_s7 + $0x5f4] sm:$0xf]  ;;  %879 = vst [vmem:[#allocation2 + $0x5e4] sm:$0xf] %v878_v34  ;;  %881 = vst [vmem:[#allocation2 + $0x5e8] sm:$0xf] %v880_v35 }
 0x15b   :  { %883 = vst [vmem:[#allocation2 + $0x5ec] sm:$0xf] %v882_v36  ;;  %v884_v37 = vld [vmem:[%s11109_s7 + $0x5d8] sm:$0xf]  ;;  %v888_v39 = vld [vmem:[%s11109_s7 + $0x5dc] sm:$0xf] }
 0x15c   :  { %v886_v38 = vld [vmem:[%s11109_s7 + $0x5f8] sm:$0xf]  ;;  %885 = vst [vmem:[#allocation2 + $0x5f0] sm:$0xf] %v884_v37  ;;  %889 = vst [vmem:[#allocation2 + $0x5f8] sm:$0xf] %v888_v39 }
 0x15d   :  { %887 = vst [vmem:[#allocation2 + $0x5f4] sm:$0xf] %v886_v38  ;;  %v890_v40 = vld [vmem:[%s11109_s7 + $0x5fc] sm:$0xff]   ;;  %v896_v42 = vld [vmem:[%s11109_s7 + $0x604] sm:$0xf] }
 0x15e   :  { %v894_v41 = vld [vmem:[%s11109_s7 + $0x620] sm:$0xf]  ;;  %891 = vst [vmem:[#allocation2 + $0x5fc] sm:$0xff] %v890_v40   ;;  %897 = vst [vmem:[#allocation2 + $0x608] sm:$0xf] %v896_v42 }
 0x15f   :  { %895 = vst [vmem:[#allocation2 + $0x604] sm:$0xf] %v894_v41  ;;  %v898_v43 = vld [vmem:[%s11109_s7 + $0x624] sm:$0xf]  ;;  %v900_v44 = vld [vmem:[%s11109_s7 + $0x608] sm:$0xf] }
 0x160   :  { %v902_v45 = vld [vmem:[%s11109_s7 + $0x628] sm:$0xf]  ;;  %899 = vst [vmem:[#allocation2 + $0x60c] sm:$0xf] %v898_v43  ;;  %901 = vst [vmem:[#allocation2 + $0x610] sm:$0xf] %v900_v44 }
 0x161   :  { %903 = vst [vmem:[#allocation2 + $0x614] sm:$0xf] %v902_v45  ;;  %v904_v46 = vld [vmem:[%s11109_s7 + $0x60c] sm:$0xf]  ;;  %v908_v48 = vld [vmem:[%s11109_s7 + $0x610] sm:$0xf] }
 0x162   :  { %v906_v47 = vld [vmem:[%s11109_s7 + $0x62c] sm:$0xf]  ;;  %905 = vst [vmem:[#allocation2 + $0x618] sm:$0xf] %v904_v46  ;;  %909 = vst [vmem:[#allocation2 + $0x620] sm:$0xf] %v908_v48 }
 0x163   :  { %907 = vst [vmem:[#allocation2 + $0x61c] sm:$0xf] %v906_v47  ;;  %v910_v49 = vld [vmem:[%s11109_s7 + $0x630] sm:$0xf]  ;;  %v912_v50 = vld [vmem:[%s11109_s7 + $0x614] sm:$0xf] }
 0x164   :  { %v914_v51 = vld [vmem:[%s11109_s7 + $0x634] sm:$0xf]  ;;  %911 = vst [vmem:[#allocation2 + $0x624] sm:$0xf] %v910_v49  ;;  %913 = vst [vmem:[#allocation2 + $0x628] sm:$0xf] %v912_v50 }
 0x165   :  { %915 = vst [vmem:[#allocation2 + $0x62c] sm:$0xf] %v914_v51  ;;  %v916_v52 = vld [vmem:[%s11109_s7 + $0x618] sm:$0xf]  ;;  %v920_v54 = vld [vmem:[%s11109_s7 + $0x61c] sm:$0xf] }
 0x166   :  { %v918_v53 = vld [vmem:[%s11109_s7 + $0x638] sm:$0xf]  ;;  %917 = vst [vmem:[#allocation2 + $0x630] sm:$0xf] %v916_v52  ;;  %921 = vst [vmem:[#allocation2 + $0x638] sm:$0xf] %v920_v54 }
 0x167   :  { %919 = vst [vmem:[#allocation2 + $0x634] sm:$0xf] %v918_v53  ;;  %v922_v55 = vld [vmem:[%s11109_s7 + $0x63c] sm:$0xff]   ;;  %v928_v57 = vld [vmem:[%s11109_s7 + $0x644] sm:$0xf] }
 0x168   :  { %v926_v56 = vld [vmem:[%s11109_s7 + $0x660] sm:$0xf]  ;;  %923 = vst [vmem:[#allocation2 + $0x63c] sm:$0xff] %v922_v55   ;;  %929 = vst [vmem:[#allocation2 + $0x648] sm:$0xf] %v928_v57 }
 0x169   :  { %927 = vst [vmem:[#allocation2 + $0x644] sm:$0xf] %v926_v56  ;;  %v930_v58 = vld [vmem:[%s11109_s7 + $0x664] sm:$0xf]  ;;  %v932_v59 = vld [vmem:[%s11109_s7 + $0x648] sm:$0xf] }
 0x16a   :  { %v934_v60 = vld [vmem:[%s11109_s7 + $0x668] sm:$0xf]  ;;  %931 = vst [vmem:[#allocation2 + $0x64c] sm:$0xf] %v930_v58  ;;  %933 = vst [vmem:[#allocation2 + $0x650] sm:$0xf] %v932_v59 }
 0x16b   :  { %935 = vst [vmem:[#allocation2 + $0x654] sm:$0xf] %v934_v60  ;;  %v936_v61 = vld [vmem:[%s11109_s7 + $0x64c] sm:$0xf]  ;;  %v940_v63 = vld [vmem:[%s11109_s7 + $0x650] sm:$0xf] }
 0x16c   :  { %v938_v62 = vld [vmem:[%s11109_s7 + $0x66c] sm:$0xf]  ;;  %937 = vst [vmem:[#allocation2 + $0x658] sm:$0xf] %v936_v61  ;;  %941 = vst [vmem:[#allocation2 + $0x660] sm:$0xf] %v940_v63 }
 0x16d   :  { %939 = vst [vmem:[#allocation2 + $0x65c] sm:$0xf] %v938_v62  ;;  %v942_v0 = vld [vmem:[%s11109_s7 + $0x670] sm:$0xf]  ;;  %v944_v1 = vld [vmem:[%s11109_s7 + $0x654] sm:$0xf] }
 0x16e   :  { %v946_v2 = vld [vmem:[%s11109_s7 + $0x674] sm:$0xf]  ;;  %943 = vst [vmem:[#allocation2 + $0x664] sm:$0xf] %v942_v0  ;;  %945 = vst [vmem:[#allocation2 + $0x668] sm:$0xf] %v944_v1 }
 0x16f   :  { %947 = vst [vmem:[#allocation2 + $0x66c] sm:$0xf] %v946_v2  ;;  %v948_v3 = vld [vmem:[%s11109_s7 + $0x658] sm:$0xf]  ;;  %v952_v5 = vld [vmem:[%s11109_s7 + $0x65c] sm:$0xf] }
 0x170   :  { %v950_v4 = vld [vmem:[%s11109_s7 + $0x678] sm:$0xf]  ;;  %949 = vst [vmem:[#allocation2 + $0x670] sm:$0xf] %v948_v3  ;;  %953 = vst [vmem:[#allocation2 + $0x678] sm:$0xf] %v952_v5 }
 0x171   :  { %951 = vst [vmem:[#allocation2 + $0x674] sm:$0xf] %v950_v4  ;;  %v954_v6 = vld [vmem:[%s11109_s7 + $0x67c] sm:$0xff]   ;;  %v960_v8 = vld [vmem:[%s11109_s7 + $0x684] sm:$0xf] }
 0x172   :  { %v958_v7 = vld [vmem:[%s11109_s7 + $0x6a0] sm:$0xf]  ;;  %955 = vst [vmem:[#allocation2 + $0x67c] sm:$0xff] %v954_v6   ;;  %961 = vst [vmem:[#allocation2 + $0x688] sm:$0xf] %v960_v8 }
 0x173   :  { %959 = vst [vmem:[#allocation2 + $0x684] sm:$0xf] %v958_v7  ;;  %v962_v9 = vld [vmem:[%s11109_s7 + $0x6a4] sm:$0xf]  ;;  %v964_v10 = vld [vmem:[%s11109_s7 + $0x688] sm:$0xf] }
 0x174   :  { %v966_v11 = vld [vmem:[%s11109_s7 + $0x6a8] sm:$0xf]  ;;  %963 = vst [vmem:[#allocation2 + $0x68c] sm:$0xf] %v962_v9  ;;  %965 = vst [vmem:[#allocation2 + $0x690] sm:$0xf] %v964_v10 }
 0x175   :  { %967 = vst [vmem:[#allocation2 + $0x694] sm:$0xf] %v966_v11  ;;  %v968_v12 = vld [vmem:[%s11109_s7 + $0x68c] sm:$0xf]  ;;  %v972_v14 = vld [vmem:[%s11109_s7 + $0x690] sm:$0xf] }
 0x176   :  { %v970_v13 = vld [vmem:[%s11109_s7 + $0x6ac] sm:$0xf]  ;;  %969 = vst [vmem:[#allocation2 + $0x698] sm:$0xf] %v968_v12  ;;  %973 = vst [vmem:[#allocation2 + $0x6a0] sm:$0xf] %v972_v14 }
 0x177   :  { %971 = vst [vmem:[#allocation2 + $0x69c] sm:$0xf] %v970_v13  ;;  %v974_v15 = vld [vmem:[%s11109_s7 + $0x6b0] sm:$0xf]  ;;  %v976_v16 = vld [vmem:[%s11109_s7 + $0x694] sm:$0xf] }
 0x178   :  { %v978_v17 = vld [vmem:[%s11109_s7 + $0x6b4] sm:$0xf]  ;;  %975 = vst [vmem:[#allocation2 + $0x6a4] sm:$0xf] %v974_v15  ;;  %977 = vst [vmem:[#allocation2 + $0x6a8] sm:$0xf] %v976_v16 }
 0x179   :  { %979 = vst [vmem:[#allocation2 + $0x6ac] sm:$0xf] %v978_v17  ;;  %v980_v18 = vld [vmem:[%s11109_s7 + $0x698] sm:$0xf]  ;;  %v984_v20 = vld [vmem:[%s11109_s7 + $0x69c] sm:$0xf] }
 0x17a   :  { %v982_v19 = vld [vmem:[%s11109_s7 + $0x6b8] sm:$0xf]  ;;  %981 = vst [vmem:[#allocation2 + $0x6b0] sm:$0xf] %v980_v18  ;;  %985 = vst [vmem:[#allocation2 + $0x6b8] sm:$0xf] %v984_v20 }
 0x17b   :  { %983 = vst [vmem:[#allocation2 + $0x6b4] sm:$0xf] %v982_v19  ;;  %v986_v21 = vld [vmem:[%s11109_s7 + $0x6bc] sm:$0xff]   ;;  %v992_v23 = vld [vmem:[%s11109_s7 + $0x6c4] sm:$0xf] }
 0x17c   :  { %v990_v22 = vld [vmem:[%s11109_s7 + $0x6e0] sm:$0xf]  ;;  %987 = vst [vmem:[#allocation2 + $0x6bc] sm:$0xff] %v986_v21   ;;  %993 = vst [vmem:[#allocation2 + $0x6c8] sm:$0xf] %v992_v23 }
 0x17d   :  { %991 = vst [vmem:[#allocation2 + $0x6c4] sm:$0xf] %v990_v22  ;;  %v994_v24 = vld [vmem:[%s11109_s7 + $0x6e4] sm:$0xf]  ;;  %v996_v25 = vld [vmem:[%s11109_s7 + $0x6c8] sm:$0xf] }
 0x17e   :  { %v998_v26 = vld [vmem:[%s11109_s7 + $0x6e8] sm:$0xf]  ;;  %995 = vst [vmem:[#allocation2 + $0x6cc] sm:$0xf] %v994_v24  ;;  %997 = vst [vmem:[#allocation2 + $0x6d0] sm:$0xf] %v996_v25 }
 0x17f   :  { %999 = vst [vmem:[#allocation2 + $0x6d4] sm:$0xf] %v998_v26  ;;  %v1000_v27 = vld [vmem:[%s11109_s7 + $0x6cc] sm:$0xf]  ;;  %v1004_v29 = vld [vmem:[%s11109_s7 + $0x6d0] sm:$0xf] }
 0x180   :  { %v1002_v28 = vld [vmem:[%s11109_s7 + $0x6ec] sm:$0xf]  ;;  %1001 = vst [vmem:[#allocation2 + $0x6d8] sm:$0xf] %v1000_v27  ;;  %1005 = vst [vmem:[#allocation2 + $0x6e0] sm:$0xf] %v1004_v29 }
 0x181   :  { %1003 = vst [vmem:[#allocation2 + $0x6dc] sm:$0xf] %v1002_v28  ;;  %v1006_v30 = vld [vmem:[%s11109_s7 + $0x6f0] sm:$0xf]  ;;  %v1008_v31 = vld [vmem:[%s11109_s7 + $0x6d4] sm:$0xf] }
 0x182   :  { %v1010_v32 = vld [vmem:[%s11109_s7 + $0x6f4] sm:$0xf]  ;;  %1007 = vst [vmem:[#allocation2 + $0x6e4] sm:$0xf] %v1006_v30  ;;  %1009 = vst [vmem:[#allocation2 + $0x6e8] sm:$0xf] %v1008_v31 }
 0x183   :  { %1011 = vst [vmem:[#allocation2 + $0x6ec] sm:$0xf] %v1010_v32  ;;  %v1012_v33 = vld [vmem:[%s11109_s7 + $0x6d8] sm:$0xf]  ;;  %v1016_v35 = vld [vmem:[%s11109_s7 + $0x6dc] sm:$0xf] }
 0x184   :  { %v1014_v34 = vld [vmem:[%s11109_s7 + $0x6f8] sm:$0xf]  ;;  %1013 = vst [vmem:[#allocation2 + $0x6f0] sm:$0xf] %v1012_v33  ;;  %1017 = vst [vmem:[#allocation2 + $0x6f8] sm:$0xf] %v1016_v35 }
 0x185   :  { %1015 = vst [vmem:[#allocation2 + $0x6f4] sm:$0xf] %v1014_v34  ;;  %v1018_v36 = vld [vmem:[%s11109_s7 + $0x6fc] sm:$0xff]   ;;  %v1024_v38 = vld [vmem:[%s11109_s7 + $0x704] sm:$0xf] }
 0x186   :  { %v1022_v37 = vld [vmem:[%s11109_s7 + $0x720] sm:$0xf]  ;;  %1019 = vst [vmem:[#allocation2 + $0x6fc] sm:$0xff] %v1018_v36   ;;  %1025 = vst [vmem:[#allocation2 + $0x708] sm:$0xf] %v1024_v38 }
 0x187   :  { %1023 = vst [vmem:[#allocation2 + $0x704] sm:$0xf] %v1022_v37  ;;  %v1026_v39 = vld [vmem:[%s11109_s7 + $0x724] sm:$0xf]  ;;  %v1028_v40 = vld [vmem:[%s11109_s7 + $0x708] sm:$0xf] }
 0x188   :  { %v1030_v41 = vld [vmem:[%s11109_s7 + $0x728] sm:$0xf]  ;;  %1027 = vst [vmem:[#allocation2 + $0x70c] sm:$0xf] %v1026_v39  ;;  %1029 = vst [vmem:[#allocation2 + $0x710] sm:$0xf] %v1028_v40 }
 0x189   :  { %1031 = vst [vmem:[#allocation2 + $0x714] sm:$0xf] %v1030_v41  ;;  %v1032_v42 = vld [vmem:[%s11109_s7 + $0x70c] sm:$0xf]  ;;  %v1036_v44 = vld [vmem:[%s11109_s7 + $0x710] sm:$0xf] }
 0x18a   :  { %v1034_v43 = vld [vmem:[%s11109_s7 + $0x72c] sm:$0xf]  ;;  %1033 = vst [vmem:[#allocation2 + $0x718] sm:$0xf] %v1032_v42  ;;  %1037 = vst [vmem:[#allocation2 + $0x720] sm:$0xf] %v1036_v44 }
 0x18b   :  { %1035 = vst [vmem:[#allocation2 + $0x71c] sm:$0xf] %v1034_v43  ;;  %v1038_v45 = vld [vmem:[%s11109_s7 + $0x730] sm:$0xf]  ;;  %v1040_v46 = vld [vmem:[%s11109_s7 + $0x714] sm:$0xf] }
 0x18c   :  { %v1042_v47 = vld [vmem:[%s11109_s7 + $0x734] sm:$0xf]  ;;  %1039 = vst [vmem:[#allocation2 + $0x724] sm:$0xf] %v1038_v45  ;;  %1041 = vst [vmem:[#allocation2 + $0x728] sm:$0xf] %v1040_v46 }
 0x18d   :  { %1043 = vst [vmem:[#allocation2 + $0x72c] sm:$0xf] %v1042_v47  ;;  %v1044_v48 = vld [vmem:[%s11109_s7 + $0x718] sm:$0xf]  ;;  %v1048_v50 = vld [vmem:[%s11109_s7 + $0x71c] sm:$0xf] }
 0x18e   :  { %v1046_v49 = vld [vmem:[%s11109_s7 + $0x738] sm:$0xf]  ;;  %1045 = vst [vmem:[#allocation2 + $0x730] sm:$0xf] %v1044_v48  ;;  %1049 = vst [vmem:[#allocation2 + $0x738] sm:$0xf] %v1048_v50 }
 0x18f   :  { %1047 = vst [vmem:[#allocation2 + $0x734] sm:$0xf] %v1046_v49  ;;  %v1050_v51 = vld [vmem:[%s11109_s7 + $0x73c] sm:$0xff]   ;;  %v1056_v53 = vld [vmem:[%s11109_s7 + $0x744] sm:$0xf] }
 0x190   :  { %v1054_v52 = vld [vmem:[%s11109_s7 + $0x760] sm:$0xf]  ;;  %1051 = vst [vmem:[#allocation2 + $0x73c] sm:$0xff] %v1050_v51   ;;  %1057 = vst [vmem:[#allocation2 + $0x748] sm:$0xf] %v1056_v53 }
 0x191   :  { %1055 = vst [vmem:[#allocation2 + $0x744] sm:$0xf] %v1054_v52  ;;  %v1058_v54 = vld [vmem:[%s11109_s7 + $0x764] sm:$0xf]  ;;  %v1060_v55 = vld [vmem:[%s11109_s7 + $0x748] sm:$0xf] }
 0x192   :  { %v1062_v56 = vld [vmem:[%s11109_s7 + $0x768] sm:$0xf]  ;;  %1059 = vst [vmem:[#allocation2 + $0x74c] sm:$0xf] %v1058_v54  ;;  %1061 = vst [vmem:[#allocation2 + $0x750] sm:$0xf] %v1060_v55 }
 0x193   :  { %1063 = vst [vmem:[#allocation2 + $0x754] sm:$0xf] %v1062_v56  ;;  %v1064_v57 = vld [vmem:[%s11109_s7 + $0x74c] sm:$0xf]  ;;  %v1068_v59 = vld [vmem:[%s11109_s7 + $0x750] sm:$0xf] }
 0x194   :  { %v1066_v58 = vld [vmem:[%s11109_s7 + $0x76c] sm:$0xf]  ;;  %1065 = vst [vmem:[#allocation2 + $0x758] sm:$0xf] %v1064_v57  ;;  %1069 = vst [vmem:[#allocation2 + $0x760] sm:$0xf] %v1068_v59 }
 0x195   :  { %1067 = vst [vmem:[#allocation2 + $0x75c] sm:$0xf] %v1066_v58  ;;  %v1070_v60 = vld [vmem:[%s11109_s7 + $0x770] sm:$0xf]  ;;  %v1072_v61 = vld [vmem:[%s11109_s7 + $0x754] sm:$0xf] }
 0x196   :  { %v1074_v62 = vld [vmem:[%s11109_s7 + $0x774] sm:$0xf]  ;;  %1071 = vst [vmem:[#allocation2 + $0x764] sm:$0xf] %v1070_v60  ;;  %1073 = vst [vmem:[#allocation2 + $0x768] sm:$0xf] %v1072_v61 }
 0x197   :  { %1075 = vst [vmem:[#allocation2 + $0x76c] sm:$0xf] %v1074_v62  ;;  %v1076_v63 = vld [vmem:[%s11109_s7 + $0x758] sm:$0xf]  ;;  %v1080_v1 = vld [vmem:[%s11109_s7 + $0x75c] sm:$0xf] }
 0x198   :  { %v1078_v0 = vld [vmem:[%s11109_s7 + $0x778] sm:$0xf]  ;;  %1077 = vst [vmem:[#allocation2 + $0x770] sm:$0xf] %v1076_v63  ;;  %1081 = vst [vmem:[#allocation2 + $0x778] sm:$0xf] %v1080_v1 }
 0x199   :  { %1079 = vst [vmem:[#allocation2 + $0x774] sm:$0xf] %v1078_v0  ;;  %v1082_v2 = vld [vmem:[%s11109_s7 + $0x77c] sm:$0xff]   ;;  %v1088_v4 = vld [vmem:[%s11109_s7 + $0x784] sm:$0xf] }
 0x19a   :  { %v1086_v3 = vld [vmem:[%s11109_s7 + $0x7a0] sm:$0xf]  ;;  %1083 = vst [vmem:[#allocation2 + $0x77c] sm:$0xff] %v1082_v2   ;;  %1089 = vst [vmem:[#allocation2 + $0x788] sm:$0xf] %v1088_v4 }
 0x19b   :  { %1087 = vst [vmem:[#allocation2 + $0x784] sm:$0xf] %v1086_v3  ;;  %v1090_v5 = vld [vmem:[%s11109_s7 + $0x7a4] sm:$0xf]  ;;  %v1092_v6 = vld [vmem:[%s11109_s7 + $0x788] sm:$0xf] }
 0x19c   :  { %v1094_v7 = vld [vmem:[%s11109_s7 + $0x7a8] sm:$0xf]  ;;  %1091 = vst [vmem:[#allocation2 + $0x78c] sm:$0xf] %v1090_v5  ;;  %1093 = vst [vmem:[#allocation2 + $0x790] sm:$0xf] %v1092_v6 }
 0x19d   :  { %1095 = vst [vmem:[#allocation2 + $0x794] sm:$0xf] %v1094_v7  ;;  %v1096_v8 = vld [vmem:[%s11109_s7 + $0x78c] sm:$0xf]  ;;  %v1100_v10 = vld [vmem:[%s11109_s7 + $0x790] sm:$0xf] }
 0x19e   :  { %v1098_v9 = vld [vmem:[%s11109_s7 + $0x7ac] sm:$0xf]  ;;  %1097 = vst [vmem:[#allocation2 + $0x798] sm:$0xf] %v1096_v8  ;;  %1101 = vst [vmem:[#allocation2 + $0x7a0] sm:$0xf] %v1100_v10 }
 0x19f   :  { %1099 = vst [vmem:[#allocation2 + $0x79c] sm:$0xf] %v1098_v9  ;;  %v1102_v11 = vld [vmem:[%s11109_s7 + $0x7b0] sm:$0xf]  ;;  %v1104_v12 = vld [vmem:[%s11109_s7 + $0x794] sm:$0xf] }
 0x1a0   :  { %v1106_v13 = vld [vmem:[%s11109_s7 + $0x7b4] sm:$0xf]  ;;  %1103 = vst [vmem:[#allocation2 + $0x7a4] sm:$0xf] %v1102_v11  ;;  %1105 = vst [vmem:[#allocation2 + $0x7a8] sm:$0xf] %v1104_v12 }
 0x1a1   :  { %1107 = vst [vmem:[#allocation2 + $0x7ac] sm:$0xf] %v1106_v13  ;;  %v1108_v14 = vld [vmem:[%s11109_s7 + $0x798] sm:$0xf]  ;;  %v1112_v16 = vld [vmem:[%s11109_s7 + $0x79c] sm:$0xf] }
 0x1a2   :  { %v1110_v15 = vld [vmem:[%s11109_s7 + $0x7b8] sm:$0xf]  ;;  %1109 = vst [vmem:[#allocation2 + $0x7b0] sm:$0xf] %v1108_v14  ;;  %1113 = vst [vmem:[#allocation2 + $0x7b8] sm:$0xf] %v1112_v16 }
 0x1a3   :  { %1111 = vst [vmem:[#allocation2 + $0x7b4] sm:$0xf] %v1110_v15  ;;  %v1114_v17 = vld [vmem:[%s11109_s7 + $0x7bc] sm:$0xff]   ;;  %v1120_v19 = vld [vmem:[%s11109_s7 + $0x7c4] sm:$0xf] }
 0x1a4   :  { %v1118_v18 = vld [vmem:[%s11109_s7 + $0x7e0] sm:$0xf]  ;;  %1115 = vst [vmem:[#allocation2 + $0x7bc] sm:$0xff] %v1114_v17   ;;  %1121 = vst [vmem:[#allocation2 + $0x7c8] sm:$0xf] %v1120_v19 }
 0x1a5   :  { %1119 = vst [vmem:[#allocation2 + $0x7c4] sm:$0xf] %v1118_v18  ;;  %v1122_v20 = vld [vmem:[%s11109_s7 + $0x7e4] sm:$0xf]  ;;  %v1124_v21 = vld [vmem:[%s11109_s7 + $0x7c8] sm:$0xf] }
 0x1a6   :  { %v1126_v22 = vld [vmem:[%s11109_s7 + $0x7e8] sm:$0xf]  ;;  %1123 = vst [vmem:[#allocation2 + $0x7cc] sm:$0xf] %v1122_v20  ;;  %1125 = vst [vmem:[#allocation2 + $0x7d0] sm:$0xf] %v1124_v21 }
 0x1a7   :  { %1127 = vst [vmem:[#allocation2 + $0x7d4] sm:$0xf] %v1126_v22  ;;  %v1128_v23 = vld [vmem:[%s11109_s7 + $0x7cc] sm:$0xf]  ;;  %v1132_v25 = vld [vmem:[%s11109_s7 + $0x7d0] sm:$0xf] }
 0x1a8   :  { %v1130_v24 = vld [vmem:[%s11109_s7 + $0x7ec] sm:$0xf]  ;;  %1129 = vst [vmem:[#allocation2 + $0x7d8] sm:$0xf] %v1128_v23  ;;  %1133 = vst [vmem:[#allocation2 + $0x7e0] sm:$0xf] %v1132_v25 }
 0x1a9   :  { %1131 = vst [vmem:[#allocation2 + $0x7dc] sm:$0xf] %v1130_v24  ;;  %v1134_v26 = vld [vmem:[%s11109_s7 + $0x7f0] sm:$0xf]  ;;  %v1136_v27 = vld [vmem:[%s11109_s7 + $0x7d4] sm:$0xf] }
 0x1aa   :  { %v1138_v28 = vld [vmem:[%s11109_s7 + $0x7f4] sm:$0xf]  ;;  %1135 = vst [vmem:[#allocation2 + $0x7e4] sm:$0xf] %v1134_v26  ;;  %1137 = vst [vmem:[#allocation2 + $0x7e8] sm:$0xf] %v1136_v27 }
 0x1ab   :  { %1139 = vst [vmem:[#allocation2 + $0x7ec] sm:$0xf] %v1138_v28  ;;  %v1140_v29 = vld [vmem:[%s11109_s7 + $0x7d8] sm:$0xf]  ;;  %v1144_v31 = vld [vmem:[%s11109_s7 + $0x7dc] sm:$0xf] }
 0x1ac   :  { %v1142_v30 = vld [vmem:[%s11109_s7 + $0x7f8] sm:$0xf]  ;;  %1141 = vst [vmem:[#allocation2 + $0x7f0] sm:$0xf] %v1140_v29  ;;  %1145 = vst [vmem:[#allocation2 + $0x7f8] sm:$0xf] %v1144_v31 }
 0x1ad   :  { %1143 = vst [vmem:[#allocation2 + $0x7f4] sm:$0xf] %v1142_v30  ;;  %v1146_v32 = vld [vmem:[%s11109_s7 + $0x7fc] sm:$0xf] }
 0x1ae   :  { %1147 = vst [vmem:[#allocation2 + $0x7fc] sm:$0xf] %v1146_v32 }
 0x1af   :  { %4283 = vsyncadd [#allocation3], 32768  ;;  %v8010_v33 = vld [vmem:[%s11103_s1 + $0x4] ss:$16 sps:$4 sm:$0xff]   ;;  %v8012_v34 = vld [vmem:[%s11103_s1 + $0xc] ss:$16 sps:$4 sm:$0xff]  }
 0x1b0   :  { %v8014_v35 = vld [vmem:[%s11103_s1] ss:$16 sps:$4 sm:$0xff]   ;;  %v8015_v36 = vld [vmem:[%s11103_s1 + $0x8] ss:$16 sps:$4 sm:$0xff]   ;;  %5874 = vmatprep.subr.bf16.mxu0 %v8010_v33  ;;  %v8016_v37 = vld [vmem:[%s11103_s1 + $0x24] ss:$16 sps:$4 sm:$0xff]   ;;  %6038 = vmatprep.subr.bf16.mxu1 %v8012_v34 }
 0x1b1   :  { %5875 = vmatpush1.bf16.msra.mxu0 %v8014_v35  ;;  %v8018_v38 = vld [vmem:[%s11103_s1 + $0x2c] ss:$16 sps:$4 sm:$0xff]   ;;  %6039 = vmatpush1.bf16.msra.mxu1 %v8015_v36  ;;  %v8020_v39 = vld [vmem:[%s11103_s1 + $0x20] ss:$16 sps:$4 sm:$0xff]   ;;  %v8021_v40 = vld [vmem:[%s11103_s1 + $0x28] ss:$16 sps:$4 sm:$0xff]  }
 0x1b2   :  { %5876 = vmatprep.subr.bf16.mxu0 %v8016_v37  ;;  %6040 = vmatprep.subr.bf16.mxu1 %v8018_v38  ;;  %v8022_v41 = vld [vmem:[%s11103_s1 + $0x44] ss:$16 sps:$4 sm:$0xff]   ;;  %v8024_v42 = vld [vmem:[%s11103_s1 + $0x4c] ss:$16 sps:$4 sm:$0xff]   ;;  %v8026_v43 = vld [vmem:[%s11103_s1 + $0x40] ss:$16 sps:$4 sm:$0xff]  }
 0x1b3   :  { %v8027_v44 = vld [vmem:[%s11103_s1 + $0x48] ss:$16 sps:$4 sm:$0xff]   ;;  %v8028_v45 = vld [vmem:[%s11103_s1 + $0x64] ss:$16 sps:$4 sm:$0xff]   ;;  %v8030_v46 = vld [vmem:[%s11103_s1 + $0x6c] ss:$16 sps:$4 sm:$0xff]  }
 0x1b4   :  { %v8032_v47 = vld [vmem:[%s11103_s1 + $0x60] ss:$16 sps:$4 sm:$0xff]   ;;  %v8033_v48 = vld [vmem:[%s11103_s1 + $0x68] ss:$16 sps:$4 sm:$0xff]   ;;  %v8034_v49 = vld [vmem:[%s11103_s1 + $0x84] ss:$16 sps:$4 sm:$0xff]  }
 0x1b5   :  { %5877 = vmatpush1.bf16.msra.mxu0 %v8020_v39  ;;  %6041 = vmatpush1.bf16.msra.mxu1 %v8021_v40  ;;  %v8036_v50 = vld [vmem:[%s11103_s1 + $0x8c] ss:$16 sps:$4 sm:$0xff]   ;;  %v8038_v51 = vld [vmem:[%s11103_s1 + $0x80] ss:$16 sps:$4 sm:$0xff]   ;;  %v8039_v52 = vld [vmem:[%s11103_s1 + $0x88] ss:$16 sps:$4 sm:$0xff]  }
 0x1b6   :  { %5878 = vmatprep.subr.bf16.mxu0 %v8022_v41  ;;  %6042 = vmatprep.subr.bf16.mxu1 %v8024_v42  ;;  %v8040_v53 = vld [vmem:[%s11103_s1 + $0xa4] ss:$16 sps:$4 sm:$0xff]   ;;  %v8042_v54 = vld [vmem:[%s11103_s1 + $0xac] ss:$16 sps:$4 sm:$0xff]   ;;  %v8044_v55 = vld [vmem:[%s11103_s1 + $0xa0] ss:$16 sps:$4 sm:$0xff]  }
 0x1b7   :  { %v8045_v56 = vld [vmem:[%s11103_s1 + $0xa8] ss:$16 sps:$4 sm:$0xff]   ;;  %v8046_v57 = vld [vmem:[%s11103_s1 + $0xc4] ss:$16 sps:$4 sm:$0xff]   ;;  %v8048_v58 = vld [vmem:[%s11103_s1 + $0xcc] ss:$16 sps:$4 sm:$0xff]  }
 0x1b8   :  { %v8050_v59 = vld [vmem:[%s11103_s1 + $0xc0] ss:$16 sps:$4 sm:$0xff]   ;;  %v8051_v60 = vld [vmem:[%s11103_s1 + $0xc8] ss:$16 sps:$4 sm:$0xff]   ;;  %v8052_v61 = vld [vmem:[%s11103_s1 + $0xe4] ss:$16 sps:$4 sm:$0xff]  }
 0x1b9   :  { %5879 = vmatpush1.bf16.msra.mxu0 %v8026_v43  ;;  %6043 = vmatpush1.bf16.msra.mxu1 %v8027_v44  ;;  %v8054_v62 = vld [vmem:[%s11103_s1 + $0xec] ss:$16 sps:$4 sm:$0xff]   ;;  %v8056_v63 = vld [vmem:[%s11103_s1 + $0xe0] ss:$16 sps:$4 sm:$0xff]   ;;  %v8057_v0 = vld [vmem:[%s11103_s1 + $0xe8] ss:$16 sps:$4 sm:$0xff]  }
 0x1ba   :  { %5880 = vmatprep.subr.bf16.mxu0 %v8028_v45  ;;  %6044 = vmatprep.subr.bf16.mxu1 %v8030_v46  ;;  %v8058_v1 = vld [vmem:[%s11103_s1 + $0x104] ss:$16 sps:$4 sm:$0xff]   ;;  %v8060_v2 = vld [vmem:[%s11103_s1 + $0x10c] ss:$16 sps:$4 sm:$0xff]   ;;  %v8062_v3 = vld [vmem:[%s11103_s1 + $0x100] ss:$16 sps:$4 sm:$0xff]  }
 0x1bb   :  { %v8063_v4 = vld [vmem:[%s11103_s1 + $0x108] ss:$16 sps:$4 sm:$0xff]   ;;  %v8064_v5 = vld [vmem:[%s11103_s1 + $0x124] ss:$16 sps:$4 sm:$0xff]   ;;  %v8066_v6 = vld [vmem:[%s11103_s1 + $0x12c] ss:$16 sps:$4 sm:$0xff]  }
 0x1bc   :  { %v8068_v7 = vld [vmem:[%s11103_s1 + $0x120] ss:$16 sps:$4 sm:$0xff]   ;;  %v8069_v8 = vld [vmem:[%s11103_s1 + $0x128] ss:$16 sps:$4 sm:$0xff]   ;;  %v8070_v9 = vld [vmem:[%s11103_s1 + $0x144] ss:$16 sps:$4 sm:$0xff]  }
 0x1bd   :  { %5881 = vmatpush1.bf16.msra.mxu0 %v8032_v47  ;;  %6045 = vmatpush1.bf16.msra.mxu1 %v8033_v48  ;;  %v8072_v10 = vld [vmem:[%s11103_s1 + $0x14c] ss:$16 sps:$4 sm:$0xff]   ;;  %v8074_v11 = vld [vmem:[%s11103_s1 + $0x140] ss:$16 sps:$4 sm:$0xff]   ;;  %v8075_v12 = vld [vmem:[%s11103_s1 + $0x148] ss:$16 sps:$4 sm:$0xff]  }
 0x1be   :  { %5882 = vmatprep.subr.bf16.mxu0 %v8034_v49  ;;  %6046 = vmatprep.subr.bf16.mxu1 %v8036_v50  ;;  %v8076_v13 = vld [vmem:[%s11103_s1 + $0x164] ss:$16 sps:$4 sm:$0xff]   ;;  %v8078_v14 = vld [vmem:[%s11103_s1 + $0x16c] ss:$16 sps:$4 sm:$0xff]   ;;  %v8080_v16 = vld [vmem:[%s11103_s1 + $0x160] ss:$16 sps:$4 sm:$0xff]  }
 0x1bf   :  { %v4284_v15 = vld [vmem:[%s11102_s0] sm:$0xff]  ;;  %v8081_v18 = vld [vmem:[%s11103_s1 + $0x168] ss:$16 sps:$4 sm:$0xff]   ;;  %v8084_v20 = vld [vmem:[%s11103_s1 + $0x18c] ss:$16 sps:$4 sm:$0xff]  }
 0x1c0   :  { %v7574_v17 = vcombine.high %v4284_v15, %v4284_v15  ;;  %v8082_v19 = vld [vmem:[%s11103_s1 + $0x184] ss:$16 sps:$4 sm:$0xff]   ;;  %v8086_v21 = vld [vmem:[%s11103_s1 + $0x180] ss:$16 sps:$4 sm:$0xff]   ;;  %v8087_v22 = vld [vmem:[%s11103_s1 + $0x188] ss:$16 sps:$4 sm:$0xff]   ;;  %v7573_v37 = vcombine.low %v4284_v15, %v4284_v15 }
 0x1c1   :  { %5883 = vmatpush1.bf16.msra.mxu0 %v8038_v51  ;;  %6047 = vmatpush1.bf16.msra.mxu1 %v8039_v52  ;;  %v8088_v23 = vld [vmem:[%s11103_s1 + $0x1a4] ss:$16 sps:$4 sm:$0xff]   ;;  %v8090_v24 = vld [vmem:[%s11103_s1 + $0x1ac] ss:$16 sps:$4 sm:$0xff]   ;;  %v8092_v25 = vld [vmem:[%s11103_s1 + $0x1a0] ss:$16 sps:$4 sm:$0xff]  }
 0x1c2   :  { %5884 = vmatprep.subr.bf16.mxu0 %v8040_v53  ;;  %6048 = vmatprep.subr.bf16.mxu1 %v8042_v54  ;;  %v8093_v26 = vld [vmem:[%s11103_s1 + $0x1a8] ss:$16 sps:$4 sm:$0xff]   ;;  %v8094_v27 = vld [vmem:[%s11103_s1 + $0x1c4] ss:$16 sps:$4 sm:$0xff]   ;;  %v8096_v28 = vld [vmem:[%s11103_s1 + $0x1cc] ss:$16 sps:$4 sm:$0xff]  }
 0x1c3   :  { %5906 = vmatprep.mubr.bf16.mxu0 %v7574_v17  ;;  %6070 = vmatprep.mubr.bf16.mxu1 %v7574_v17  ;;  %v8098_v29 = vld [vmem:[%s11103_s1 + $0x1c0] ss:$16 sps:$4 sm:$0xff]   ;;  %v8099_v30 = vld [vmem:[%s11103_s1 + $0x1c8] ss:$16 sps:$4 sm:$0xff]   ;;  %v8100_v31 = vld [vmem:[%s11103_s1 + $0x1e4] ss:$16 sps:$4 sm:$0xff]  }
 0x1c4   :  { %v8102_v32 = vld [vmem:[%s11103_s1 + $0x1ec] ss:$16 sps:$4 sm:$0xff]   ;;  %v8104_v33 = vld [vmem:[%s11103_s1 + $0x1e0] ss:$16 sps:$4 sm:$0xff]   ;;  %v8105_v34 = vld [vmem:[%s11103_s1 + $0x1e8] ss:$16 sps:$4 sm:$0xff]  }
 0x1c5   :  { %5885 = vmatpush1.bf16.msra.mxu0 %v8044_v55  ;;  %6049 = vmatpush1.bf16.msra.mxu1 %v8045_v56  ;;  %v8110_v35 = vld [vmem:[%s11103_s1 + $0x204] ss:$16 sps:$4 sm:$0xff]   ;;  %v8113_v36 = vld [vmem:[%s11103_s1 + $0x20c] ss:$16 sps:$4 sm:$0xff]   ;;  %v8108_v38 = vld [vmem:[%s11103_s1 + $0x200] ss:$16 sps:$4 sm:$0xff]  }
 0x1c6   :  { %5886 = vmatprep.subr.bf16.mxu0 %v8046_v57  ;;  %6050 = vmatprep.subr.bf16.mxu1 %v8048_v58  ;;  %v8111_v39 = vld [vmem:[%s11103_s1 + $0x208] ss:$16 sps:$4 sm:$0xff]   ;;  %v8116_v40 = vld [vmem:[%s11103_s1 + $0x224] ss:$16 sps:$4 sm:$0xff]   ;;  %v8119_v41 = vld [vmem:[%s11103_s1 + $0x22c] ss:$16 sps:$4 sm:$0xff]  }
 0x1c7   :  { %v8114_v42 = vld [vmem:[%s11103_s1 + $0x220] ss:$16 sps:$4 sm:$0xff]   ;;  %v8117_v43 = vld [vmem:[%s11103_s1 + $0x228] ss:$16 sps:$4 sm:$0xff]   ;;  %v8122_v44 = vld [vmem:[%s11103_s1 + $0x244] ss:$16 sps:$4 sm:$0xff]  }
 0x1c8   :  { %v8125_v45 = vld [vmem:[%s11103_s1 + $0x24c] ss:$16 sps:$4 sm:$0xff]   ;;  %v8120_v46 = vld [vmem:[%s11103_s1 + $0x240] ss:$16 sps:$4 sm:$0xff]   ;;  %v8123_v47 = vld [vmem:[%s11103_s1 + $0x248] ss:$16 sps:$4 sm:$0xff]  }
 0x1c9   :  { %5887 = vmatpush1.bf16.msra.mxu0 %v8050_v59  ;;  %6051 = vmatpush1.bf16.msra.mxu1 %v8051_v60  ;;  %v8128_v48 = vld [vmem:[%s11103_s1 + $0x264] ss:$16 sps:$4 sm:$0xff]   ;;  %v8131_v49 = vld [vmem:[%s11103_s1 + $0x26c] ss:$16 sps:$4 sm:$0xff]   ;;  %v8126_v50 = vld [vmem:[%s11103_s1 + $0x260] ss:$16 sps:$4 sm:$0xff]  }
 0x1ca   :  { %5888 = vmatprep.subr.bf16.mxu0 %v8052_v61  ;;  %6052 = vmatprep.subr.bf16.mxu1 %v8054_v62  ;;  %v8129_v51 = vld [vmem:[%s11103_s1 + $0x268] ss:$16 sps:$4 sm:$0xff]   ;;  %v8134_v52 = vld [vmem:[%s11103_s1 + $0x284] ss:$16 sps:$4 sm:$0xff]   ;;  %v8137_v53 = vld [vmem:[%s11103_s1 + $0x28c] ss:$16 sps:$4 sm:$0xff]  }
 0x1cb   :  { %v8132_v54 = vld [vmem:[%s11103_s1 + $0x280] ss:$16 sps:$4 sm:$0xff]   ;;  %v8135_v55 = vld [vmem:[%s11103_s1 + $0x288] ss:$16 sps:$4 sm:$0xff]   ;;  %v8140_v56 = vld [vmem:[%s11103_s1 + $0x2a4] ss:$16 sps:$4 sm:$0xff]  }
 0x1cc   :  { %v8143_v57 = vld [vmem:[%s11103_s1 + $0x2ac] ss:$16 sps:$4 sm:$0xff]   ;;  %v8138_v58 = vld [vmem:[%s11103_s1 + $0x2a0] ss:$16 sps:$4 sm:$0xff]   ;;  %v8141_v59 = vld [vmem:[%s11103_s1 + $0x2a8] ss:$16 sps:$4 sm:$0xff]  }
 0x1cd   :  { %5889 = vmatpush1.bf16.msra.mxu0 %v8056_v63  ;;  %6053 = vmatpush1.bf16.msra.mxu1 %v8057_v0  ;;  %v8146_v60 = vld [vmem:[%s11103_s1 + $0x2c4] ss:$16 sps:$4 sm:$0xff]   ;;  %v8149_v61 = vld [vmem:[%s11103_s1 + $0x2cc] ss:$16 sps:$4 sm:$0xff]   ;;  %v8144_v0 = vld [vmem:[%s11103_s1 + $0x2c0] ss:$16 sps:$4 sm:$0xff]  }
 0x1ce   :  { %5890 = vmatprep.subr.bf16.mxu0 %v8058_v1  ;;  %6054 = vmatprep.subr.bf16.mxu1 %v8060_v2  ;;  %v10481_v62 = vld [vmem:[%s11102_s0 + $0x8] sm:$0xff]  ;;  %v8152_v2 = vld [vmem:[%s11103_s1 + $0x2e4] ss:$16 sps:$4 sm:$0xff]  }
 0x1cf   :  { %v7576_v63 = vcombine.high %v10481_v62, %v10481_v62  ;;  %v8147_v1 = vld [vmem:[%s11103_s1 + $0x2c8] ss:$16 sps:$4 sm:$0xff]   ;;  %v8173_v15 = vld [vmem:[%s11103_s1 + $0x34c] ss:$16 sps:$4 sm:$0xff]  }
 0x1d0   :  { %v8171_v17 = vld [vmem:[%s11103_s1 + $0x348] ss:$16 sps:$4 sm:$0xff]  }
 0x1d1   :  { %5891 = vmatpush1.bf16.msra.mxu0 %v8062_v3  ;;  %6055 = vmatpush1.bf16.msra.mxu1 %v8063_v4  ;;  %v8155_v3 = vld [vmem:[%s11103_s1 + $0x2ec] ss:$16 sps:$4 sm:$0xff]   ;;  %v8150_v4 = vld [vmem:[%s11103_s1 + $0x2e0] ss:$16 sps:$4 sm:$0xff]  }
 0x1d2   :  { %5892 = vmatprep.subr.bf16.mxu0 %v8064_v5  ;;  %6056 = vmatprep.subr.bf16.mxu1 %v8066_v6  ;;  %v8153_v5 = vld [vmem:[%s11103_s1 + $0x2e8] ss:$16 sps:$4 sm:$0xff]   ;;  %v8158_v6 = vld [vmem:[%s11103_s1 + $0x304] ss:$16 sps:$4 sm:$0xff]  }
 0x1d5   :  { %5893 = vmatpush1.bf16.msra.mxu0 %v8068_v7  ;;  %6057 = vmatpush1.bf16.msra.mxu1 %v8069_v8  ;;  %v8161_v7 = vld [vmem:[%s11103_s1 + $0x30c] ss:$16 sps:$4 sm:$0xff]   ;;  %v8156_v8 = vld [vmem:[%s11103_s1 + $0x300] ss:$16 sps:$4 sm:$0xff]  }
 0x1d6   :  { %5894 = vmatprep.subr.bf16.mxu0 %v8070_v9  ;;  %6058 = vmatprep.subr.bf16.mxu1 %v8072_v10  ;;  %v8159_v9 = vld [vmem:[%s11103_s1 + $0x308] ss:$16 sps:$4 sm:$0xff]   ;;  %v8164_v10 = vld [vmem:[%s11103_s1 + $0x324] ss:$16 sps:$4 sm:$0xff]  }
 0x1d9   :  { %5895 = vmatpush1.bf16.msra.mxu0 %v8074_v11  ;;  %6059 = vmatpush1.bf16.msra.mxu1 %v8075_v12  ;;  %v8167_v11 = vld [vmem:[%s11103_s1 + $0x32c] ss:$16 sps:$4 sm:$0xff]   ;;  %v8162_v12 = vld [vmem:[%s11103_s1 + $0x320] ss:$16 sps:$4 sm:$0xff]  }
 0x1da   :  { %5896 = vmatprep.subr.bf16.mxu0 %v8076_v13  ;;  %6060 = vmatprep.subr.bf16.mxu1 %v8078_v14  ;;  %v8165_v13 = vld [vmem:[%s11103_s1 + $0x328] ss:$16 sps:$4 sm:$0xff]   ;;  %v8170_v14 = vld [vmem:[%s11103_s1 + $0x344] ss:$16 sps:$4 sm:$0xff]  }
 0x1dd   :  { %5897 = vmatpush1.bf16.msra.mxu0 %v8080_v16  ;;  %6061 = vmatpush1.bf16.msra.mxu1 %v8081_v18  ;;  %v8168_v16 = vld [vmem:[%s11103_s1 + $0x340] ss:$16 sps:$4 sm:$0xff]   ;;  %v8176_v18 = vld [vmem:[%s11103_s1 + $0x364] ss:$16 sps:$4 sm:$0xff]  }
 0x1de   :  { %5898 = vmatprep.subr.bf16.mxu0 %v8082_v19  ;;  %6062 = vmatprep.subr.bf16.mxu1 %v8084_v20  ;;  %v8179_v19 = vld [vmem:[%s11103_s1 + $0x36c] ss:$16 sps:$4 sm:$0xff]   ;;  %v8174_v20 = vld [vmem:[%s11103_s1 + $0x360] ss:$16 sps:$4 sm:$0xff]  }
 0x1e1   :  { %5899 = vmatpush1.bf16.msra.mxu0 %v8086_v21  ;;  %6063 = vmatpush1.bf16.msra.mxu1 %v8087_v22  ;;  %v8177_v21 = vld [vmem:[%s11103_s1 + $0x368] ss:$16 sps:$4 sm:$0xff]   ;;  %v8182_v22 = vld [vmem:[%s11103_s1 + $0x384] ss:$16 sps:$4 sm:$0xff]  }
 0x1e2   :  { %5900 = vmatprep.subr.bf16.mxu0 %v8088_v23  ;;  %6064 = vmatprep.subr.bf16.mxu1 %v8090_v24  ;;  %v8185_v23 = vld [vmem:[%s11103_s1 + $0x38c] ss:$16 sps:$4 sm:$0xff]   ;;  %v8180_v24 = vld [vmem:[%s11103_s1 + $0x380] ss:$16 sps:$4 sm:$0xff]  }
 0x1e5   :  { %5901 = vmatpush1.bf16.msra.mxu0 %v8092_v25  ;;  %6065 = vmatpush1.bf16.msra.mxu1 %v8093_v26  ;;  %v8183_v25 = vld [vmem:[%s11103_s1 + $0x388] ss:$16 sps:$4 sm:$0xff]   ;;  %v8188_v26 = vld [vmem:[%s11103_s1 + $0x3a4] ss:$16 sps:$4 sm:$0xff]  }
 0x1e6   :  { %5902 = vmatprep.subr.bf16.mxu0 %v8094_v27  ;;  %6066 = vmatprep.subr.bf16.mxu1 %v8096_v28  ;;  %v8191_v27 = vld [vmem:[%s11103_s1 + $0x3ac] ss:$16 sps:$4 sm:$0xff]   ;;  %v8186_v28 = vld [vmem:[%s11103_s1 + $0x3a0] ss:$16 sps:$4 sm:$0xff]  }
 0x1e9   :  { %5903 = vmatpush1.bf16.msra.mxu0 %v8098_v29  ;;  %6067 = vmatpush1.bf16.msra.mxu1 %v8099_v30  ;;  %v8189_v29 = vld [vmem:[%s11103_s1 + $0x3a8] ss:$16 sps:$4 sm:$0xff]   ;;  %v8194_v30 = vld [vmem:[%s11103_s1 + $0x3c4] ss:$16 sps:$4 sm:$0xff]  }
 0x1ea   :  { %5904 = vmatprep.subr.bf16.mxu0 %v8100_v31  ;;  %6068 = vmatprep.subr.bf16.mxu1 %v8102_v32  ;;  %v8197_v31 = vld [vmem:[%s11103_s1 + $0x3cc] ss:$16 sps:$4 sm:$0xff]   ;;  %v8192_v32 = vld [vmem:[%s11103_s1 + $0x3c0] ss:$16 sps:$4 sm:$0xff]  }
 0x1ed   :  { %5905 = vmatpush1.bf16.msra.mxu0 %v8104_v33  ;;  %6069 = vmatpush1.bf16.msra.mxu1 %v8105_v34  ;;  %v8195_v33 = vld [vmem:[%s11103_s1 + $0x3c8] ss:$16 sps:$4 sm:$0xff]   ;;  %v8200_v34 = vld [vmem:[%s11103_s1 + $0x3e4] ss:$16 sps:$4 sm:$0xff]  }
 0x1ee   :  { %5915 = vmatprep.subr.bf16.mxu0 %v8110_v35  ;;  %6079 = vmatprep.subr.bf16.mxu1 %v8113_v36  ;;  %v8203_v35 = vld [vmem:[%s11103_s1 + $0x3ec] ss:$16 sps:$4 sm:$0xff]   ;;  %v8198_v36 = vld [vmem:[%s11103_s1 + $0x3e0] ss:$16 sps:$4 sm:$0xff]  }
 0x1f0   :  { %5907 = vmatmul.mubr.bf16.vlgmr.msra.gmra.mrb[0].mxu0 %v7573_v37  ;;  %6071 = vmatmul.mubr.bf16.vlgmr.msra.gmra.mrb[0].mxu1 %v7573_v37  ;;  %v8201_v37 = vld [vmem:[%s11103_s1 + $0x3e8] ss:$16 sps:$4 sm:$0xff]  }
 0x1f1   :  { %5916 = vmatpush1.bf16.msra.mxu0 %v8108_v38  ;;  %6080 = vmatpush1.bf16.msra.mxu1 %v8111_v39  ;;  %v8208_v38 = vld [vmem:[%s11103_s1 + $0x404] ss:$16 sps:$4 sm:$0xff]   ;;  %v8211_v39 = vld [vmem:[%s11103_s1 + $0x40c] ss:$16 sps:$4 sm:$0xff]  }
 0x1f2   :  { %5917 = vmatprep.subr.bf16.mxu0 %v8116_v40  ;;  %6081 = vmatprep.subr.bf16.mxu1 %v8119_v41  ;;  %v7575_v40 = vcombine.low %v10481_v62, %v10481_v62  ;;  %v8206_v41 = vld [vmem:[%s11103_s1 + $0x400] ss:$16 sps:$4 sm:$0xff]   ;;  %v8241_v62 = vld [vmem:[%s11103_s1 + $0x4ac] ss:$16 sps:$4 sm:$0xff]  }
 0x1f3   :  { %5947 = vmatprep.mubr.bf16.mxu0 %v7576_v63  ;;  %6111 = vmatprep.mubr.bf16.mxu1 %v7576_v63  ;;  %v8236_v63 = vld [vmem:[%s11103_s1 + $0x4a0] ss:$16 sps:$4 sm:$0xff]  }
 0x1f5   :  { %5918 = vmatpush1.bf16.msra.mxu0 %v8114_v42  ;;  %6082 = vmatpush1.bf16.msra.mxu1 %v8117_v43  ;;  %v8209_v42 = vld [vmem:[%s11103_s1 + $0x408] ss:$16 sps:$4 sm:$0xff]   ;;  %v8214_v43 = vld [vmem:[%s11103_s1 + $0x424] ss:$16 sps:$4 sm:$0xff]  }
 0x1f6   :  { %5919 = vmatprep.subr.bf16.mxu0 %v8122_v44  ;;  %6083 = vmatprep.subr.bf16.mxu1 %v8125_v45  ;;  %v10619_v44 = vld [vmem:[%s11102_s0 + $0x10] sm:$0xff]  ;;  %v8217_v45 = vld [vmem:[%s11103_s1 + $0x42c] ss:$16 sps:$4 sm:$0xff]  }
 0x1f9   :  { %5920 = vmatpush1.bf16.msra.mxu0 %v8120_v46  ;;  %6084 = vmatpush1.bf16.msra.mxu1 %v8123_v47  ;;  %v7578_v46 = vcombine.high %v10619_v44, %v10619_v44  ;;  %v8212_v47 = vld [vmem:[%s11103_s1 + $0x420] ss:$16 sps:$4 sm:$0xff]  }
 0x1fa   :  { %5921 = vmatprep.subr.bf16.mxu0 %v8128_v48  ;;  %6085 = vmatprep.subr.bf16.mxu1 %v8131_v49  ;;  %v8215_v48 = vld [vmem:[%s11103_s1 + $0x428] ss:$16 sps:$4 sm:$0xff]   ;;  %v8220_v49 = vld [vmem:[%s11103_s1 + $0x444] ss:$16 sps:$4 sm:$0xff]  }
 0x1fd   :  { %5922 = vmatpush1.bf16.msra.mxu0 %v8126_v50  ;;  %6086 = vmatpush1.bf16.msra.mxu1 %v8129_v51  ;;  %v8223_v50 = vld [vmem:[%s11103_s1 + $0x44c] ss:$16 sps:$4 sm:$0xff]   ;;  %v8218_v51 = vld [vmem:[%s11103_s1 + $0x440] ss:$16 sps:$4 sm:$0xff]  }
 0x1fe   :  { %5923 = vmatprep.subr.bf16.mxu0 %v8134_v52  ;;  %6087 = vmatprep.subr.bf16.mxu1 %v8137_v53  ;;  %v8221_v52 = vld [vmem:[%s11103_s1 + $0x448] ss:$16 sps:$4 sm:$0xff]   ;;  %v8226_v53 = vld [vmem:[%s11103_s1 + $0x464] ss:$16 sps:$4 sm:$0xff]  }
 0x201   :  { %5924 = vmatpush1.bf16.msra.mxu0 %v8132_v54  ;;  %6088 = vmatpush1.bf16.msra.mxu1 %v8135_v55  ;;  %v8229_v54 = vld [vmem:[%s11103_s1 + $0x46c] ss:$16 sps:$4 sm:$0xff]   ;;  %v8224_v55 = vld [vmem:[%s11103_s1 + $0x460] ss:$16 sps:$4 sm:$0xff]  }
 0x202   :  { %5925 = vmatprep.subr.bf16.mxu0 %v8140_v56  ;;  %6089 = vmatprep.subr.bf16.mxu1 %v8143_v57  ;;  %v8227_v56 = vld [vmem:[%s11103_s1 + $0x468] ss:$16 sps:$4 sm:$0xff]   ;;  %v8232_v57 = vld [vmem:[%s11103_s1 + $0x484] ss:$16 sps:$4 sm:$0xff]  }
 0x205   :  { %5926 = vmatpush1.bf16.msra.mxu0 %v8138_v58  ;;  %6090 = vmatpush1.bf16.msra.mxu1 %v8141_v59  ;;  %v8235_v58 = vld [vmem:[%s11103_s1 + $0x48c] ss:$16 sps:$4 sm:$0xff]   ;;  %v8230_v59 = vld [vmem:[%s11103_s1 + $0x480] ss:$16 sps:$4 sm:$0xff]  }
 0x206   :  { %5927 = vmatprep.subr.bf16.mxu0 %v8146_v60  ;;  %6091 = vmatprep.subr.bf16.mxu1 %v8149_v61  ;;  %v8233_v60 = vld [vmem:[%s11103_s1 + $0x488] ss:$16 sps:$4 sm:$0xff]   ;;  %v8238_v61 = vld [vmem:[%s11103_s1 + $0x4a4] ss:$16 sps:$4 sm:$0xff]  }
 0x209   :  { %5928 = vmatpush1.bf16.msra.mxu0 %v8144_v0  ;;  %6092 = vmatpush1.bf16.msra.mxu1 %v8147_v1  ;;  %v8239_v0 = vld [vmem:[%s11103_s1 + $0x4a8] ss:$16 sps:$4 sm:$0xff]   ;;  %v8244_v1 = vld [vmem:[%s11103_s1 + $0x4c4] ss:$16 sps:$4 sm:$0xff]  }
 0x20a   :  { %5929 = vmatprep.subr.bf16.mxu0 %v8152_v2  ;;  %6093 = vmatprep.subr.bf16.mxu1 %v8155_v3  ;;  %v8247_v2 = vld [vmem:[%s11103_s1 + $0x4cc] ss:$16 sps:$4 sm:$0xff]   ;;  %v8242_v3 = vld [vmem:[%s11103_s1 + $0x4c0] ss:$16 sps:$4 sm:$0xff]  }
 0x20d   :  { %5930 = vmatpush1.bf16.msra.mxu0 %v8150_v4  ;;  %6094 = vmatpush1.bf16.msra.mxu1 %v8153_v5  ;;  %v8245_v4 = vld [vmem:[%s11103_s1 + $0x4c8] ss:$16 sps:$4 sm:$0xff]   ;;  %v8250_v5 = vld [vmem:[%s11103_s1 + $0x4e4] ss:$16 sps:$4 sm:$0xff]  }
 0x20e   :  { %5931 = vmatprep.subr.bf16.mxu0 %v8158_v6  ;;  %6095 = vmatprep.subr.bf16.mxu1 %v8161_v7  ;;  %v8253_v6 = vld [vmem:[%s11103_s1 + $0x4ec] ss:$16 sps:$4 sm:$0xff]   ;;  %v8248_v7 = vld [vmem:[%s11103_s1 + $0x4e0] ss:$16 sps:$4 sm:$0xff]  }
 0x211   :  { %5932 = vmatpush1.bf16.msra.mxu0 %v8156_v8  ;;  %6096 = vmatpush1.bf16.msra.mxu1 %v8159_v9  ;;  %v8251_v8 = vld [vmem:[%s11103_s1 + $0x4e8] ss:$16 sps:$4 sm:$0xff]   ;;  %v8256_v9 = vld [vmem:[%s11103_s1 + $0x504] ss:$16 sps:$4 sm:$0xff]  }
 0x212   :  { %5933 = vmatprep.subr.bf16.mxu0 %v8164_v10  ;;  %6097 = vmatprep.subr.bf16.mxu1 %v8167_v11  ;;  %v8259_v10 = vld [vmem:[%s11103_s1 + $0x50c] ss:$16 sps:$4 sm:$0xff]   ;;  %v8254_v11 = vld [vmem:[%s11103_s1 + $0x500] ss:$16 sps:$4 sm:$0xff]  }
 0x215   :  { %5934 = vmatpush1.bf16.msra.mxu0 %v8162_v12  ;;  %6098 = vmatpush1.bf16.msra.mxu1 %v8165_v13  ;;  %v8257_v12 = vld [vmem:[%s11103_s1 + $0x508] ss:$16 sps:$4 sm:$0xff]   ;;  %v8262_v13 = vld [vmem:[%s11103_s1 + $0x524] ss:$16 sps:$4 sm:$0xff]  }
 0x216   :  { %5935 = vmatprep.subr.bf16.mxu0 %v8170_v14  ;;  %6099 = vmatprep.subr.bf16.mxu1 %v8173_v15  ;;  %v8265_v14 = vld [vmem:[%s11103_s1 + $0x52c] ss:$16 sps:$4 sm:$0xff]   ;;  %v8260_v15 = vld [vmem:[%s11103_s1 + $0x520] ss:$16 sps:$4 sm:$0xff]  }
 0x219   :  { %5936 = vmatpush1.bf16.msra.mxu0 %v8168_v16  ;;  %6100 = vmatpush1.bf16.msra.mxu1 %v8171_v17  ;;  %v8263_v16 = vld [vmem:[%s11103_s1 + $0x528] ss:$16 sps:$4 sm:$0xff]   ;;  %v8268_v17 = vld [vmem:[%s11103_s1 + $0x544] ss:$16 sps:$4 sm:$0xff]  }
 0x21a   :  { %5937 = vmatprep.subr.bf16.mxu0 %v8176_v18  ;;  %6101 = vmatprep.subr.bf16.mxu1 %v8179_v19  ;;  %v8271_v18 = vld [vmem:[%s11103_s1 + $0x54c] ss:$16 sps:$4 sm:$0xff]   ;;  %v8266_v19 = vld [vmem:[%s11103_s1 + $0x540] ss:$16 sps:$4 sm:$0xff]  }
 0x21d   :  { %5938 = vmatpush1.bf16.msra.mxu0 %v8174_v20  ;;  %6102 = vmatpush1.bf16.msra.mxu1 %v8177_v21  ;;  %v8269_v20 = vld [vmem:[%s11103_s1 + $0x548] ss:$16 sps:$4 sm:$0xff]   ;;  %v8274_v21 = vld [vmem:[%s11103_s1 + $0x564] ss:$16 sps:$4 sm:$0xff]  }
 0x21e   :  { %5939 = vmatprep.subr.bf16.mxu0 %v8182_v22  ;;  %6103 = vmatprep.subr.bf16.mxu1 %v8185_v23  ;;  %v8277_v22 = vld [vmem:[%s11103_s1 + $0x56c] ss:$16 sps:$4 sm:$0xff]   ;;  %v8272_v23 = vld [vmem:[%s11103_s1 + $0x560] ss:$16 sps:$4 sm:$0xff]  }
 0x221   :  { %5940 = vmatpush1.bf16.msra.mxu0 %v8180_v24  ;;  %6104 = vmatpush1.bf16.msra.mxu1 %v8183_v25  ;;  %v8275_v24 = vld [vmem:[%s11103_s1 + $0x568] ss:$16 sps:$4 sm:$0xff]   ;;  %v8280_v25 = vld [vmem:[%s11103_s1 + $0x584] ss:$16 sps:$4 sm:$0xff]  }
 0x222   :  { %5941 = vmatprep.subr.bf16.mxu0 %v8188_v26  ;;  %6105 = vmatprep.subr.bf16.mxu1 %v8191_v27  ;;  %v8283_v26 = vld [vmem:[%s11103_s1 + $0x58c] ss:$16 sps:$4 sm:$0xff]   ;;  %v8278_v27 = vld [vmem:[%s11103_s1 + $0x580] ss:$16 sps:$4 sm:$0xff]  }
 0x225   :  { %5942 = vmatpush1.bf16.msra.mxu0 %v8186_v28  ;;  %6106 = vmatpush1.bf16.msra.mxu1 %v8189_v29  ;;  %v8281_v28 = vld [vmem:[%s11103_s1 + $0x588] ss:$16 sps:$4 sm:$0xff]   ;;  %v8286_v29 = vld [vmem:[%s11103_s1 + $0x5a4] ss:$16 sps:$4 sm:$0xff]  }
 0x226   :  { %5943 = vmatprep.subr.bf16.mxu0 %v8194_v30  ;;  %6107 = vmatprep.subr.bf16.mxu1 %v8197_v31  ;;  %v8289_v30 = vld [vmem:[%s11103_s1 + $0x5ac] ss:$16 sps:$4 sm:$0xff]   ;;  %v8284_v31 = vld [vmem:[%s11103_s1 + $0x5a0] ss:$16 sps:$4 sm:$0xff]  }
 0x229   :  { %5944 = vmatpush1.bf16.msra.mxu0 %v8192_v32  ;;  %6108 = vmatpush1.bf16.msra.mxu1 %v8195_v33  ;;  %v8287_v32 = vld [vmem:[%s11103_s1 + $0x5a8] ss:$16 sps:$4 sm:$0xff]   ;;  %v8292_v33 = vld [vmem:[%s11103_s1 + $0x5c4] ss:$16 sps:$4 sm:$0xff]  }
 0x22a   :  { %5945 = vmatprep.subr.bf16.mxu0 %v8200_v34  ;;  %6109 = vmatprep.subr.bf16.mxu1 %v8203_v35  ;;  %v8295_v34 = vld [vmem:[%s11103_s1 + $0x5cc] ss:$16 sps:$4 sm:$0xff]   ;;  %v8290_v35 = vld [vmem:[%s11103_s1 + $0x5c0] ss:$16 sps:$4 sm:$0xff]  }
 0x22d   :  { %5946 = vmatpush1.bf16.msra.mxu0 %v8198_v36  ;;  %6110 = vmatpush1.bf16.msra.mxu1 %v8201_v37  ;;  %v8293_v36 = vld [vmem:[%s11103_s1 + $0x5c8] ss:$16 sps:$4 sm:$0xff]   ;;  %v8298_v37 = vld [vmem:[%s11103_s1 + $0x5e4] ss:$16 sps:$4 sm:$0xff]  }
 0x22e   :  { %5956 = vmatprep.subr.bf16.mxu0 %v8208_v38  ;;  %6120 = vmatprep.subr.bf16.mxu1 %v8211_v39  ;;  %v8301_v38 = vld [vmem:[%s11103_s1 + $0x5ec] ss:$16 sps:$4 sm:$0xff]   ;;  %v8296_v39 = vld [vmem:[%s11103_s1 + $0x5e0] ss:$16 sps:$4 sm:$0xff]  }
 0x230   :  { %5948 = vmatmul.mubr.bf16.vlgmr.msra.gmra.mrb[0].mxu0 %v7575_v40  ;;  %6112 = vmatmul.mubr.bf16.vlgmr.msra.gmra.mrb[0].mxu1 %v7575_v40  ;;  %v8299_v40 = vld [vmem:[%s11103_s1 + $0x5e8] ss:$16 sps:$4 sm:$0xff]  }
 0x231   :  { %5957 = vmatpush1.bf16.msra.mxu0 %v8206_v41  ;;  %6121 = vmatpush1.bf16.msra.mxu1 %v8209_v42  ;;  %v8306_v41 = vld [vmem:[%s11103_s1 + $0x604] ss:$16 sps:$4 sm:$0xff]   ;;  %v8304_v42 = vld [vmem:[%s11103_s1 + $0x600] ss:$16 sps:$4 sm:$0xff]  }
 0x232   :  { %5958 = vmatprep.subr.bf16.mxu0 %v8214_v43  ;;  %6122 = vmatprep.subr.bf16.mxu1 %v8217_v45  ;;  %v8309_v43 = vld [vmem:[%s11103_s1 + $0x60c] ss:$16 sps:$4 sm:$0xff]   ;;  %v7577_v45 = vcombine.low %v10619_v44, %v10619_v44  ;;  %v8310_v44 = vld [vmem:[%s11103_s1 + $0x620] ss:$16 sps:$4 sm:$0xff]  }
 0x233   :  { %5988 = vmatprep.mubr.bf16.mxu0 %v7578_v46  ;;  %6152 = vmatprep.mubr.bf16.mxu1 %v7578_v46  ;;  %v10814_v46 = vld [vmem:[%s11102_s0 + $0x18] sm:$0xff] }
 0x235   :  { %5959 = vmatpush1.bf16.msra.mxu0 %v8212_v47  ;;  %6123 = vmatpush1.bf16.msra.mxu1 %v8215_v48  ;;  %v8307_v47 = vld [vmem:[%s11103_s1 + $0x608] ss:$16 sps:$4 sm:$0xff]   ;;  %v8312_v48 = vld [vmem:[%s11103_s1 + $0x624] ss:$16 sps:$4 sm:$0xff]  }
 0x236   :  { %5960 = vmatprep.subr.bf16.mxu0 %v8220_v49  ;;  %6124 = vmatprep.subr.bf16.mxu1 %v8223_v50  ;;  %v8315_v49 = vld [vmem:[%s11103_s1 + $0x62c] ss:$16 sps:$4 sm:$0xff]   ;;  %v7580_v50 = vcombine.high %v10814_v46, %v10814_v46 }
 0x239   :  { %5961 = vmatpush1.bf16.msra.mxu0 %v8218_v51  ;;  %6125 = vmatpush1.bf16.msra.mxu1 %v8221_v52  ;;  %v8313_v51 = vld [vmem:[%s11103_s1 + $0x628] ss:$16 sps:$4 sm:$0xff]   ;;  %v8318_v52 = vld [vmem:[%s11103_s1 + $0x644] ss:$16 sps:$4 sm:$0xff]  }
 0x23a   :  { %5962 = vmatprep.subr.bf16.mxu0 %v8226_v53  ;;  %6126 = vmatprep.subr.bf16.mxu1 %v8229_v54  ;;  %v8321_v53 = vld [vmem:[%s11103_s1 + $0x64c] ss:$16 sps:$4 sm:$0xff]   ;;  %v8316_v54 = vld [vmem:[%s11103_s1 + $0x640] ss:$16 sps:$4 sm:$0xff]  }
 0x23d   :  { %5963 = vmatpush1.bf16.msra.mxu0 %v8224_v55  ;;  %6127 = vmatpush1.bf16.msra.mxu1 %v8227_v56  ;;  %v8319_v55 = vld [vmem:[%s11103_s1 + $0x648] ss:$16 sps:$4 sm:$0xff]   ;;  %v8324_v56 = vld [vmem:[%s11103_s1 + $0x664] ss:$16 sps:$4 sm:$0xff]  }
 0x23e   :  { %5964 = vmatprep.subr.bf16.mxu0 %v8232_v57  ;;  %6128 = vmatprep.subr.bf16.mxu1 %v8235_v58  ;;  %v8327_v57 = vld [vmem:[%s11103_s1 + $0x66c] ss:$16 sps:$4 sm:$0xff]   ;;  %v8322_v58 = vld [vmem:[%s11103_s1 + $0x660] ss:$16 sps:$4 sm:$0xff]  }
 0x241   :  { %5965 = vmatpush1.bf16.msra.mxu0 %v8230_v59  ;;  %6129 = vmatpush1.bf16.msra.mxu1 %v8233_v60  ;;  %v8325_v59 = vld [vmem:[%s11103_s1 + $0x668] ss:$16 sps:$4 sm:$0xff]   ;;  %v8330_v60 = vld [vmem:[%s11103_s1 + $0x684] ss:$16 sps:$4 sm:$0xff]  }
 0x242   :  { %5966 = vmatprep.subr.bf16.mxu0 %v8238_v61  ;;  %6130 = vmatprep.subr.bf16.mxu1 %v8241_v62  ;;  %v8333_v61 = vld [vmem:[%s11103_s1 + $0x68c] ss:$16 sps:$4 sm:$0xff]   ;;  %v8328_v62 = vld [vmem:[%s11103_s1 + $0x680] ss:$16 sps:$4 sm:$0xff]  }
 0x245   :  { %5967 = vmatpush1.bf16.msra.mxu0 %v8236_v63  ;;  %6131 = vmatpush1.bf16.msra.mxu1 %v8239_v0  ;;  %v8331_v63 = vld [vmem:[%s11103_s1 + $0x688] ss:$16 sps:$4 sm:$0xff]   ;;  %v8336_v0 = vld [vmem:[%s11103_s1 + $0x6a4] ss:$16 sps:$4 sm:$0xff]  }
 0x246   :  { %5968 = vmatprep.subr.bf16.mxu0 %v8244_v1  ;;  %6132 = vmatprep.subr.bf16.mxu1 %v8247_v2  ;;  %v8339_v1 = vld [vmem:[%s11103_s1 + $0x6ac] ss:$16 sps:$4 sm:$0xff]   ;;  %v8334_v2 = vld [vmem:[%s11103_s1 + $0x6a0] ss:$16 sps:$4 sm:$0xff]  }
 0x249   :  { %5969 = vmatpush1.bf16.msra.mxu0 %v8242_v3  ;;  %6133 = vmatpush1.bf16.msra.mxu1 %v8245_v4  ;;  %v8337_v3 = vld [vmem:[%s11103_s1 + $0x6a8] ss:$16 sps:$4 sm:$0xff]   ;;  %v8342_v4 = vld [vmem:[%s11103_s1 + $0x6c4] ss:$16 sps:$4 sm:$0xff]  }
 0x24a   :  { %5970 = vmatprep.subr.bf16.mxu0 %v8250_v5  ;;  %6134 = vmatprep.subr.bf16.mxu1 %v8253_v6  ;;  %v8345_v5 = vld [vmem:[%s11103_s1 + $0x6cc] ss:$16 sps:$4 sm:$0xff]   ;;  %v8340_v6 = vld [vmem:[%s11103_s1 + $0x6c0] ss:$16 sps:$4 sm:$0xff]  }
 0x24d   :  { %5971 = vmatpush1.bf16.msra.mxu0 %v8248_v7  ;;  %6135 = vmatpush1.bf16.msra.mxu1 %v8251_v8  ;;  %v8343_v7 = vld [vmem:[%s11103_s1 + $0x6c8] ss:$16 sps:$4 sm:$0xff]   ;;  %v8348_v8 = vld [vmem:[%s11103_s1 + $0x6e4] ss:$16 sps:$4 sm:$0xff]  }
 0x24e   :  { %5972 = vmatprep.subr.bf16.mxu0 %v8256_v9  ;;  %6136 = vmatprep.subr.bf16.mxu1 %v8259_v10  ;;  %v8351_v9 = vld [vmem:[%s11103_s1 + $0x6ec] ss:$16 sps:$4 sm:$0xff]   ;;  %v8346_v10 = vld [vmem:[%s11103_s1 + $0x6e0] ss:$16 sps:$4 sm:$0xff]  }
 0x251   :  { %5973 = vmatpush1.bf16.msra.mxu0 %v8254_v11  ;;  %6137 = vmatpush1.bf16.msra.mxu1 %v8257_v12  ;;  %v8349_v11 = vld [vmem:[%s11103_s1 + $0x6e8] ss:$16 sps:$4 sm:$0xff]   ;;  %v8354_v12 = vld [vmem:[%s11103_s1 + $0x704] ss:$16 sps:$4 sm:$0xff]  }
 0x252   :  { %5974 = vmatprep.subr.bf16.mxu0 %v8262_v13  ;;  %6138 = vmatprep.subr.bf16.mxu1 %v8265_v14  ;;  %v8357_v13 = vld [vmem:[%s11103_s1 + $0x70c] ss:$16 sps:$4 sm:$0xff]   ;;  %v8352_v14 = vld [vmem:[%s11103_s1 + $0x700] ss:$16 sps:$4 sm:$0xff]  }
 0x255   :  { %5975 = vmatpush1.bf16.msra.mxu0 %v8260_v15  ;;  %6139 = vmatpush1.bf16.msra.mxu1 %v8263_v16  ;;  %v8355_v15 = vld [vmem:[%s11103_s1 + $0x708] ss:$16 sps:$4 sm:$0xff]   ;;  %v8360_v16 = vld [vmem:[%s11103_s1 + $0x724] ss:$16 sps:$4 sm:$0xff]  }
 0x256   :  { %5976 = vmatprep.subr.bf16.mxu0 %v8268_v17  ;;  %6140 = vmatprep.subr.bf16.mxu1 %v8271_v18  ;;  %v8363_v17 = vld [vmem:[%s11103_s1 + $0x72c] ss:$16 sps:$4 sm:$0xff]   ;;  %v8358_v18 = vld [vmem:[%s11103_s1 + $0x720] ss:$16 sps:$4 sm:$0xff]  }
 0x259   :  { %5977 = vmatpush1.bf16.msra.mxu0 %v8266_v19  ;;  %6141 = vmatpush1.bf16.msra.mxu1 %v8269_v20  ;;  %v8361_v19 = vld [vmem:[%s11103_s1 + $0x728] ss:$16 sps:$4 sm:$0xff]   ;;  %v8366_v20 = vld [vmem:[%s11103_s1 + $0x744] ss:$16 sps:$4 sm:$0xff]  }
 0x25a   :  { %5978 = vmatprep.subr.bf16.mxu0 %v8274_v21  ;;  %6142 = vmatprep.subr.bf16.mxu1 %v8277_v22  ;;  %v8369_v21 = vld [vmem:[%s11103_s1 + $0x74c] ss:$16 sps:$4 sm:$0xff]   ;;  %v8364_v22 = vld [vmem:[%s11103_s1 + $0x740] ss:$16 sps:$4 sm:$0xff]  }
 0x25d   :  { %5979 = vmatpush1.bf16.msra.mxu0 %v8272_v23  ;;  %6143 = vmatpush1.bf16.msra.mxu1 %v8275_v24  ;;  %v8367_v23 = vld [vmem:[%s11103_s1 + $0x748] ss:$16 sps:$4 sm:$0xff]   ;;  %v8372_v24 = vld [vmem:[%s11103_s1 + $0x764] ss:$16 sps:$4 sm:$0xff]  }
 0x25e   :  { %5980 = vmatprep.subr.bf16.mxu0 %v8280_v25  ;;  %6144 = vmatprep.subr.bf16.mxu1 %v8283_v26  ;;  %v8375_v25 = vld [vmem:[%s11103_s1 + $0x76c] ss:$16 sps:$4 sm:$0xff]   ;;  %v8370_v26 = vld [vmem:[%s11103_s1 + $0x760] ss:$16 sps:$4 sm:$0xff]  }
 0x261   :  { %5981 = vmatpush1.bf16.msra.mxu0 %v8278_v27  ;;  %6145 = vmatpush1.bf16.msra.mxu1 %v8281_v28  ;;  %v8373_v27 = vld [vmem:[%s11103_s1 + $0x768] ss:$16 sps:$4 sm:$0xff]   ;;  %v8378_v28 = vld [vmem:[%s11103_s1 + $0x784] ss:$16 sps:$4 sm:$0xff]  }
 0x262   :  { %5982 = vmatprep.subr.bf16.mxu0 %v8286_v29  ;;  %6146 = vmatprep.subr.bf16.mxu1 %v8289_v30  ;;  %v8381_v29 = vld [vmem:[%s11103_s1 + $0x78c] ss:$16 sps:$4 sm:$0xff]   ;;  %v8376_v30 = vld [vmem:[%s11103_s1 + $0x780] ss:$16 sps:$4 sm:$0xff]  }
 0x265   :  { %5983 = vmatpush1.bf16.msra.mxu0 %v8284_v31  ;;  %6147 = vmatpush1.bf16.msra.mxu1 %v8287_v32  ;;  %v8379_v31 = vld [vmem:[%s11103_s1 + $0x788] ss:$16 sps:$4 sm:$0xff]   ;;  %v8384_v32 = vld [vmem:[%s11103_s1 + $0x7a4] ss:$16 sps:$4 sm:$0xff]  }
 0x266   :  { %5984 = vmatprep.subr.bf16.mxu0 %v8292_v33  ;;  %6148 = vmatprep.subr.bf16.mxu1 %v8295_v34  ;;  %v8387_v33 = vld [vmem:[%s11103_s1 + $0x7ac] ss:$16 sps:$4 sm:$0xff]   ;;  %v8382_v34 = vld [vmem:[%s11103_s1 + $0x7a0] ss:$16 sps:$4 sm:$0xff]  }
 0x269   :  { %5985 = vmatpush1.bf16.msra.mxu0 %v8290_v35  ;;  %6149 = vmatpush1.bf16.msra.mxu1 %v8293_v36  ;;  %v8385_v35 = vld [vmem:[%s11103_s1 + $0x7a8] ss:$16 sps:$4 sm:$0xff]   ;;  %v8390_v36 = vld [vmem:[%s11103_s1 + $0x7c4] ss:$16 sps:$4 sm:$0xff]  }
 0x26a   :  { %5986 = vmatprep.subr.bf16.mxu0 %v8298_v37  ;;  %6150 = vmatprep.subr.bf16.mxu1 %v8301_v38  ;;  %v8393_v37 = vld [vmem:[%s11103_s1 + $0x7cc] ss:$16 sps:$4 sm:$0xff]   ;;  %v8388_v38 = vld [vmem:[%s11103_s1 + $0x7c0] ss:$16 sps:$4 sm:$0xff]  }
 0x26d   :  { %5987 = vmatpush1.bf16.msra.mxu0 %v8296_v39  ;;  %6151 = vmatpush1.bf16.msra.mxu1 %v8299_v40  ;;  %v8391_v39 = vld [vmem:[%s11103_s1 + $0x7c8] ss:$16 sps:$4 sm:$0xff]   ;;  %v8396_v40 = vld [vmem:[%s11103_s1 + $0x7e4] ss:$16 sps:$4 sm:$0xff]  }
 0x26e   :  { %5997 = vmatprep.subr.bf16.mxu0 %v8306_v41  ;;  %6161 = vmatprep.subr.bf16.mxu1 %v8309_v43  ;;  %v8399_v41 = vld [vmem:[%s11103_s1 + $0x7ec] ss:$16 sps:$4 sm:$0xff]   ;;  %v8397_v43 = vld [vmem:[%s11103_s1 + $0x7e8] ss:$16 sps:$4 sm:$0xff]  }
 0x270   :  { %5989 = vmatmul.mubr.bf16.vlgmr.msra.gmra.mrb[0].mxu0 %v7577_v45  ;;  %6153 = vmatmul.mubr.bf16.vlgmr.msra.gmra.mrb[0].mxu1 %v7577_v45  ;;  %v8402_v45 = vld [vmem:[#allocation6 + $0x40] sm:$0xff]  }
 0x271   :  { %5998 = vmatpush1.bf16.msra.mxu0 %v8304_v42  ;;  %6162 = vmatpush1.bf16.msra.mxu1 %v8307_v47  ;;  %v8394_v42 = vld [vmem:[%s11103_s1 + $0x7e0] ss:$16 sps:$4 sm:$0xff]   ;;  %v8403_v47 = vld [vmem:[#allocation6 + $0xc0] sm:$0xff]  }
 0x272   :  { %5999 = vmatprep.subr.bf16.mxu0 %v8312_v48  ;;  %6163 = vmatprep.subr.bf16.mxu1 %v8315_v49  ;;  %v7579_v48 = vcombine.low %v10814_v46, %v10814_v46  ;;  %v8405_v49 = vld [vmem:[#allocation6 + $0x80] sm:$0xff]   ;;  %v8412_v46 = vld [vmem:[#allocation6 + $0x10] sm:$0xff]  }
 0x273   :  { %6029 = vmatprep.mubr.bf16.mxu0 %v7580_v50  ;;  %6193 = vmatprep.mubr.bf16.mxu1 %v7580_v50  ;;  %v8406_v50 = vld [vmem:[#allocation6 + $0x48] sm:$0xff]  }
 0x275   :  { %6000 = vmatpush1.bf16.msra.mxu0 %v8310_v44  ;;  %6164 = vmatpush1.bf16.msra.mxu1 %v8313_v51  ;;  %v8404_v44 = vld [vmem:[#allocation6] sm:$0xff]   ;;  %v8407_v51 = vld [vmem:[#allocation6 + $0xc8] sm:$0xff]  }
 0x276   :  { %6001 = vmatprep.subr.bf16.mxu0 %v8318_v52  ;;  %6165 = vmatprep.subr.bf16.mxu1 %v8321_v53  ;;  %v8408_v52 = vld [vmem:[#allocation6 + $0x8] sm:$0xff]  }
 0x277   :  { %v8409_v53 = vld [vmem:[#allocation6 + $0x88] sm:$0xff]  }
 0x279   :  { %6002 = vmatpush1.bf16.msra.mxu0 %v8316_v54  ;;  %6166 = vmatpush1.bf16.msra.mxu1 %v8319_v55  ;;  %v8410_v54 = vld [vmem:[#allocation6 + $0x50] sm:$0xff]  }
 0x27a   :  { %6003 = vmatprep.subr.bf16.mxu0 %v8324_v56  ;;  %6167 = vmatprep.subr.bf16.mxu1 %v8327_v57  ;;  %v8411_v55 = vld [vmem:[#allocation6 + $0xd0] sm:$0xff]   ;;  %v8414_v57 = vld [vmem:[#allocation6 + $0x58] sm:$0xff]  }
 0x27b   :  { %v8413_v56 = vld [vmem:[#allocation6 + $0x90] sm:$0xff]  }
 0x27d   :  { %6004 = vmatpush1.bf16.msra.mxu0 %v8322_v58  ;;  %6168 = vmatpush1.bf16.msra.mxu1 %v8325_v59  ;;  %v8415_v58 = vld [vmem:[#allocation6 + $0xd8] sm:$0xff]  }
 0x27e   :  { %6005 = vmatprep.subr.bf16.mxu0 %v8330_v60  ;;  %6169 = vmatprep.subr.bf16.mxu1 %v8333_v61  ;;  %v8416_v59 = vld [vmem:[#allocation6 + $0x18] sm:$0xff]   ;;  %v8418_v61 = vld [vmem:[#allocation6 + $0x60] sm:$0xff]  }
 0x27f   :  { %v8417_v60 = vld [vmem:[#allocation6 + $0x98] sm:$0xff]  }
 0x281   :  { %6006 = vmatpush1.bf16.msra.mxu0 %v8328_v62  ;;  %6170 = vmatpush1.bf16.msra.mxu1 %v8331_v63  ;;  %v8419_v62 = vld [vmem:[#allocation6 + $0xe0] sm:$0xff]  }
 0x282   :  { %6007 = vmatprep.subr.bf16.mxu0 %v8336_v0  ;;  %6171 = vmatprep.subr.bf16.mxu1 %v8339_v1  ;;  %v8420_v63 = vld [vmem:[#allocation6 + $0x20] sm:$0xff]   ;;  %v8422_v1 = vld [vmem:[#allocation6 + $0x68] sm:$0xff]  }
 0x283   :  { %v8421_v0 = vld [vmem:[#allocation6 + $0xa0] sm:$0xff]  }
 0x285   :  { %6008 = vmatpush1.bf16.msra.mxu0 %v8334_v2  ;;  %6172 = vmatpush1.bf16.msra.mxu1 %v8337_v3  ;;  %v8423_v2 = vld [vmem:[#allocation6 + $0xe8] sm:$0xff]  }
 0x286   :  { %6009 = vmatprep.subr.bf16.mxu0 %v8342_v4  ;;  %6173 = vmatprep.subr.bf16.mxu1 %v8345_v5  ;;  %v8424_v3 = vld [vmem:[#allocation6 + $0x28] sm:$0xff]   ;;  %v8426_v5 = vld [vmem:[#allocation6 + $0x70] sm:$0xff]  }
 0x287   :  { %v8425_v4 = vld [vmem:[#allocation6 + $0xa8] sm:$0xff]  }
 0x289   :  { %6010 = vmatpush1.bf16.msra.mxu0 %v8340_v6  ;;  %6174 = vmatpush1.bf16.msra.mxu1 %v8343_v7  ;;  %v8427_v6 = vld [vmem:[#allocation6 + $0xf0] sm:$0xff]  }
 0x28a   :  { %6011 = vmatprep.subr.bf16.mxu0 %v8348_v8  ;;  %6175 = vmatprep.subr.bf16.mxu1 %v8351_v9  ;;  %v8428_v7 = vld [vmem:[#allocation6 + $0x30] sm:$0xff]   ;;  %v8430_v9 = vld [vmem:[#allocation6 + $0x78] sm:$0xff]  }
 0x28b   :  { %v8429_v8 = vld [vmem:[#allocation6 + $0xb0] sm:$0xff]  }
 0x28d   :  { %6012 = vmatpush1.bf16.msra.mxu0 %v8346_v10  ;;  %6176 = vmatpush1.bf16.msra.mxu1 %v8349_v11  ;;  %v8431_v10 = vld [vmem:[#allocation6 + $0xf8] sm:$0xff]  }
 0x28e   :  { %6013 = vmatprep.subr.bf16.mxu0 %v8354_v12  ;;  %6177 = vmatprep.subr.bf16.mxu1 %v8357_v13  ;;  %v8432_v11 = vld [vmem:[#allocation6 + $0x38] sm:$0xff]  }
 0x28f   :  { %v8433_v12 = vld [vmem:[#allocation6 + $0xb8] sm:$0xff]  }
 0x290   :  { %v8436_v13 = vld [vmem:[#allocation9 + $0x4] ss:$16 sps:$4 sm:$0xff]  }
 0x291   :  { %6014 = vmatpush1.bf16.msra.mxu0 %v8352_v14  ;;  %6178 = vmatpush1.bf16.msra.mxu1 %v8355_v15  ;;  %v8439_v14 = vld [vmem:[#allocation9 + $0xc] ss:$16 sps:$4 sm:$0xff]   ;;  %v4546_v15 = vlaneseq }
 0x292   :  { %6015 = vmatprep.subr.bf16.mxu0 %v8360_v16  ;;  %6179 = vmatprep.subr.bf16.mxu1 %v8363_v17 }
 0x293   :  { %v11003_v16 = vshrl.u32 %v4546_v15, 7  ;;  %v7837_v15 = vld [vmem:[#allocation8] ss:$0 sm:$0xff] }
 0x295   :  { %6016 = vmatpush1.bf16.msra.mxu0 %v8358_v18  ;;  %6180 = vmatpush1.bf16.msra.mxu1 %v8361_v19  ;;  %v11006_v17 = vsub.s32 0, %v11003_v16  ;;  %v4544_v18 = vld [vmem:[#allocation4] sm:$0xf]  ;;  %v11009_v19 = vsub.s32 2, %v11003_v16 }
 0x296   :  { %6017 = vmatprep.subr.bf16.mxu0 %v8366_v20  ;;  %6181 = vmatprep.subr.bf16.mxu1 %v8369_v21  ;;  %v11012_v20 = vsub.s32 1, %v11003_v16  ;;  %v11015_v21 = vsub.s32 3, %v11003_v16 }
 0x299   :  { %6018 = vmatpush1.bf16.msra.mxu0 %v8364_v22  ;;  %6182 = vmatpush1.bf16.msra.mxu1 %v8367_v23  ;;  %v4549_v22 = vrot.slane %v4544_v18, %v11006_v17  ;;  %v4557_v23 = vrot.slane %v4544_v18, %v11009_v19 }
 0x29a   :  { %6019 = vmatprep.subr.bf16.mxu0 %v8372_v24  ;;  %6183 = vmatprep.subr.bf16.mxu1 %v8375_v25  ;;  %v4553_v24 = vrot.slane %v4544_v18, %v11012_v20  ;;  %v4561_v25 = vrot.slane %v4544_v18, %v11015_v21 }
 0x29d   :  { %6020 = vmatpush1.bf16.msra.mxu0 %v8370_v26  ;;  %6184 = vmatpush1.bf16.msra.mxu1 %v8373_v27 }
 0x29e   :  { %6021 = vmatprep.subr.bf16.mxu0 %v8378_v28  ;;  %6185 = vmatprep.subr.bf16.mxu1 %v8381_v29 }
 0x2a1   :  { %6022 = vmatpush1.bf16.msra.mxu0 %v8376_v30  ;;  %6186 = vmatpush1.bf16.msra.mxu1 %v8379_v31 }
 0x2a2   :  { %6023 = vmatprep.subr.bf16.mxu0 %v8384_v32  ;;  %6187 = vmatprep.subr.bf16.mxu1 %v8387_v33 }
 0x2a5   :  { %6024 = vmatpush1.bf16.msra.mxu0 %v8382_v34  ;;  %6188 = vmatpush1.bf16.msra.mxu1 %v8385_v35 }
 0x2a6   :  { %6025 = vmatprep.subr.bf16.mxu0 %v8390_v36  ;;  %6189 = vmatprep.subr.bf16.mxu1 %v8393_v37 }
 0x2a9   :  { %6026 = vmatpush1.bf16.msra.mxu0 %v8388_v38  ;;  %6190 = vmatpush1.bf16.msra.mxu1 %v8391_v39 }
 0x2aa   :  { %6027 = vmatprep.subr.bf16.mxu0 %v8396_v40  ;;  %6191 = vmatprep.subr.bf16.mxu1 %v8399_v41 }
 0x2ad   :  { %6028 = vmatpush1.bf16.msra.mxu0 %v8394_v42  ;;  %6192 = vmatpush1.bf16.msra.mxu1 %v8397_v43  ;;  %v8434_v43 = vld [vmem:[#allocation9] ss:$16 sps:$4 sm:$0xff]  }
 0x2ae   :  { %7903 = vmatprep.subr.bf16.mxu0 %v8402_v45  ;;  %7925 = vmatprep.subr.bf16.mxu1 %v8403_v47 }
 0x2b0   :  { %6030 = vmatmul.mubr.bf16.vlgmr.msra.gmra.mrb[0].mxu0 %v7579_v48  ;;  %6194 = vmatmul.mubr.bf16.vlgmr.msra.gmra.mrb[0].mxu1 %v7579_v48  ;;  %v8437_v48 = vld [vmem:[#allocation9 + $0x8] ss:$16 sps:$4 sm:$0xff]  }
 0x2b1   :  { %7904 = vmatpush3.bf16.msra.mxu0 %v8404_v44  ;;  %7926 = vmatpush3.bf16.msra.mxu1 %v8405_v49  ;;  %v8442_v44 = vld [vmem:[#allocation9 + $0x24] ss:$16 sps:$4 sm:$0xff]  }
 0x2b2   :  { %7905 = vmatprep.subr.bf16.mxu0 %v8406_v50  ;;  %7927 = vmatprep.subr.bf16.mxu1 %v8407_v51  ;;  %v8445_v50 = vld [vmem:[#allocation9 + $0x2c] ss:$16 sps:$4 sm:$0xff]   ;;  %v8440_v51 = vld [vmem:[#allocation9 + $0x20] ss:$16 sps:$4 sm:$0xff]  }
 0x2b5   :  { %7906 = vmatpush3.bf16.msra.mxu0 %v8408_v52  ;;  %7928 = vmatpush3.bf16.msra.mxu1 %v8409_v53  ;;  %v8443_v52 = vld [vmem:[#allocation9 + $0x28] ss:$16 sps:$4 sm:$0xff]   ;;  %v8448_v53 = vld [vmem:[#allocation9 + $0x44] ss:$16 sps:$4 sm:$0xff]  }
 0x2b6   :  { %7907 = vmatprep.subr.bf16.mxu0 %v8410_v54  ;;  %7929 = vmatprep.subr.bf16.mxu1 %v8411_v55  ;;  %v8451_v54 = vld [vmem:[#allocation9 + $0x4c] ss:$16 sps:$4 sm:$0xff]   ;;  %v8446_v55 = vld [vmem:[#allocation9 + $0x40] ss:$16 sps:$4 sm:$0xff]  }
 0x2b9   :  { %7908 = vmatpush3.bf16.msra.mxu0 %v8412_v46  ;;  %7930 = vmatpush3.bf16.msra.mxu1 %v8413_v56  ;;  %v8449_v46 = vld [vmem:[#allocation9 + $0x48] ss:$16 sps:$4 sm:$0xff]   ;;  %v8454_v56 = vld [vmem:[#allocation9 + $0x64] ss:$16 sps:$4 sm:$0xff]  }
 0x2ba   :  { %7909 = vmatprep.subr.bf16.mxu0 %v8414_v57  ;;  %7931 = vmatprep.subr.bf16.mxu1 %v8415_v58  ;;  %v8457_v57 = vld [vmem:[#allocation9 + $0x6c] ss:$16 sps:$4 sm:$0xff]   ;;  %v8452_v58 = vld [vmem:[#allocation9 + $0x60] ss:$16 sps:$4 sm:$0xff]  }
 0x2bd   :  { %7910 = vmatpush3.bf16.msra.mxu0 %v8416_v59  ;;  %7932 = vmatpush3.bf16.msra.mxu1 %v8417_v60  ;;  %v8455_v59 = vld [vmem:[#allocation9 + $0x68] ss:$16 sps:$4 sm:$0xff]   ;;  %v8460_v60 = vld [vmem:[#allocation9 + $0x84] ss:$16 sps:$4 sm:$0xff]  }
 0x2be   :  { %7911 = vmatprep.subr.bf16.mxu0 %v8418_v61  ;;  %7933 = vmatprep.subr.bf16.mxu1 %v8419_v62  ;;  %v8463_v61 = vld [vmem:[#allocation9 + $0x8c] ss:$16 sps:$4 sm:$0xff]   ;;  %v8458_v62 = vld [vmem:[#allocation9 + $0x80] ss:$16 sps:$4 sm:$0xff]  }
 0x2c1   :  { %7912 = vmatpush3.bf16.msra.mxu0 %v8420_v63  ;;  %7934 = vmatpush3.bf16.msra.mxu1 %v8421_v0  ;;  %v8461_v63 = vld [vmem:[#allocation9 + $0x88] ss:$16 sps:$4 sm:$0xff]   ;;  %v8466_v0 = vld [vmem:[#allocation9 + $0xa4] ss:$16 sps:$4 sm:$0xff]  }
 0x2c2   :  { %7913 = vmatprep.subr.bf16.mxu0 %v8422_v1  ;;  %7935 = vmatprep.subr.bf16.mxu1 %v8423_v2  ;;  %v8469_v1 = vld [vmem:[#allocation9 + $0xac] ss:$16 sps:$4 sm:$0xff]   ;;  %v8464_v2 = vld [vmem:[#allocation9 + $0xa0] ss:$16 sps:$4 sm:$0xff]  }
 0x2c5   :  { %7914 = vmatpush3.bf16.msra.mxu0 %v8424_v3  ;;  %7936 = vmatpush3.bf16.msra.mxu1 %v8425_v4  ;;  %v8467_v3 = vld [vmem:[#allocation9 + $0xa8] ss:$16 sps:$4 sm:$0xff]   ;;  %v8472_v4 = vld [vmem:[#allocation9 + $0xc4] ss:$16 sps:$4 sm:$0xff]  }
 0x2c6   :  { %7915 = vmatprep.subr.bf16.mxu0 %v8426_v5  ;;  %7937 = vmatprep.subr.bf16.mxu1 %v8427_v6  ;;  %v8475_v5 = vld [vmem:[#allocation9 + $0xcc] ss:$16 sps:$4 sm:$0xff]   ;;  %v8470_v6 = vld [vmem:[#allocation9 + $0xc0] ss:$16 sps:$4 sm:$0xff]  }
 0x2c9   :  { %7916 = vmatpush3.bf16.msra.mxu0 %v8428_v7  ;;  %7938 = vmatpush3.bf16.msra.mxu1 %v8429_v8  ;;  %v8473_v7 = vld [vmem:[#allocation9 + $0xc8] ss:$16 sps:$4 sm:$0xff]   ;;  %v8478_v8 = vld [vmem:[#allocation9 + $0xe4] ss:$16 sps:$4 sm:$0xff]  }
 0x2ca   :  { %7917 = vmatprep.subr.bf16.mxu0 %v8430_v9  ;;  %7939 = vmatprep.subr.bf16.mxu1 %v8431_v10  ;;  %v8481_v9 = vld [vmem:[#allocation9 + $0xec] ss:$16 sps:$4 sm:$0xff]   ;;  %v8476_v10 = vld [vmem:[#allocation9 + $0xe0] ss:$16 sps:$4 sm:$0xff]  }
 0x2cd   :  { %7918 = vmatpush3.bf16.msra.mxu0 %v8432_v11  ;;  %7940 = vmatpush3.bf16.msra.mxu1 %v8433_v12  ;;  %v8479_v11 = vld [vmem:[#allocation9 + $0xe8] ss:$16 sps:$4 sm:$0xff]   ;;  %v8634_v12 = vmov 0  }
 0x2ce   :  { %6769 = vmatprep.subr.bf16.mxu0 %v8436_v13  ;;  %6810 = vmatprep.subr.bf16.mxu1 %v8439_v14 }
 0x383   :  { %v6031_v26 = vpop.f32.mrb[0].mxu0  ;;  %v6195_v28 = vpop.f32.mrb[0].mxu1 }
 0x384   :  { %v7947_v27 = vadd.f32 %v6031_v26, %v4549_v22  ;;  %v6033_v29 = vpop.f32.mrb[1].mxu0  ;;  %v7949_v30 = vadd.f32 %v6195_v28, %v4557_v23  ;;  %v6197_v32 = vpop.f32.mrb[1].mxu1 }
 0x385   :  { %v7948_v31 = vadd.f32 %v6033_v29, %v4553_v24  ;;  %v6035_v33 = vpop.f32.mrb[2].mxu0  ;;  %v7950_v35 = vadd.f32 %v6197_v32, %v4561_v25  ;;  %v6199_v36 = vpop.f32.mrb[2].mxu1  ;;  %v6587_v32 = vld [vmem:[#allocation11] sm:$0xf] }
 0x386   :  { %v6202_v34 = vmax.f32 %v7947_v27, 0.0  ;;  %v6036_v37 = vpop.f32.mrb[3].mxu0  ;;  %v6204_v38 = vmax.f32 %v7949_v30, 0.0  ;;  %v6200_v40 = vpop.f32.mrb[3].mxu1  ;;  %v6592_v33 = vrot.slane %v6587_v32, %v11006_v17  ;;  %v6604_v36 = vrot.slane %v6587_v32, %v11015_v21 }
 0x387   :  { %v6203_v39 = vmax.f32 %v7948_v31, 0.0  ;;  %v6205_v41 = vmax.f32 %v7950_v35, 0.0  ;;  %v6596_v35 = vrot.slane %v6587_v32, %v11012_v20 }
 0x388   :  { %v6206_v45 = vpack.c.bf16 %v6202_v34, %v6202_v34  ;;  %v6208_v49 = vpack.c.bf16 %v6204_v38, %v6204_v38  ;;  %v6600_v34 = vrot.slane %v6587_v32, %v11009_v19 }
 0x389   :  { %v6207_v42 = vpack.c.bf16 %v6203_v39, %v6203_v39  ;;  %v6209_v47 = vpack.c.bf16 %v6205_v41, %v6205_v41 }
 0x38b   :  { %6505 = vmatprep.mubr.bf16.mxu0 %v6207_v42  ;;  %6545 = vmatprep.mubr.bf16.mxu1 %v6209_v47 }
 0x38c   :  { %6506 = vmatmul.mubr.bf16.vlgmr.msra.gmra.mrb[4].mxu0 %v6206_v45  ;;  %6546 = vmatmul.mubr.bf16.vlgmr.msra.gmra.mrb[4].mxu1 %v6208_v49 }
 0x38d   :  { %6770 = vmatpush1.bf16.msra.mxu0 %v8434_v43  ;;  %6811 = vmatpush1.bf16.msra.mxu1 %v8437_v48 }
 0x38e   :  { %6771 = vmatprep.subr.bf16.mxu0 %v8442_v44  ;;  %6812 = vmatprep.subr.bf16.mxu1 %v8445_v50 }
 0x38f   :  { %6801 = vmatprep.mubr.bf16.mxu0 %v8634_v12  ;;  %6842 = vmatprep.mubr.bf16.mxu1 %v8634_v12 }
 0x391   :  { %6772 = vmatpush1.bf16.msra.mxu0 %v8440_v51  ;;  %6813 = vmatpush1.bf16.msra.mxu1 %v8443_v52 }
 0x392   :  { %6773 = vmatprep.subr.bf16.mxu0 %v8448_v53  ;;  %6814 = vmatprep.subr.bf16.mxu1 %v8451_v54 }
 0x395   :  { %6774 = vmatpush1.bf16.msra.mxu0 %v8446_v55  ;;  %6815 = vmatpush1.bf16.msra.mxu1 %v8449_v46 }
 0x396   :  { %6775 = vmatprep.subr.bf16.mxu0 %v8454_v56  ;;  %6816 = vmatprep.subr.bf16.mxu1 %v8457_v57 }
 0x399   :  { %6776 = vmatpush1.bf16.msra.mxu0 %v8452_v58  ;;  %6817 = vmatpush1.bf16.msra.mxu1 %v8455_v59 }
 0x39a   :  { %6777 = vmatprep.subr.bf16.mxu0 %v8460_v60  ;;  %6818 = vmatprep.subr.bf16.mxu1 %v8463_v61 }
 0x39d   :  { %6778 = vmatpush1.bf16.msra.mxu0 %v8458_v62  ;;  %6819 = vmatpush1.bf16.msra.mxu1 %v8461_v63 }
 0x39e   :  { %6779 = vmatprep.subr.bf16.mxu0 %v8466_v0  ;;  %6820 = vmatprep.subr.bf16.mxu1 %v8469_v1 }
 0x3a1   :  { %6780 = vmatpush1.bf16.msra.mxu0 %v8464_v2  ;;  %6821 = vmatpush1.bf16.msra.mxu1 %v8467_v3 }
 0x3a2   :  { %6781 = vmatprep.subr.bf16.mxu0 %v8472_v4  ;;  %6822 = vmatprep.subr.bf16.mxu1 %v8475_v5 }
 0x3a5   :  { %6782 = vmatpush1.bf16.msra.mxu0 %v8470_v6  ;;  %6823 = vmatpush1.bf16.msra.mxu1 %v8473_v7 }
 0x3a6   :  { %6783 = vmatprep.subr.bf16.mxu0 %v8478_v8  ;;  %6824 = vmatprep.subr.bf16.mxu1 %v8481_v9 }
 0x3a9   :  { %6784 = vmatpush1.bf16.msra.mxu0 %v8476_v10  ;;  %6825 = vmatpush1.bf16.msra.mxu1 %v8479_v11 }
 0x45f   :  { %v7919_v13 = vpop.f32.mrb[4].mxu0  ;;  %v7941_v14 = vpop.f32.mrb[4].mxu1 }
 0x460   :  { %v7920_v18 = vpop.f32.mrb[5].mxu0  ;;  %v7942_v23 = vpop.f32.mrb[5].mxu1 }
 0x461   :  { %v7921_v22 = vadd.f32 %v7920_v18, %v7919_v13  ;;  %v7922_v24 = vpop.f32.mrb[6].mxu0  ;;  %v7943_v25 = vadd.f32 %v7942_v23, %v7941_v14  ;;  %v7944_v26 = vpop.f32.mrb[6].mxu1 }
 0x462   :  { %v7923_v27 = vpop.f32.mrb[7].mxu0  ;;  %v7945_v29 = vpop.f32.mrb[7].mxu1 }
 0x463   :  { %v6508_v28 = vadd.f32 %v7921_v22, %v7837_v15 }
 0x465   :  { %v6548_v30 = vadd.f32 %v7943_v25, %v6508_v28 }
 0x467   :  { %6553 = vst [vmem:[%s11112_s10] sm:$0xff] %v6548_v30  ;;  %v6554_v31 = vpack.c.bf16 %v6548_v30, %v6548_v30 }
 0x469   :  { %6802 = vmatmul.mubr.bf16.vlgmr.msra.gmra.mrb[8].mxu0 %v6554_v31  ;;  %6843 = vmatmul.mubr.bf16.vlgmr.msra.gmra.mrb[8].mxu1 %v6554_v31 }
 0x53c   :  { %v6803_v37 = vpop.f32.mrb[8].mxu0  ;;  %v6844_v38 = vpop.f32.mrb[8].mxu1 }
 0x53d   :  { %v11028_v39 = vadd.f32 %v6803_v37, %v6592_v33  ;;  %v11030_v40 = vadd.f32 %v6844_v38, %v6600_v34  ;;  %v6805_v41 = vpop.f32.mrb[9].mxu0  ;;  %v6846_v42 = vpop.f32.mrb[9].mxu1 }
 0x53e   :  { %v6806_v43 = vadd.f32 %v6805_v41, %v6596_v35  ;;  %v11032_v45 = vadd.f32 %v6846_v42, %v6604_v36  ;;  %v6807_v47 = vpop.f32.mrb[10].mxu0  ;;  %v6848_v48 = vpop.f32.mrb[10].mxu1 }
 0x53f   :  { %v6851_v44 = vmax.f32 %v11028_v39, 0.0  ;;  %v6853_v49 = vmax.f32 %v11030_v40, 0.0  ;;  %v6808_v50 = vpop.f32.mrb[11].mxu0  ;;  %v6849_v51 = vpop.f32.mrb[11].mxu1 }
 0x540   :  { %v6852_v52 = vmax.f32 %v6806_v43, 0.0  ;;  %v6854_v53 = vmax.f32 %v11032_v45, 0.0 }
 0x541   :  { %8622 = dma.done.wait [#allocation3], 32768 }
 0x542   :  { %8623 = vsyncadd [#allocation3], 4294934528  ;;  %v11037_v54 = vpack.c.bf16 %v6852_v52, %v6852_v52  ;;  %v6864_v55 = vld [vmem:[#allocation2 + $0x8] sm:$0xff]  ;;  %v6866_v46 = vld [vmem:[#allocation2 + $0x18] sm:$0xff] }
 0x543   :  { %v6863_v56 = vld [vmem:[#allocation2] sm:$0xff]  ;;  %7161 = vmatprep.subr.bf16.mxu0 %v6864_v55  ;;  %7243 = vmatprep.subr.bf16.mxu1 %v6866_v46  ;;  %v6865_v57 = vld [vmem:[#allocation2 + $0x10] sm:$0xff]  ;;  %v6872_v58 = vld [vmem:[#allocation2 + $0x48] sm:$0xff] }
 0x544   :  { %7193 = vmatprep.mubr.bf16.mxu0 %v11037_v54  ;;  %7275 = vmatprep.mubr.bf16.mxu1 %v11037_v54  ;;  %v6874_v59 = vld [vmem:[#allocation2 + $0x58] sm:$0xff]  ;;  %v6871_v60 = vld [vmem:[#allocation2 + $0x40] sm:$0xff]  ;;  %v6873_v61 = vld [vmem:[#allocation2 + $0x50] sm:$0xff] }
 0x545   :  { %7162 = vmatpush1.bf16.msra.mxu0 %v6863_v56  ;;  %7244 = vmatpush1.bf16.msra.mxu1 %v6865_v57  ;;  %v6880_v62 = vld [vmem:[#allocation2 + $0x88] sm:$0xff]  ;;  %v6882_v63 = vld [vmem:[#allocation2 + $0x98] sm:$0xff]  ;;  %v6879_v0 = vld [vmem:[#allocation2 + $0x80] sm:$0xff] }
 0x546   :  { %7163 = vmatprep.subr.bf16.mxu0 %v6872_v58  ;;  %7245 = vmatprep.subr.bf16.mxu1 %v6874_v59  ;;  %v6881_v1 = vld [vmem:[#allocation2 + $0x90] sm:$0xff]  ;;  %v6888_v2 = vld [vmem:[#allocation2 + $0xc8] sm:$0xff]  ;;  %v6890_v3 = vld [vmem:[#allocation2 + $0xd8] sm:$0xff] }
 0x547   :  { %v6887_v4 = vld [vmem:[#allocation2 + $0xc0] sm:$0xff]  ;;  %v6889_v5 = vld [vmem:[#allocation2 + $0xd0] sm:$0xff]  ;;  %v6896_v6 = vld [vmem:[#allocation2 + $0x108] sm:$0xff] }
 0x548   :  { %v6898_v7 = vld [vmem:[#allocation2 + $0x118] sm:$0xff]  ;;  %v6895_v8 = vld [vmem:[#allocation2 + $0x100] sm:$0xff]  ;;  %v6897_v9 = vld [vmem:[#allocation2 + $0x110] sm:$0xff] }
 0x549   :  { %7164 = vmatpush1.bf16.msra.mxu0 %v6871_v60  ;;  %7246 = vmatpush1.bf16.msra.mxu1 %v6873_v61  ;;  %v6904_v10 = vld [vmem:[#allocation2 + $0x148] sm:$0xff]  ;;  %v6906_v11 = vld [vmem:[#allocation2 + $0x158] sm:$0xff]  ;;  %v6903_v12 = vld [vmem:[#allocation2 + $0x140] sm:$0xff] }
 0x54a   :  { %7165 = vmatprep.subr.bf16.mxu0 %v6880_v62  ;;  %7247 = vmatprep.subr.bf16.mxu1 %v6882_v63  ;;  %v6905_v13 = vld [vmem:[#allocation2 + $0x150] sm:$0xff]  ;;  %v6912_v14 = vld [vmem:[#allocation2 + $0x188] sm:$0xff]  ;;  %v6914_v15 = vld [vmem:[#allocation2 + $0x198] sm:$0xff] }
 0x54b   :  { %v6911_v18 = vld [vmem:[#allocation2 + $0x180] sm:$0xff]  ;;  %v6913_v22 = vld [vmem:[#allocation2 + $0x190] sm:$0xff]  ;;  %v6920_v23 = vld [vmem:[#allocation2 + $0x1c8] sm:$0xff] }
 0x54c   :  { %v6922_v24 = vld [vmem:[#allocation2 + $0x1d8] sm:$0xff]  ;;  %v6919_v25 = vld [vmem:[#allocation2 + $0x1c0] sm:$0xff]  ;;  %v6921_v26 = vld [vmem:[#allocation2 + $0x1d0] sm:$0xff] }
 0x54d   :  { %7166 = vmatpush1.bf16.msra.mxu0 %v6879_v0  ;;  %7248 = vmatpush1.bf16.msra.mxu1 %v6881_v1  ;;  %v6928_v27 = vld [vmem:[#allocation2 + $0x208] sm:$0xff]  ;;  %v6930_v28 = vld [vmem:[#allocation2 + $0x218] sm:$0xff]  ;;  %v6927_v29 = vld [vmem:[#allocation2 + $0x200] sm:$0xff] }
 0x54e   :  { %7167 = vmatprep.subr.bf16.mxu0 %v6888_v2  ;;  %7249 = vmatprep.subr.bf16.mxu1 %v6890_v3  ;;  %v6929_v30 = vld [vmem:[#allocation2 + $0x210] sm:$0xff]  ;;  %v6936_v31 = vld [vmem:[#allocation2 + $0x248] sm:$0xff]  ;;  %v6938_v32 = vld [vmem:[#allocation2 + $0x258] sm:$0xff] }
 0x54f   :  { %v6935_v33 = vld [vmem:[#allocation2 + $0x240] sm:$0xff]  ;;  %v6937_v34 = vld [vmem:[#allocation2 + $0x250] sm:$0xff]  ;;  %v6944_v35 = vld [vmem:[#allocation2 + $0x288] sm:$0xff] }
 0x550   :  { %v6946_v36 = vld [vmem:[#allocation2 + $0x298] sm:$0xff]  ;;  %v6943_v37 = vld [vmem:[#allocation2 + $0x280] sm:$0xff]  ;;  %v6945_v38 = vld [vmem:[#allocation2 + $0x290] sm:$0xff] }
 0x551   :  { %7168 = vmatpush1.bf16.msra.mxu0 %v6887_v4  ;;  %7250 = vmatpush1.bf16.msra.mxu1 %v6889_v5  ;;  %v6952_v41 = vld [vmem:[#allocation2 + $0x2c8] sm:$0xff]  ;;  %v6954_v42 = vld [vmem:[#allocation2 + $0x2d8] sm:$0xff]  ;;  %v6951_v43 = vld [vmem:[#allocation2 + $0x2c0] sm:$0xff]  ;;  %v11044_v4 = vpack.c.bf16 %v6851_v44, %v6851_v44 }
 0x552   :  { %7169 = vmatprep.subr.bf16.mxu0 %v6896_v6  ;;  %7251 = vmatprep.subr.bf16.mxu1 %v6898_v7  ;;  %v6953_v47 = vld [vmem:[#allocation2 + $0x2d0] sm:$0xff]  ;;  %v6960_v48 = vld [vmem:[#allocation2 + $0x308] sm:$0xff]  ;;  %v6962_v50 = vld [vmem:[#allocation2 + $0x318] sm:$0xff] }
 0x553   :  { %v6959_v51 = vld [vmem:[#allocation2 + $0x300] sm:$0xff]  ;;  %v6961_v52 = vld [vmem:[#allocation2 + $0x310] sm:$0xff]  ;;  %v6968_v55 = vld [vmem:[#allocation2 + $0x348] sm:$0xff] }
 0x554   :  { %v6970_v46 = vld [vmem:[#allocation2 + $0x358] sm:$0xff]  ;;  %v6967_v56 = vld [vmem:[#allocation2 + $0x340] sm:$0xff]  ;;  %v6969_v57 = vld [vmem:[#allocation2 + $0x350] sm:$0xff] }
 0x555   :  { %7170 = vmatpush1.bf16.msra.mxu0 %v6895_v8  ;;  %7252 = vmatpush1.bf16.msra.mxu1 %v6897_v9  ;;  %v6976_v58 = vld [vmem:[#allocation2 + $0x388] sm:$0xff]  ;;  %v6978_v59 = vld [vmem:[#allocation2 + $0x398] sm:$0xff]  ;;  %v6975_v60 = vld [vmem:[#allocation2 + $0x380] sm:$0xff]  ;;  %v11049_v9 = vpack.c.bf16 %v6854_v53, %v6854_v53 }
 0x556   :  { %7171 = vmatprep.subr.bf16.mxu0 %v6904_v10  ;;  %7253 = vmatprep.subr.bf16.mxu1 %v6906_v11  ;;  %v6977_v61 = vld [vmem:[#allocation2 + $0x390] sm:$0xff]  ;;  %v6984_v62 = vld [vmem:[#allocation2 + $0x3c8] sm:$0xff]  ;;  %v6986_v63 = vld [vmem:[#allocation2 + $0x3d8] sm:$0xff] }
 0x557   :  { %v6983_v0 = vld [vmem:[#allocation2 + $0x3c0] sm:$0xff]  ;;  %v6985_v1 = vld [vmem:[#allocation2 + $0x3d0] sm:$0xff]  ;;  %v6992_v2 = vld [vmem:[#allocation2 + $0x408] sm:$0xff] }
 0x558   :  { %v6994_v3 = vld [vmem:[#allocation2 + $0x418] sm:$0xff]  ;;  %v6991_v5 = vld [vmem:[#allocation2 + $0x400] sm:$0xff]  ;;  %v6993_v6 = vld [vmem:[#allocation2 + $0x410] sm:$0xff] }
 0x559   :  { %7172 = vmatpush1.bf16.msra.mxu0 %v6903_v12  ;;  %7254 = vmatpush1.bf16.msra.mxu1 %v6905_v13  ;;  %v7000_v7 = vld [vmem:[#allocation2 + $0x448] sm:$0xff]  ;;  %v7002_v8 = vld [vmem:[#allocation2 + $0x458] sm:$0xff]  ;;  %v6999_v39 = vld [vmem:[#allocation2 + $0x440] sm:$0xff] }
 0x55a   :  { %7173 = vmatprep.subr.bf16.mxu0 %v6912_v14  ;;  %7255 = vmatprep.subr.bf16.mxu1 %v6914_v15  ;;  %v7001_v44 = vld [vmem:[#allocation2 + $0x450] sm:$0xff]  ;;  %v7008_v10 = vld [vmem:[#allocation2 + $0x488] sm:$0xff]  ;;  %v7010_v11 = vld [vmem:[#allocation2 + $0x498] sm:$0xff] }
 0x55b   :  { %v7007_v45 = vld [vmem:[#allocation2 + $0x480] sm:$0xff]  ;;  %v7009_v53 = vld [vmem:[#allocation2 + $0x490] sm:$0xff]  ;;  %v7016_v12 = vld [vmem:[#allocation2 + $0x4c8] sm:$0xff] }
 0x55c   :  { %v7018_v13 = vld [vmem:[#allocation2 + $0x4d8] sm:$0xff]  ;;  %v7015_v14 = vld [vmem:[#allocation2 + $0x4c0] sm:$0xff]  ;;  %v7017_v15 = vld [vmem:[#allocation2 + $0x4d0] sm:$0xff] }
 0x55d   :  { %7174 = vmatpush1.bf16.msra.mxu0 %v6911_v18  ;;  %7256 = vmatpush1.bf16.msra.mxu1 %v6913_v22  ;;  %v7024_v18 = vld [vmem:[#allocation2 + $0x508] sm:$0xff]  ;;  %v7026_v22 = vld [vmem:[#allocation2 + $0x518] sm:$0xff]  ;;  %v6875_v40 = vld [vmem:[#allocation2 + $0x60] sm:$0xff] }
 0x55e   :  { %7175 = vmatprep.subr.bf16.mxu0 %v6920_v23  ;;  %7257 = vmatprep.subr.bf16.mxu1 %v6922_v24  ;;  %v7023_v23 = vld [vmem:[#allocation2 + $0x500] sm:$0xff]  ;;  %v7025_v24 = vld [vmem:[#allocation2 + $0x510] sm:$0xff] }
 0x561   :  { %7176 = vmatpush1.bf16.msra.mxu0 %v6919_v25  ;;  %7258 = vmatpush1.bf16.msra.mxu1 %v6921_v26  ;;  %v7032_v25 = vld [vmem:[#allocation2 + $0x548] sm:$0xff]  ;;  %v7034_v26 = vld [vmem:[#allocation2 + $0x558] sm:$0xff] }
 0x562   :  { %7177 = vmatprep.subr.bf16.mxu0 %v6928_v27  ;;  %7259 = vmatprep.subr.bf16.mxu1 %v6930_v28  ;;  %v7031_v27 = vld [vmem:[#allocation2 + $0x540] sm:$0xff]  ;;  %v7033_v28 = vld [vmem:[#allocation2 + $0x550] sm:$0xff] }
 0x565   :  { %7178 = vmatpush1.bf16.msra.mxu0 %v6927_v29  ;;  %7260 = vmatpush1.bf16.msra.mxu1 %v6929_v30  ;;  %v7040_v29 = vld [vmem:[#allocation2 + $0x588] sm:$0xff]  ;;  %v7042_v30 = vld [vmem:[#allocation2 + $0x598] sm:$0xff] }
 0x566   :  { %7179 = vmatprep.subr.bf16.mxu0 %v6936_v31  ;;  %7261 = vmatprep.subr.bf16.mxu1 %v6938_v32  ;;  %v7039_v31 = vld [vmem:[#allocation2 + $0x580] sm:$0xff]  ;;  %v7041_v32 = vld [vmem:[#allocation2 + $0x590] sm:$0xff] }
 0x569   :  { %7180 = vmatpush1.bf16.msra.mxu0 %v6935_v33  ;;  %7262 = vmatpush1.bf16.msra.mxu1 %v6937_v34  ;;  %v7048_v33 = vld [vmem:[#allocation2 + $0x5c8] sm:$0xff]  ;;  %v7050_v34 = vld [vmem:[#allocation2 + $0x5d8] sm:$0xff] }
 0x56a   :  { %7181 = vmatprep.subr.bf16.mxu0 %v6944_v35  ;;  %7263 = vmatprep.subr.bf16.mxu1 %v6946_v36  ;;  %v7047_v35 = vld [vmem:[#allocation2 + $0x5c0] sm:$0xff]  ;;  %v7049_v36 = vld [vmem:[#allocation2 + $0x5d0] sm:$0xff] }
 0x56d   :  { %7182 = vmatpush1.bf16.msra.mxu0 %v6943_v37  ;;  %7264 = vmatpush1.bf16.msra.mxu1 %v6945_v38  ;;  %v7056_v37 = vld [vmem:[#allocation2 + $0x608] sm:$0xff]  ;;  %v7058_v38 = vld [vmem:[#allocation2 + $0x618] sm:$0xff] }
 0x56e   :  { %7183 = vmatprep.subr.bf16.mxu0 %v6952_v41  ;;  %7265 = vmatprep.subr.bf16.mxu1 %v6954_v42  ;;  %v7055_v41 = vld [vmem:[#allocation2 + $0x600] sm:$0xff]  ;;  %v7057_v42 = vld [vmem:[#allocation2 + $0x610] sm:$0xff] }
 0x571   :  { %7184 = vmatpush1.bf16.msra.mxu0 %v6951_v43  ;;  %7266 = vmatpush1.bf16.msra.mxu1 %v6953_v47  ;;  %v7064_v43 = vld [vmem:[#allocation2 + $0x648] sm:$0xff]  ;;  %v7066_v47 = vld [vmem:[#allocation2 + $0x658] sm:$0xff] }
 0x572   :  { %7185 = vmatprep.subr.bf16.mxu0 %v6960_v48  ;;  %7267 = vmatprep.subr.bf16.mxu1 %v6962_v50  ;;  %v7063_v48 = vld [vmem:[#allocation2 + $0x640] sm:$0xff]  ;;  %v7065_v50 = vld [vmem:[#allocation2 + $0x650] sm:$0xff] }
 0x575   :  { %7186 = vmatpush1.bf16.msra.mxu0 %v6959_v51  ;;  %7268 = vmatpush1.bf16.msra.mxu1 %v6961_v52  ;;  %v7072_v51 = vld [vmem:[#allocation2 + $0x688] sm:$0xff]  ;;  %v7074_v52 = vld [vmem:[#allocation2 + $0x698] sm:$0xff] }
 0x576   :  { %7187 = vmatprep.subr.bf16.mxu0 %v6968_v55  ;;  %7269 = vmatprep.subr.bf16.mxu1 %v6970_v46  ;;  %v7071_v55 = vld [vmem:[#allocation2 + $0x680] sm:$0xff]  ;;  %v7073_v46 = vld [vmem:[#allocation2 + $0x690] sm:$0xff] }
 0x579   :  { %7188 = vmatpush1.bf16.msra.mxu0 %v6967_v56  ;;  %7270 = vmatpush1.bf16.msra.mxu1 %v6969_v57  ;;  %v7080_v56 = vld [vmem:[#allocation2 + $0x6c8] sm:$0xff]  ;;  %v7082_v57 = vld [vmem:[#allocation2 + $0x6d8] sm:$0xff] }
 0x57a   :  { %7189 = vmatprep.subr.bf16.mxu0 %v6976_v58  ;;  %7271 = vmatprep.subr.bf16.mxu1 %v6978_v59  ;;  %v7079_v58 = vld [vmem:[#allocation2 + $0x6c0] sm:$0xff]  ;;  %v7081_v59 = vld [vmem:[#allocation2 + $0x6d0] sm:$0xff] }
 0x57d   :  { %7190 = vmatpush1.bf16.msra.mxu0 %v6975_v60  ;;  %7272 = vmatpush1.bf16.msra.mxu1 %v6977_v61  ;;  %v7088_v60 = vld [vmem:[#allocation2 + $0x708] sm:$0xff]  ;;  %v7090_v61 = vld [vmem:[#allocation2 + $0x718] sm:$0xff] }
 0x57e   :  { %7191 = vmatprep.subr.bf16.mxu0 %v6984_v62  ;;  %7273 = vmatprep.subr.bf16.mxu1 %v6986_v63  ;;  %v7087_v62 = vld [vmem:[#allocation2 + $0x700] sm:$0xff]  ;;  %v7089_v63 = vld [vmem:[#allocation2 + $0x710] sm:$0xff] }
 0x581   :  { %7192 = vmatpush1.bf16.msra.mxu0 %v6983_v0  ;;  %7274 = vmatpush1.bf16.msra.mxu1 %v6985_v1  ;;  %v7096_v0 = vld [vmem:[#allocation2 + $0x748] sm:$0xff]  ;;  %v7098_v1 = vld [vmem:[#allocation2 + $0x758] sm:$0xff] }
 0x582   :  { %7202 = vmatprep.subr.bf16.mxu0 %v6992_v2  ;;  %7284 = vmatprep.subr.bf16.mxu1 %v6994_v3  ;;  %v7095_v2 = vld [vmem:[#allocation2 + $0x740] sm:$0xff]  ;;  %v7097_v3 = vld [vmem:[#allocation2 + $0x750] sm:$0xff] }
 0x584   :  { %7194 = vmatmul.mubr.bf16.vlgmr.msra.gmra.mrb[12].mxu0 %v11044_v4  ;;  %7276 = vmatmul.mubr.bf16.vlgmr.msra.gmra.mrb[12].mxu1 %v11044_v4 }
 0x585   :  { %7203 = vmatpush1.bf16.msra.mxu0 %v6991_v5  ;;  %7285 = vmatpush1.bf16.msra.mxu1 %v6993_v6  ;;  %v7104_v5 = vld [vmem:[#allocation2 + $0x788] sm:$0xff]  ;;  %v7106_v6 = vld [vmem:[#allocation2 + $0x798] sm:$0xff] }
 0x586   :  { %7204 = vmatprep.subr.bf16.mxu0 %v7000_v7  ;;  %7286 = vmatprep.subr.bf16.mxu1 %v7002_v8  ;;  %v7103_v7 = vld [vmem:[#allocation2 + $0x780] sm:$0xff]  ;;  %v7105_v8 = vld [vmem:[#allocation2 + $0x790] sm:$0xff] }
 0x587   :  { %7234 = vmatprep.mubr.bf16.mxu0 %v11049_v9  ;;  %7316 = vmatprep.mubr.bf16.mxu1 %v11049_v9 }
 0x589   :  { %7205 = vmatpush1.bf16.msra.mxu0 %v6999_v39  ;;  %7287 = vmatpush1.bf16.msra.mxu1 %v7001_v44  ;;  %v7112_v39 = vld [vmem:[#allocation2 + $0x7c8] sm:$0xff]  ;;  %v7114_v44 = vld [vmem:[#allocation2 + $0x7d8] sm:$0xff] }
 0x58a   :  { %7206 = vmatprep.subr.bf16.mxu0 %v7008_v10  ;;  %7288 = vmatprep.subr.bf16.mxu1 %v7010_v11  ;;  %v7111_v10 = vld [vmem:[#allocation2 + $0x7c0] sm:$0xff]  ;;  %v7113_v11 = vld [vmem:[#allocation2 + $0x7d0] sm:$0xff] }
 0x58d   :  { %7207 = vmatpush1.bf16.msra.mxu0 %v7007_v45  ;;  %7289 = vmatpush1.bf16.msra.mxu1 %v7009_v53  ;;  %v6868_v45 = vld [vmem:[#allocation2 + $0x28] sm:$0xff]  ;;  %v6870_v53 = vld [vmem:[#allocation2 + $0x38] sm:$0xff] }
 0x58e   :  { %7208 = vmatprep.subr.bf16.mxu0 %v7016_v12  ;;  %7290 = vmatprep.subr.bf16.mxu1 %v7018_v13  ;;  %v11058_v12 = vpack.c.bf16 %v6853_v49, %v6853_v49  ;;  %v6867_v13 = vld [vmem:[#allocation2 + $0x20] sm:$0xff]  ;;  %v6884_v49 = vld [vmem:[#allocation2 + $0xa8] sm:$0xff] }
 0x591   :  { %7209 = vmatpush1.bf16.msra.mxu0 %v7015_v14  ;;  %7291 = vmatpush1.bf16.msra.mxu1 %v7017_v15  ;;  %v6869_v14 = vld [vmem:[#allocation2 + $0x30] sm:$0xff]  ;;  %v6876_v15 = vld [vmem:[#allocation2 + $0x68] sm:$0xff] }
 0x592   :  { %7210 = vmatprep.subr.bf16.mxu0 %v7024_v18  ;;  %7292 = vmatprep.subr.bf16.mxu1 %v7026_v22  ;;  %v6878_v18 = vld [vmem:[#allocation2 + $0x78] sm:$0xff]  ;;  %v6877_v22 = vld [vmem:[#allocation2 + $0x70] sm:$0xff] }
 0x595   :  { %7211 = vmatpush1.bf16.msra.mxu0 %v7023_v23  ;;  %7293 = vmatpush1.bf16.msra.mxu1 %v7025_v24  ;;  %v6886_v23 = vld [vmem:[#allocation2 + $0xb8] sm:$0xff]  ;;  %v6883_v24 = vld [vmem:[#allocation2 + $0xa0] sm:$0xff] }
 0x596   :  { %7212 = vmatprep.subr.bf16.mxu0 %v7032_v25  ;;  %7294 = vmatprep.subr.bf16.mxu1 %v7034_v26  ;;  %v6885_v25 = vld [vmem:[#allocation2 + $0xb0] sm:$0xff]  ;;  %v6892_v26 = vld [vmem:[#allocation2 + $0xe8] sm:$0xff] }
 0x599   :  { %7213 = vmatpush1.bf16.msra.mxu0 %v7031_v27  ;;  %7295 = vmatpush1.bf16.msra.mxu1 %v7033_v28  ;;  %v6894_v27 = vld [vmem:[#allocation2 + $0xf8] sm:$0xff]  ;;  %v6891_v28 = vld [vmem:[#allocation2 + $0xe0] sm:$0xff] }
 0x59a   :  { %7214 = vmatprep.subr.bf16.mxu0 %v7040_v29  ;;  %7296 = vmatprep.subr.bf16.mxu1 %v7042_v30  ;;  %v6893_v29 = vld [vmem:[#allocation2 + $0xf0] sm:$0xff]  ;;  %v6900_v30 = vld [vmem:[#allocation2 + $0x128] sm:$0xff] }
 0x59d   :  { %7215 = vmatpush1.bf16.msra.mxu0 %v7039_v31  ;;  %7297 = vmatpush1.bf16.msra.mxu1 %v7041_v32  ;;  %v6902_v31 = vld [vmem:[#allocation2 + $0x138] sm:$0xff]  ;;  %v6901_v32 = vld [vmem:[#allocation2 + $0x130] sm:$0xff] }
 0x59e   :  { %7216 = vmatprep.subr.bf16.mxu0 %v7048_v33  ;;  %7298 = vmatprep.subr.bf16.mxu1 %v7050_v34  ;;  %v6908_v33 = vld [vmem:[#allocation2 + $0x168] sm:$0xff]  ;;  %v6910_v34 = vld [vmem:[#allocation2 + $0x178] sm:$0xff] }
 0x5a1   :  { %7217 = vmatpush1.bf16.msra.mxu0 %v7047_v35  ;;  %7299 = vmatpush1.bf16.msra.mxu1 %v7049_v36  ;;  %v6907_v35 = vld [vmem:[#allocation2 + $0x160] sm:$0xff]  ;;  %v6909_v36 = vld [vmem:[#allocation2 + $0x170] sm:$0xff] }
 0x5a2   :  { %7218 = vmatprep.subr.bf16.mxu0 %v7056_v37  ;;  %7300 = vmatprep.subr.bf16.mxu1 %v7058_v38  ;;  %v6916_v37 = vld [vmem:[#allocation2 + $0x1a8] sm:$0xff]  ;;  %v6918_v38 = vld [vmem:[#allocation2 + $0x1b8] sm:$0xff] }
 0x5a5   :  { %7219 = vmatpush1.bf16.msra.mxu0 %v7055_v41  ;;  %7301 = vmatpush1.bf16.msra.mxu1 %v7057_v42  ;;  %v6915_v41 = vld [vmem:[#allocation2 + $0x1a0] sm:$0xff]  ;;  %v6917_v42 = vld [vmem:[#allocation2 + $0x1b0] sm:$0xff] }
 0x5a6   :  { %7220 = vmatprep.subr.bf16.mxu0 %v7064_v43  ;;  %7302 = vmatprep.subr.bf16.mxu1 %v7066_v47  ;;  %v6924_v43 = vld [vmem:[#allocation2 + $0x1e8] sm:$0xff]  ;;  %v6926_v47 = vld [vmem:[#allocation2 + $0x1f8] sm:$0xff] }
 0x5a9   :  { %7221 = vmatpush1.bf16.msra.mxu0 %v7063_v48  ;;  %7303 = vmatpush1.bf16.msra.mxu1 %v7065_v50  ;;  %v6923_v48 = vld [vmem:[#allocation2 + $0x1e0] sm:$0xff]  ;;  %v6925_v50 = vld [vmem:[#allocation2 + $0x1f0] sm:$0xff] }
 0x5aa   :  { %7222 = vmatprep.subr.bf16.mxu0 %v7072_v51  ;;  %7304 = vmatprep.subr.bf16.mxu1 %v7074_v52  ;;  %v6932_v51 = vld [vmem:[#allocation2 + $0x228] sm:$0xff]  ;;  %v6934_v52 = vld [vmem:[#allocation2 + $0x238] sm:$0xff] }
 0x5ad   :  { %7223 = vmatpush1.bf16.msra.mxu0 %v7071_v55  ;;  %7305 = vmatpush1.bf16.msra.mxu1 %v7073_v46  ;;  %v6931_v55 = vld [vmem:[#allocation2 + $0x220] sm:$0xff]  ;;  %v6933_v46 = vld [vmem:[#allocation2 + $0x230] sm:$0xff] }
 0x5ae   :  { %7224 = vmatprep.subr.bf16.mxu0 %v7080_v56  ;;  %7306 = vmatprep.subr.bf16.mxu1 %v7082_v57  ;;  %v6940_v56 = vld [vmem:[#allocation2 + $0x268] sm:$0xff]  ;;  %v6942_v57 = vld [vmem:[#allocation2 + $0x278] sm:$0xff] }
 0x5b1   :  { %7225 = vmatpush1.bf16.msra.mxu0 %v7079_v58  ;;  %7307 = vmatpush1.bf16.msra.mxu1 %v7081_v59  ;;  %v6939_v58 = vld [vmem:[#allocation2 + $0x260] sm:$0xff]  ;;  %v6941_v59 = vld [vmem:[#allocation2 + $0x270] sm:$0xff] }
 0x5b2   :  { %7226 = vmatprep.subr.bf16.mxu0 %v7088_v60  ;;  %7308 = vmatprep.subr.bf16.mxu1 %v7090_v61  ;;  %v6948_v60 = vld [vmem:[#allocation2 + $0x2a8] sm:$0xff]  ;;  %v6950_v61 = vld [vmem:[#allocation2 + $0x2b8] sm:$0xff] }
 0x5b5   :  { %7227 = vmatpush1.bf16.msra.mxu0 %v7087_v62  ;;  %7309 = vmatpush1.bf16.msra.mxu1 %v7089_v63  ;;  %v6947_v62 = vld [vmem:[#allocation2 + $0x2a0] sm:$0xff]  ;;  %v6949_v63 = vld [vmem:[#allocation2 + $0x2b0] sm:$0xff] }
 0x5b6   :  { %7228 = vmatprep.subr.bf16.mxu0 %v7096_v0  ;;  %7310 = vmatprep.subr.bf16.mxu1 %v7098_v1  ;;  %v6956_v0 = vld [vmem:[#allocation2 + $0x2e8] sm:$0xff]  ;;  %v6958_v1 = vld [vmem:[#allocation2 + $0x2f8] sm:$0xff] }
 0x5b9   :  { %7229 = vmatpush1.bf16.msra.mxu0 %v7095_v2  ;;  %7311 = vmatpush1.bf16.msra.mxu1 %v7097_v3  ;;  %v6955_v2 = vld [vmem:[#allocation2 + $0x2e0] sm:$0xff]  ;;  %v6957_v3 = vld [vmem:[#allocation2 + $0x2f0] sm:$0xff] }
 0x5ba   :  { %7230 = vmatprep.subr.bf16.mxu0 %v7104_v5  ;;  %7312 = vmatprep.subr.bf16.mxu1 %v7106_v6  ;;  %v6964_v5 = vld [vmem:[#allocation2 + $0x328] sm:$0xff]  ;;  %v6966_v6 = vld [vmem:[#allocation2 + $0x338] sm:$0xff] }
 0x5bd   :  { %7231 = vmatpush1.bf16.msra.mxu0 %v7103_v7  ;;  %7313 = vmatpush1.bf16.msra.mxu1 %v7105_v8  ;;  %v6963_v7 = vld [vmem:[#allocation2 + $0x320] sm:$0xff]  ;;  %v6965_v8 = vld [vmem:[#allocation2 + $0x330] sm:$0xff] }
 0x5be   :  { %7232 = vmatprep.subr.bf16.mxu0 %v7112_v39  ;;  %7314 = vmatprep.subr.bf16.mxu1 %v7114_v44  ;;  %v6972_v39 = vld [vmem:[#allocation2 + $0x368] sm:$0xff]  ;;  %v6974_v44 = vld [vmem:[#allocation2 + $0x378] sm:$0xff] }
 0x5c1   :  { %7233 = vmatpush1.bf16.msra.mxu0 %v7111_v10  ;;  %7315 = vmatpush1.bf16.msra.mxu1 %v7113_v11  ;;  %v6971_v10 = vld [vmem:[#allocation2 + $0x360] sm:$0xff]  ;;  %v6973_v11 = vld [vmem:[#allocation2 + $0x370] sm:$0xff] }
 0x5c2   :  { %7325 = vmatprep.subr.bf16.mxu0 %v6868_v45  ;;  %7407 = vmatprep.subr.bf16.mxu1 %v6870_v53  ;;  %v6980_v45 = vld [vmem:[#allocation2 + $0x3a8] sm:$0xff]  ;;  %v6982_v53 = vld [vmem:[#allocation2 + $0x3b8] sm:$0xff] }
 0x5c4   :  { %7235 = vmatmul.mubr.bf16.vlgmr.msra.gmra.mrb[12].mxu0 %v11058_v12  ;;  %7317 = vmatmul.mubr.bf16.vlgmr.msra.gmra.mrb[12].mxu1 %v11058_v12 }
 0x5c5   :  { %7326 = vmatpush1.bf16.msra.mxu0 %v6867_v13  ;;  %7408 = vmatpush1.bf16.msra.mxu1 %v6869_v14  ;;  %v6979_v13 = vld [vmem:[#allocation2 + $0x3a0] sm:$0xff]  ;;  %v6981_v14 = vld [vmem:[#allocation2 + $0x3b0] sm:$0xff] }
 0x5c6   :  { %7327 = vmatprep.subr.bf16.mxu0 %v6876_v15  ;;  %7409 = vmatprep.subr.bf16.mxu1 %v6878_v18  ;;  %v6988_v15 = vld [vmem:[#allocation2 + $0x3e8] sm:$0xff]  ;;  %v6990_v18 = vld [vmem:[#allocation2 + $0x3f8] sm:$0xff] }
 0x5c7   :  { %7357 = vmatprep.mubr.bf16.mxu0 %v11037_v54  ;;  %7439 = vmatprep.mubr.bf16.mxu1 %v11037_v54  ;;  %v6899_v54 = vld [vmem:[#allocation2 + $0x120] sm:$0xff] }
 0x5c9   :  { %7328 = vmatpush1.bf16.msra.mxu0 %v6875_v40  ;;  %7410 = vmatpush1.bf16.msra.mxu1 %v6877_v22  ;;  %v6987_v40 = vld [vmem:[#allocation2 + $0x3e0] sm:$0xff]  ;;  %v6989_v22 = vld [vmem:[#allocation2 + $0x3f0] sm:$0xff] }
 0x5ca   :  { %7329 = vmatprep.subr.bf16.mxu0 %v6884_v49  ;;  %7411 = vmatprep.subr.bf16.mxu1 %v6886_v23  ;;  %v6996_v49 = vld [vmem:[#allocation2 + $0x428] sm:$0xff]  ;;  %v6998_v23 = vld [vmem:[#allocation2 + $0x438] sm:$0xff] }
 0x5cd   :  { %7330 = vmatpush1.bf16.msra.mxu0 %v6883_v24  ;;  %7412 = vmatpush1.bf16.msra.mxu1 %v6885_v25  ;;  %v6995_v24 = vld [vmem:[#allocation2 + $0x420] sm:$0xff]  ;;  %v6997_v25 = vld [vmem:[#allocation2 + $0x430] sm:$0xff] }
 0x5ce   :  { %7331 = vmatprep.subr.bf16.mxu0 %v6892_v26  ;;  %7413 = vmatprep.subr.bf16.mxu1 %v6894_v27  ;;  %v7004_v26 = vld [vmem:[#allocation2 + $0x468] sm:$0xff]  ;;  %v7006_v27 = vld [vmem:[#allocation2 + $0x478] sm:$0xff] }
 0x5d1   :  { %7332 = vmatpush1.bf16.msra.mxu0 %v6891_v28  ;;  %7414 = vmatpush1.bf16.msra.mxu1 %v6893_v29  ;;  %v7003_v28 = vld [vmem:[#allocation2 + $0x460] sm:$0xff]  ;;  %v7005_v29 = vld [vmem:[#allocation2 + $0x470] sm:$0xff] }
 0x5d2   :  { %7333 = vmatprep.subr.bf16.mxu0 %v6900_v30  ;;  %7415 = vmatprep.subr.bf16.mxu1 %v6902_v31  ;;  %v7012_v30 = vld [vmem:[#allocation2 + $0x4a8] sm:$0xff]  ;;  %v7014_v31 = vld [vmem:[#allocation2 + $0x4b8] sm:$0xff] }
 0x5d5   :  { %7334 = vmatpush1.bf16.msra.mxu0 %v6899_v54  ;;  %7416 = vmatpush1.bf16.msra.mxu1 %v6901_v32  ;;  %v7011_v54 = vld [vmem:[#allocation2 + $0x4a0] sm:$0xff]  ;;  %v7013_v32 = vld [vmem:[#allocation2 + $0x4b0] sm:$0xff] }
 0x5d6   :  { %7335 = vmatprep.subr.bf16.mxu0 %v6908_v33  ;;  %7417 = vmatprep.subr.bf16.mxu1 %v6910_v34  ;;  %v7020_v33 = vld [vmem:[#allocation2 + $0x4e8] sm:$0xff]  ;;  %v7019_v34 = vld [vmem:[#allocation2 + $0x4e0] sm:$0xff] }
 0x5d9   :  { %7336 = vmatpush1.bf16.msra.mxu0 %v6907_v35  ;;  %7418 = vmatpush1.bf16.msra.mxu1 %v6909_v36  ;;  %v7021_v35 = vld [vmem:[#allocation2 + $0x4f0] sm:$0xff]  ;;  %v7028_v36 = vld [vmem:[#allocation2 + $0x528] sm:$0xff] }
 0x5da   :  { %7337 = vmatprep.subr.bf16.mxu0 %v6916_v37  ;;  %7419 = vmatprep.subr.bf16.mxu1 %v6918_v38  ;;  %v7030_v37 = vld [vmem:[#allocation2 + $0x538] sm:$0xff]  ;;  %v7029_v38 = vld [vmem:[#allocation2 + $0x530] sm:$0xff] }
 0x5dd   :  { %7338 = vmatpush1.bf16.msra.mxu0 %v6915_v41  ;;  %7420 = vmatpush1.bf16.msra.mxu1 %v6917_v42  ;;  %v7036_v41 = vld [vmem:[#allocation2 + $0x568] sm:$0xff]  ;;  %v7038_v42 = vld [vmem:[#allocation2 + $0x578] sm:$0xff] }
 0x5de   :  { %7339 = vmatprep.subr.bf16.mxu0 %v6924_v43  ;;  %7421 = vmatprep.subr.bf16.mxu1 %v6926_v47  ;;  %v7035_v43 = vld [vmem:[#allocation2 + $0x560] sm:$0xff]  ;;  %v7037_v47 = vld [vmem:[#allocation2 + $0x570] sm:$0xff] }
 0x5e1   :  { %7340 = vmatpush1.bf16.msra.mxu0 %v6923_v48  ;;  %7422 = vmatpush1.bf16.msra.mxu1 %v6925_v50  ;;  %v7044_v48 = vld [vmem:[#allocation2 + $0x5a8] sm:$0xff]  ;;  %v7046_v50 = vld [vmem:[#allocation2 + $0x5b8] sm:$0xff] }
 0x5e2   :  { %7341 = vmatprep.subr.bf16.mxu0 %v6932_v51  ;;  %7423 = vmatprep.subr.bf16.mxu1 %v6934_v52  ;;  %v7043_v51 = vld [vmem:[#allocation2 + $0x5a0] sm:$0xff]  ;;  %v7045_v52 = vld [vmem:[#allocation2 + $0x5b0] sm:$0xff] }
 0x5e5   :  { %7342 = vmatpush1.bf16.msra.mxu0 %v6931_v55  ;;  %7424 = vmatpush1.bf16.msra.mxu1 %v6933_v46  ;;  %v7052_v55 = vld [vmem:[#allocation2 + $0x5e8] sm:$0xff]  ;;  %v7054_v46 = vld [vmem:[#allocation2 + $0x5f8] sm:$0xff] }
 0x5e6   :  { %7343 = vmatprep.subr.bf16.mxu0 %v6940_v56  ;;  %7425 = vmatprep.subr.bf16.mxu1 %v6942_v57  ;;  %v7051_v56 = vld [vmem:[#allocation2 + $0x5e0] sm:$0xff]  ;;  %v7053_v57 = vld [vmem:[#allocation2 + $0x5f0] sm:$0xff] }
 0x5e9   :  { %7344 = vmatpush1.bf16.msra.mxu0 %v6939_v58  ;;  %7426 = vmatpush1.bf16.msra.mxu1 %v6941_v59  ;;  %v7060_v58 = vld [vmem:[#allocation2 + $0x628] sm:$0xff]  ;;  %v7062_v59 = vld [vmem:[#allocation2 + $0x638] sm:$0xff] }
 0x5ea   :  { %7345 = vmatprep.subr.bf16.mxu0 %v6948_v60  ;;  %7427 = vmatprep.subr.bf16.mxu1 %v6950_v61  ;;  %v7059_v60 = vld [vmem:[#allocation2 + $0x620] sm:$0xff]  ;;  %v7061_v61 = vld [vmem:[#allocation2 + $0x630] sm:$0xff] }
 0x5ed   :  { %7346 = vmatpush1.bf16.msra.mxu0 %v6947_v62  ;;  %7428 = vmatpush1.bf16.msra.mxu1 %v6949_v63  ;;  %v7068_v62 = vld [vmem:[#allocation2 + $0x668] sm:$0xff]  ;;  %v7070_v63 = vld [vmem:[#allocation2 + $0x678] sm:$0xff] }
 0x5ee   :  { %7347 = vmatprep.subr.bf16.mxu0 %v6956_v0  ;;  %7429 = vmatprep.subr.bf16.mxu1 %v6958_v1  ;;  %v7067_v0 = vld [vmem:[#allocation2 + $0x660] sm:$0xff]  ;;  %v7069_v1 = vld [vmem:[#allocation2 + $0x670] sm:$0xff] }
 0x5f1   :  { %7348 = vmatpush1.bf16.msra.mxu0 %v6955_v2  ;;  %7430 = vmatpush1.bf16.msra.mxu1 %v6957_v3  ;;  %v7076_v2 = vld [vmem:[#allocation2 + $0x6a8] sm:$0xff]  ;;  %v7078_v3 = vld [vmem:[#allocation2 + $0x6b8] sm:$0xff] }
 0x5f2   :  { %7349 = vmatprep.subr.bf16.mxu0 %v6964_v5  ;;  %7431 = vmatprep.subr.bf16.mxu1 %v6966_v6  ;;  %v7075_v5 = vld [vmem:[#allocation2 + $0x6a0] sm:$0xff]  ;;  %v7077_v6 = vld [vmem:[#allocation2 + $0x6b0] sm:$0xff] }
 0x5f5   :  { %7350 = vmatpush1.bf16.msra.mxu0 %v6963_v7  ;;  %7432 = vmatpush1.bf16.msra.mxu1 %v6965_v8  ;;  %v7084_v7 = vld [vmem:[#allocation2 + $0x6e8] sm:$0xff]  ;;  %v7086_v8 = vld [vmem:[#allocation2 + $0x6f8] sm:$0xff] }
 0x5f6   :  { %7351 = vmatprep.subr.bf16.mxu0 %v6972_v39  ;;  %7433 = vmatprep.subr.bf16.mxu1 %v6974_v44  ;;  %v7083_v39 = vld [vmem:[#allocation2 + $0x6e0] sm:$0xff]  ;;  %v7085_v44 = vld [vmem:[#allocation2 + $0x6f0] sm:$0xff] }
 0x5f9   :  { %7352 = vmatpush1.bf16.msra.mxu0 %v6971_v10  ;;  %7434 = vmatpush1.bf16.msra.mxu1 %v6973_v11  ;;  %v7092_v10 = vld [vmem:[#allocation2 + $0x728] sm:$0xff]  ;;  %v7094_v11 = vld [vmem:[#allocation2 + $0x738] sm:$0xff] }
 0x5fa   :  { %7353 = vmatprep.subr.bf16.mxu0 %v6980_v45  ;;  %7435 = vmatprep.subr.bf16.mxu1 %v6982_v53  ;;  %v7091_v45 = vld [vmem:[#allocation2 + $0x720] sm:$0xff]  ;;  %v7093_v53 = vld [vmem:[#allocation2 + $0x730] sm:$0xff] }
 0x5fd   :  { %7354 = vmatpush1.bf16.msra.mxu0 %v6979_v13  ;;  %7436 = vmatpush1.bf16.msra.mxu1 %v6981_v14  ;;  %v7100_v13 = vld [vmem:[#allocation2 + $0x768] sm:$0xff]  ;;  %v7102_v14 = vld [vmem:[#allocation2 + $0x778] sm:$0xff] }
 0x5fe   :  { %7355 = vmatprep.subr.bf16.mxu0 %v6988_v15  ;;  %7437 = vmatprep.subr.bf16.mxu1 %v6990_v18  ;;  %v7099_v15 = vld [vmem:[#allocation2 + $0x760] sm:$0xff]  ;;  %v7101_v18 = vld [vmem:[#allocation2 + $0x770] sm:$0xff] }
 0x601   :  { %7356 = vmatpush1.bf16.msra.mxu0 %v6987_v40  ;;  %7438 = vmatpush1.bf16.msra.mxu1 %v6989_v22  ;;  %v7108_v40 = vld [vmem:[#allocation2 + $0x7a8] sm:$0xff]  ;;  %v7110_v22 = vld [vmem:[#allocation2 + $0x7b8] sm:$0xff] }
 0x602   :  { %7366 = vmatprep.subr.bf16.mxu0 %v6996_v49  ;;  %7448 = vmatprep.subr.bf16.mxu1 %v6998_v23  ;;  %v7107_v49 = vld [vmem:[#allocation2 + $0x7a0] sm:$0xff]  ;;  %v7109_v23 = vld [vmem:[#allocation2 + $0x7b0] sm:$0xff] }
 0x604   :  { %7358 = vmatmul.mubr.bf16.vlgmr.msra.gmra.mrb[16].mxu0 %v11044_v4  ;;  %7440 = vmatmul.mubr.bf16.vlgmr.msra.gmra.mrb[16].mxu1 %v11044_v4  ;;  %v7022_v4 = vld [vmem:[#allocation2 + $0x4f8] sm:$0xff] }
 0x605   :  { %7367 = vmatpush1.bf16.msra.mxu0 %v6995_v24  ;;  %7449 = vmatpush1.bf16.msra.mxu1 %v6997_v25  ;;  %v7116_v24 = vld [vmem:[#allocation2 + $0x7e8] sm:$0xff]  ;;  %v7118_v25 = vld [vmem:[#allocation2 + $0x7f8] sm:$0xff] }
 0x606   :  { %7368 = vmatprep.subr.bf16.mxu0 %v7004_v26  ;;  %7450 = vmatprep.subr.bf16.mxu1 %v7006_v27  ;;  %v7115_v26 = vld [vmem:[#allocation2 + $0x7e0] sm:$0xff]  ;;  %v7117_v27 = vld [vmem:[#allocation2 + $0x7f0] sm:$0xff] }
 0x607   :  { %7398 = vmatprep.mubr.bf16.mxu0 %v11049_v9  ;;  %7480 = vmatprep.mubr.bf16.mxu1 %v11049_v9  ;;  %v7027_v9 = vld [vmem:[#allocation2 + $0x520] sm:$0xff] }
 0x609   :  { %7369 = vmatpush1.bf16.msra.mxu0 %v7003_v28  ;;  %7451 = vmatpush1.bf16.msra.mxu1 %v7005_v29  ;;  %v7119_v28 = vld [vmem:[#allocation12] sm:$0xff] }
 0x60a   :  { %7370 = vmatprep.subr.bf16.mxu0 %v7012_v30  ;;  %7452 = vmatprep.subr.bf16.mxu1 %v7014_v31  ;;  %v7124_v29 = vrot.slane %v7119_v28, %v11006_v17  ;;  %v7132_v30 = vrot.slane %v7119_v28, %v11009_v19  ;;  %v7128_v31 = vrot.slane %v7119_v28, %v11012_v20  ;;  %v7139_v20 = vsub.s32 4, %v11003_v16 }
 0x60d   :  { %7371 = vmatpush1.bf16.msra.mxu0 %v7011_v54  ;;  %7453 = vmatpush1.bf16.msra.mxu1 %v7013_v32  ;;  %v7136_v54 = vrot.slane %v7119_v28, %v11015_v21  ;;  %v7147_v21 = vsub.s32 6, %v11003_v16 }
 0x60e   :  { %7372 = vmatprep.subr.bf16.mxu0 %v7020_v33  ;;  %7454 = vmatprep.subr.bf16.mxu1 %v7022_v4 }
 0x611   :  { %7373 = vmatpush1.bf16.msra.mxu0 %v7019_v34  ;;  %7455 = vmatpush1.bf16.msra.mxu1 %v7021_v35 }
 0x612   :  { %7374 = vmatprep.subr.bf16.mxu0 %v7028_v36  ;;  %7456 = vmatprep.subr.bf16.mxu1 %v7030_v37 }
 0x615   :  { %7375 = vmatpush1.bf16.msra.mxu0 %v7027_v9  ;;  %7457 = vmatpush1.bf16.msra.mxu1 %v7029_v38 }
 0x616   :  { %7376 = vmatprep.subr.bf16.mxu0 %v7036_v41  ;;  %7458 = vmatprep.subr.bf16.mxu1 %v7038_v42 }
 0x619   :  { %7377 = vmatpush1.bf16.msra.mxu0 %v7035_v43  ;;  %7459 = vmatpush1.bf16.msra.mxu1 %v7037_v47 }
 0x61a   :  { %7378 = vmatprep.subr.bf16.mxu0 %v7044_v48  ;;  %7460 = vmatprep.subr.bf16.mxu1 %v7046_v50  ;;  %v7143_v48 = vsub.s32 5, %v11003_v16  ;;  %v7151_v50 = vsub.s32 7, %v11003_v16 }
 0x61d   :  { %7379 = vmatpush1.bf16.msra.mxu0 %v7043_v51  ;;  %7461 = vmatpush1.bf16.msra.mxu1 %v7045_v52  ;;  %v7140_v51 = vrot.slane %v7119_v28, %v7139_v20  ;;  %v7148_v52 = vrot.slane %v7119_v28, %v7147_v21 }
 0x61e   :  { %7380 = vmatprep.subr.bf16.mxu0 %v7052_v55  ;;  %7462 = vmatprep.subr.bf16.mxu1 %v7054_v46  ;;  %v7144_v55 = vrot.slane %v7119_v28, %v7143_v48  ;;  %v7152_v46 = vrot.slane %v7119_v28, %v7151_v50 }
 0x621   :  { %7381 = vmatpush1.bf16.msra.mxu0 %v7051_v56  ;;  %7463 = vmatpush1.bf16.msra.mxu1 %v7053_v57 }
 0x622   :  { %7382 = vmatprep.subr.bf16.mxu0 %v7060_v58  ;;  %7464 = vmatprep.subr.bf16.mxu1 %v7062_v59 }
 0x625   :  { %7383 = vmatpush1.bf16.msra.mxu0 %v7059_v60  ;;  %7465 = vmatpush1.bf16.msra.mxu1 %v7061_v61 }
 0x626   :  { %7384 = vmatprep.subr.bf16.mxu0 %v7068_v62  ;;  %7466 = vmatprep.subr.bf16.mxu1 %v7070_v63 }
 0x629   :  { %7385 = vmatpush1.bf16.msra.mxu0 %v7067_v0  ;;  %7467 = vmatpush1.bf16.msra.mxu1 %v7069_v1 }
 0x62a   :  { %7386 = vmatprep.subr.bf16.mxu0 %v7076_v2  ;;  %7468 = vmatprep.subr.bf16.mxu1 %v7078_v3 }
 0x62d   :  { %7387 = vmatpush1.bf16.msra.mxu0 %v7075_v5  ;;  %7469 = vmatpush1.bf16.msra.mxu1 %v7077_v6 }
 0x62e   :  { %7388 = vmatprep.subr.bf16.mxu0 %v7084_v7  ;;  %7470 = vmatprep.subr.bf16.mxu1 %v7086_v8 }
 0x631   :  { %7389 = vmatpush1.bf16.msra.mxu0 %v7083_v39  ;;  %7471 = vmatpush1.bf16.msra.mxu1 %v7085_v44 }
 0x632   :  { %7390 = vmatprep.subr.bf16.mxu0 %v7092_v10  ;;  %7472 = vmatprep.subr.bf16.mxu1 %v7094_v11 }
 0x635   :  { %7391 = vmatpush1.bf16.msra.mxu0 %v7091_v45  ;;  %7473 = vmatpush1.bf16.msra.mxu1 %v7093_v53 }
 0x636   :  { %7392 = vmatprep.subr.bf16.mxu0 %v7100_v13  ;;  %7474 = vmatprep.subr.bf16.mxu1 %v7102_v14 }
 0x639   :  { %7393 = vmatpush1.bf16.msra.mxu0 %v7099_v15  ;;  %7475 = vmatpush1.bf16.msra.mxu1 %v7101_v18 }
 0x63a   :  { %7394 = vmatprep.subr.bf16.mxu0 %v7108_v40  ;;  %7476 = vmatprep.subr.bf16.mxu1 %v7110_v22 }
 0x63d   :  { %7395 = vmatpush1.bf16.msra.mxu0 %v7107_v49  ;;  %7477 = vmatpush1.bf16.msra.mxu1 %v7109_v23 }
 0x63e   :  { %7396 = vmatprep.subr.bf16.mxu0 %v7116_v24  ;;  %7478 = vmatprep.subr.bf16.mxu1 %v7118_v25 }
 0x641   :  { %7397 = vmatpush1.bf16.msra.mxu0 %v7115_v26  ;;  %7479 = vmatpush1.bf16.msra.mxu1 %v7117_v27 }
 0x644   :  { %7399 = vmatmul.mubr.bf16.vlgmr.msra.gmra.mrb[16].mxu0 %v11058_v12  ;;  %7481 = vmatmul.mubr.bf16.vlgmr.msra.gmra.mrb[16].mxu1 %v11058_v12 }
 0x697   :  { %v7236_v32 = vpop.f32.mrb[12].mxu0  ;;  %v7318_v33 = vpop.f32.mrb[12].mxu1 }
 0x698   :  { %v7951_v4 = vadd.f32 %v7236_v32, %v7124_v29  ;;  %v7953_v34 = vadd.f32 %v7318_v33, %v7132_v30  ;;  %v7238_v35 = vpop.f32.mrb[13].mxu0  ;;  %v7320_v36 = vpop.f32.mrb[13].mxu1 }
 0x699   :  { %v7952_v37 = vadd.f32 %v7238_v35, %v7128_v31  ;;  %v7954_v9 = vadd.f32 %v7320_v36, %v7136_v54  ;;  %v7240_v38 = vpop.f32.mrb[14].mxu0  ;;  %v7322_v41 = vpop.f32.mrb[14].mxu1 }
 0x69a   :  { %v7489_v12 = vmax.f32 %v7951_v4, 0.0  ;;  %v7491_v42 = vmax.f32 %v7953_v34, 0.0  ;;  %v7241_v43 = vpop.f32.mrb[15].mxu0  ;;  %v7323_v17 = vpop.f32.mrb[15].mxu1 }
 0x69b   :  { %v7490_v47 = vmax.f32 %v7952_v37, 0.0  ;;  %v7492_v19 = vmax.f32 %v7954_v9, 0.0 }
 0x69c   :  { %7497 = vst [vmem:[%s11111_s9] sm:$0xff] %v7489_v12  ;;  %7499 = vst [vmem:[%s11111_s9 + $0x10] sm:$0xff] %v7491_v42 }
 0x69d   :  { %7498 = vst [vmem:[%s11111_s9 + $0x8] sm:$0xff] %v7490_v47  ;;  %7500 = vst [vmem:[%s11111_s9 + $0x18] sm:$0xff] %v7492_v19 }
 0x717   :  { %v7400_v56 = vpop.f32.mrb[16].mxu0  ;;  %v7482_v57 = vpop.f32.mrb[16].mxu1 }
 0x718   :  { %v7955_v58 = vadd.f32 %v7400_v56, %v7140_v51  ;;  %v7957_v59 = vadd.f32 %v7482_v57, %v7148_v52  ;;  %v7402_v60 = vpop.f32.mrb[17].mxu0  ;;  %v7484_v61 = vpop.f32.mrb[17].mxu1 }
 0x719   :  { %v7956_v62 = vadd.f32 %v7402_v60, %v7144_v55  ;;  %v7958_v63 = vadd.f32 %v7484_v61, %v7152_v46  ;;  %v7404_v0 = vpop.f32.mrb[18].mxu0  ;;  %v7486_v1 = vpop.f32.mrb[18].mxu1 }
 0x71a   :  { %v7493_v2 = vmax.f32 %v7955_v58, 0.0  ;;  %v7495_v3 = vmax.f32 %v7957_v59, 0.0  ;;  %v7405_v5 = vpop.f32.mrb[19].mxu0  ;;  %v7487_v6 = vpop.f32.mrb[19].mxu1 }
 0x71b   :  { %v7494_v7 = vmax.f32 %v7956_v62, 0.0  ;;  %v7496_v16 = vmax.f32 %v7958_v63, 0.0 }
 0x71c   :  { %7501 = vst [vmem:[%s11111_s9 + $0x20] sm:$0xff] %v7493_v2  ;;  %7503 = vst [vmem:[%s11111_s9 + $0x30] sm:$0xff] %v7495_v3 }
 0x71d   :  { %7502 = vst [vmem:[%s11111_s9 + $0x28] sm:$0xff] %v7494_v7  ;;  %7504 = vst [vmem:[%s11111_s9 + $0x38] sm:$0xff] %v7496_v16 }
 0x71e   :  { %7513 = vsyncpa [#allocation5], 1 }
 0x71f   :  { %7514 = vsyncpa [#allocation7], 1 }
 0x720   :  { %7515 = vsyncpa [#allocation10], 1 }
 0x721   :  { %7516 = vsyncpa [#allocation13], 1 }
 0x722   :  { %7517 = vsyncmov [#allocation3] }
 0x725   :  { %s7518_s16 = vpop.sfrf %7517 }
 0x726   :  { %p7902_p6 = scmp.ne.s32.totalorder %s7518_s16, 0 }
 0x728   :  { %7522 = shalt.err (%p7902_p6)  }

</bundles_post_ra>
